<compile_context>
chip_gen: v7x
topology: tpu7x:2x2x1
jax: 0.10.0
libtpu: 0.0.40
codegen_flags: <defaults>
</compile_context>

<pallas_src>
import functools

import jax
import jax.numpy as jnp
from jax import lax
from jax.experimental import pallas as pl
from jax.experimental.pallas import tpu as pltpu


def _act(v, hswish):
    if hswish:
        return v * (jnp.clip(v + 3.0, 0.0, 6.0) * (1.0 / 6.0))
    return jnp.maximum(v, 0.0)


def _bottleneck_kernel(x_ref, w1_ref, b1_ref, wd_ref, b2_ref, mask_in_ref,
                       mask_out_ref, wse1_ref, wse2_ref, w3_ref, b3_ref,
                       o_ref, buf_ref, *,
                       kh, kw, w_pad, stride, dilation, pad, ho, wo,
                       se, hswish, residual, imgs):
    f32 = jnp.float32
    bf16 = jnp.bfloat16
    e = w1_ref.shape[0]
    acc_len = ho * w_pad                 # output-slab lane width (w_pad pitch)
    res_off = pad * w_pad + pad          # residual read offset into padded x

    # Hoisted loads / casts: once per grid step, shared by all `imgs` images.
    w1b = w1_ref[...]                    # (E, Cin)   bf16, BN1 scale folded
    w3b = w3_ref[...]                    # (Cout, E)  bf16, BN3 scale folded
    wdt = wd_ref[...]                    # (E, KH*KW) f32,  BN2 scale folded
    b1c = b1_ref[...]                    # (E, 1)
    b2c = b2_ref[...]                    # (E, 1)
    b3c = b3_ref[...]                    # (Cout, 1)
    m_in = mask_in_ref[...]              # (1, L): 1 inside the image, 0 at halo/tail

    for b in range(imgs):                # static unroll over the per-step batch
        x_b = x_ref[b]                                   # (Cin, L) padded-flat

        # ---- 1x1 expansion (MXU, bf16 x bf16 -> f32); BN1 scale folded ------
        h1 = jnp.dot(w1b, x_b.astype(bf16),
                     preferred_element_type=f32)         # (E, L), lane-dense
        h1 = _act(h1 + b1c, hswish) * m_in               # halo forced back to 0

        # ---- depthwise KxK conv (VPU, f32); BN2 scale folded into wdt -------
        buf_ref[...] = h1                                # one full-lane store
        acc = jnp.zeros((e, acc_len), f32)
        for ikh in range(kh):                            # taps unrolled
            for ikw in range(kw):
                off = ikh * dilation * w_pad + ikw * dilation
                if stride == 1:
                    xs = buf_ref[:, pl.ds(off, acc_len)]
                else:
                    xs = buf_ref[:, pl.ds(off, acc_len, stride)]
                t = ikh * kw + ikw
                acc = acc + xs * wdt[:, t:t + 1]         # per-channel broadcast
        h2 = acc + b2c                                   # (E, Ho*W_pad)

        # ---- optional squeeze-excite (VPU/XLU only, no MXU fill/drain) ------
        if se:
            m_out = mask_out_ref[...]                    # (1, Ho*W_pad) validity
            pooled = jnp.sum(h2 * m_out, axis=1,
                             keepdims=True) * (1.0 / (ho * wo))        # (E, 1)
            z = jnp.maximum(jnp.sum(wse1_ref[...] * pooled, axis=0,
                                    keepdims=True), 0.0)               # (1, R)
            g = jnp.sum(wse2_ref[...] * z, axis=1, keepdims=True)      # (E, 1)
            g = jnp.clip(g + 3.0, 0.0, 6.0) * (1.0 / 6.0)              # hsigmoid
            h2 = h2 * g
        h2 = _act(h2, hswish)

        # ---- 1x1 projection (MXU, bf16); lane-dense (Cout, Ho*W_pad) result -
        out = jnp.dot(w3b, h2.astype(bf16),
                      preferred_element_type=f32)        # (Cout, Ho*W_pad)
        out = out + b3c
        if residual:                                     # stride==1, Cin==Cout
            out = out + x_b[:, res_off:res_off + acc_len].astype(f32)
        o_ref[b] = out.astype(o_ref.dtype)               # full-lane store


def bottleneck_forward(x, params, *, kernel_size, stride, dilation=1,
                       se=False, nl='RE', eps=1e-5, images_per_step=None):
    """Eval-mode forward of the MobileNetV3 Bottleneck.  NCHW in / NCHW out."""
    assert stride in (1, 2)
    f32, bf16 = jnp.float32, jnp.bfloat16
    n, cin, hgt, wid = x.shape
    w1, (g1, be1, m1, v1) = params['w1'], params['bn1']
    wd, (g2, be2, m2, v2) = params['wd'], params['bn2']
    w3, (g3, be3, m3, v3) = params['w3'], params['bn3']
    e = w1.shape[0]
    cout = w3.shape[0]
    kh, kw = wd.shape[2], wd.shape[3]
    pad = (kernel_size - 1) // 2 * dilation
    hp, wp = hgt + 2 * pad, wid + 2 * pad
    ho = (hp - dilation * (kh - 1) - 1) // stride + 1
    wo = (wp - dilation * (kw - 1) - 1) // stride + 1
    residual = (stride == 1 and cin == cout)

    acc_len = ho * wp                                  # depthwise / output slab width
    off_max = (kh - 1) * dilation * wp + (kw - 1) * dilation
    max_read = stride * (acc_len - 1) + off_max        # furthest tap read
    L = max(hp * wp, max_read + 1)                     # padded-flat length (+tail)

    # Fold eval-mode BatchNorm: y = conv(x) * s + (beta - mean * s)
    s1 = g1 / jnp.sqrt(v1 + eps)
    s2 = g2 / jnp.sqrt(v2 + eps)
    s3 = g3 / jnp.sqrt(v3 + eps)
    w1_k = (w1[:, :, 0, 0] * s1[:, None]).astype(bf16)                  # (E, Cin)
    wd_k = (wd[:, 0, :, :] * s2[:, None, None]).reshape(e, kh * kw).astype(f32)
    w3_k = (w3[:, :, 0, 0] * s3[:, None]).astype(bf16)                  # (Cout, E)
    b1_k = (be1 - m1 * s1)[:, None].astype(f32)                         # (E, 1)
    b2_k = (be2 - m2 * s2)[:, None].astype(f32)                         # (E, 1)
    b3_k = (be3 - m3 * s3)[:, None].astype(f32)                         # (Cout, 1)

    # Spatially pre-pad the input and flatten (h_pad*w_pad [+tail]) onto lanes.
    x_pad = jnp.pad(x, ((0, 0), (0, 0), (pad, pad), (pad, pad)))
    x_pad = x_pad.reshape(n, cin, hp * wp)
    if L > hp * wp:
        x_pad = jnp.pad(x_pad, ((0, 0), (0, 0), (0, L - hp * wp)))

    # Interior mask: after the 1x1 conv the halo would be act(bias) != 0, so the
    # kernel multiplies by this mask to restore exact zero padding.
    m2d = jnp.zeros((hp, wp), f32).at[pad:pad + hgt, pad:pad + wid].set(1.0)
    mask_in = jnp.zeros((1, L), f32).at[0, :hp * wp].set(m2d.reshape(-1))

    if se:
        wse1_k = params['wse1'].T.astype(f32)          # (E, R)
        wse2_k = params['wse2'].astype(f32)            # (E, R)
        mask_out = jnp.zeros((ho, wp), f32).at[:, :wo].set(1.0).reshape(1, acc_len)
    else:                                              # (1,1) dummies (review #9)
        wse1_k = jnp.zeros((1, 1), f32)
        wse2_k = jnp.zeros((1, 1), f32)
        mask_out = jnp.zeros((1, 1), f32)

    # Images per grid step (review #4).  Largest divisor of n up to 4.
    # TODO(synk): on v7x prefer a choice keeping (n // imgs) a multiple of 2 so
    #             both TensorCores get grid steps (CORE_PARALLEL).
    if images_per_step is None:
        images_per_step = 1
        for cand in (4, 3, 2):
            if n % cand == 0:
                images_per_step = cand
                break
    assert n % images_per_step == 0
    imgs = images_per_step
    steps = n // imgs

    kernel = functools.partial(
        _bottleneck_kernel,
        kh=kh, kw=kw, w_pad=wp, stride=stride, dilation=dilation, pad=pad,
        ho=ho, wo=wo, se=se, hswish=(nl == 'HS'), residual=residual, imgs=imgs)

    flops = 2 * n * hgt * wid * cin * e                # 1x1 expand
    flops += 2 * n * ho * wo * e * kh * kw             # depthwise
    flops += 2 * n * ho * wo * e * cout                # 1x1 project
    if se:
        flops += 4 * n * e * params['wse1'].shape[0]   # SE FCs
    bytes_accessed = (4 * (x_pad.size + n * cout * acc_len + wd_k.size
                           + b1_k.size + b2_k.size + b3_k.size + wse1_k.size
                           + wse2_k.size + mask_in.size + mask_out.size)
                      + 2 * (w1_k.size + w3_k.size))
    cost = pl.CostEstimate(flops=flops, transcendentals=0,
                           bytes_accessed=bytes_accessed)

    out = pl.pallas_call(
        kernel,
        out_shape=jax.ShapeDtypeStruct((n, cout, acc_len), x.dtype),
        grid_spec=pltpu.PrefetchScalarGridSpec(
            num_scalar_prefetch=0,
            grid=(steps,),
            in_specs=[
                pl.BlockSpec((imgs, cin, L), lambda i: (i, 0, 0)),
                pl.BlockSpec((e, cin), lambda i: (0, 0)),
                pl.BlockSpec((e, 1), lambda i: (0, 0)),
                pl.BlockSpec((e, kh * kw), lambda i: (0, 0)),
                pl.BlockSpec((e, 1), lambda i: (0, 0)),
                pl.BlockSpec((1, L), lambda i: (0, 0)),
                pl.BlockSpec(mask_out.shape, lambda i: (0, 0)),
                pl.BlockSpec(wse1_k.shape, lambda i: (0, 0)),
                pl.BlockSpec(wse2_k.shape, lambda i: (0, 0)),
                pl.BlockSpec((cout, e), lambda i: (0, 0)),
                pl.BlockSpec((cout, 1), lambda i: (0, 0)),
            ],
            out_specs=pl.BlockSpec((imgs, cout, acc_len), lambda i: (i, 0, 0)),
            scratch_shapes=[pltpu.VMEM((e, L), jnp.float32)],
        ),
        compiler_params=pltpu.CompilerParams(
            dimension_semantics=("parallel",),
            vmem_limit_bytes=32 * 1024 * 1024),        # usage per step < 1 MiB
        cost_estimate=cost,
    )(x_pad, w1_k, b1_k, wd_k, b2_k, mask_in, mask_out, wse1_k, wse2_k,
      w3_k, b3_k)

    # Drop the width-halo / tail garbage columns (wrapper-side layout plumbing
    # keeps every in-kernel store full-lane and unmasked).
    return out.reshape(n, cout, ho, wp)[:, :, :, :wo]


def bottleneck_ref(x, params, *, kernel_size, stride, dilation=1,
                   se=False, nl='RE', eps=1e-5):
    """Pure-JAX reference (eval-mode BN), NCHW."""
    hswish = (nl == 'HS')
    prec = lax.Precision.HIGHEST

    def bn(h, stats):
        g, b, m, v = stats
        s = g / jnp.sqrt(v + eps)
        return h * s[None, :, None, None] + (b - m * s)[None, :, None, None]

    pad = (kernel_size - 1) // 2 * dilation
    e = params['wd'].shape[0]

    h = lax.conv_general_dilated(
        x, params['w1'], (1, 1), 'VALID',
        dimension_numbers=('NCHW', 'OIHW', 'NCHW'), precision=prec)
    h = _act(bn(h, params['bn1']), hswish)
    h = lax.conv_general_dilated(
        h, params['wd'], (stride, stride), ((pad, pad), (pad, pad)),
        rhs_dilation=(dilation, dilation),
        dimension_numbers=('NCHW', 'OIHW', 'NCHW'),
        feature_group_count=e, precision=prec)
    h = bn(h, params['bn2'])
    if se:
        pooled = h.mean(axis=(2, 3))                                    # (N, E)
        z = jnp.maximum(jnp.dot(pooled, params['wse1'].T, precision=prec), 0.0)
        g = jnp.clip(jnp.dot(z, params['wse2'].T, precision=prec) + 3.0,
                     0.0, 6.0) / 6.0
        h = h * g[:, :, None, None]
    h = _act(h, hswish)
    h = lax.conv_general_dilated(
        h, params['w3'], (1, 1), 'VALID',
        dimension_numbers=('NCHW', 'OIHW', 'NCHW'), precision=prec)
    h = bn(h, params['bn3'])
    cin, cout = x.shape[1], params['w3'].shape[0]
    if stride == 1 and cin == cout:
        h = h + x
    return h


def make_params(key, cin, e, cout, k, se, reduction=4):
    keys = jax.random.split(key, 8)

    def bn_stats(kk, c):
        k1, k2, k3, k4 = jax.random.split(kk, 4)
        gamma = jax.random.uniform(k1, (c,), jnp.float32, 0.5, 1.5)
        beta = 0.1 * jax.random.normal(k2, (c,), jnp.float32)
        mean = 0.1 * jax.random.normal(k3, (c,), jnp.float32)
        var = jax.random.uniform(k4, (c,), jnp.float32, 0.5, 1.5)
        return (gamma, beta, mean, var)

    p = {
        'w1': 0.2 * jax.random.normal(keys[0], (e, cin, 1, 1), jnp.float32),
        'bn1': bn_stats(keys[1], e),
        'wd': 0.2 * jax.random.normal(keys[2], (e, 1, k, k), jnp.float32),
        'bn2': bn_stats(keys[3], e),
        'w3': 0.2 * jax.random.normal(keys[4], (cout, e, 1, 1), jnp.float32),
        'bn3': bn_stats(keys[5], cout),
    }
    if se:
        r = max(e // reduction, 1)
        p['wse1'] = 0.2 * jax.random.normal(keys[6], (r, e), jnp.float32)
        p['wse2'] = 0.2 * jax.random.normal(keys[7], (e, r), jnp.float32)
    return p


if __name__ == "__main__":
    key = jax.random.PRNGKey(0)
    kx1, kp1, kx2, kp2 = jax.random.split(key, 4)

    # bf16 MXU operands (perf-review item #3) -> slightly looser tolerance.
    ATOL, RTOL = 3e-2, 3e-2

    # Config A: hswish + SE + residual (stride=1, cin == cout), kernel 3x3.
    N, Cin, H, W, E, Cout, K = 2, 16, 16, 16, 32, 16, 3
    x1 = jax.random.normal(kx1, (N, Cin, H, W), jnp.float32)
    p1 = make_params(kp1, Cin, E, Cout, K, se=True)
    y1 = jax.block_until_ready(
        bottleneck_forward(x1, p1, kernel_size=K, stride=1, dilation=1,
                           se=True, nl='HS'))
    y1_ref = bottleneck_ref(x1, p1, kernel_size=K, stride=1, dilation=1,
                            se=True, nl='HS')
    assert y1.shape == y1_ref.shape, (y1.shape, y1_ref.shape)
    assert jnp.allclose(y1, y1_ref, atol=ATOL, rtol=RTOL), \
        float(jnp.max(jnp.abs(y1 - y1_ref)))

    # Config B: ReLU, no SE, no residual (cout != cin), kernel 5x5.
    Cout_b, Kb = 24, 5
    x2 = jax.random.normal(kx2, (N, Cin, H, W), jnp.float32)
    p2 = make_params(kp2, Cin, E, Cout_b, Kb, se=False)
    y2 = jax.block_until_ready(
        bottleneck_forward(x2, p2, kernel_size=Kb, stride=1, dilation=1,
                           se=False, nl='RE'))
    y2_ref = bottleneck_ref(x2, p2, kernel_size=Kb, stride=1, dilation=1,
                            se=False, nl='RE')
    assert y2.shape == y2_ref.shape, (y2.shape, y2_ref.shape)
    assert jnp.allclose(y2, y2_ref, atol=ATOL, rtol=RTOL), \
        float(jnp.max(jnp.abs(y2 - y2_ref)))

    print("KERNEL_OK")
</pallas_src>

<mosaic_0001>
module attributes {stable_mosaic.version = 11 : i64} {
  func.func @_bottleneck_kernel(%arg0: i32, %arg1: memref<2x16x326xf32, #tpu.memory_space<vmem>>, %arg2: memref<32x16xbf16, #tpu.memory_space<vmem>>, %arg3: memref<32x1xf32, #tpu.memory_space<vmem>>, %arg4: memref<32x9xf32, #tpu.memory_space<vmem>>, %arg5: memref<32x1xf32, #tpu.memory_space<vmem>>, %arg6: memref<1x326xf32, #tpu.memory_space<vmem>>, %arg7: memref<1x288xf32, #tpu.memory_space<vmem>>, %arg8: memref<32x8xf32, #tpu.memory_space<vmem>>, %arg9: memref<32x8xf32, #tpu.memory_space<vmem>>, %arg10: memref<16x32xbf16, #tpu.memory_space<vmem>>, %arg11: memref<16x1xf32, #tpu.memory_space<vmem>>, %arg12: memref<2x16x288xf32, #tpu.memory_space<vmem>>, %arg13: memref<32x326xf32, #tpu.memory_space<vmem>>) attributes {dimension_semantics = [#tpu.dimension_semantics<parallel>], iteration_bounds = array<i64: 1>, scalar_prefetch = 0 : i64, scratch_operands = 1 : i64, tpu.core_type = #tpu.core_type<tc>, window_params = [{transform_indices = @transform_0, window_bounds = array<i64: 2, 16, 326>}, {pipeline_mode = #tpu.pipeline_mode<synchronous>, transform_indices = @transform_1, window_bounds = array<i64: 32, 16>}, {pipeline_mode = #tpu.pipeline_mode<synchronous>, transform_indices = @transform_2, window_bounds = array<i64: 32, 1>}, {pipeline_mode = #tpu.pipeline_mode<synchronous>, transform_indices = @transform_3, window_bounds = array<i64: 32, 9>}, {pipeline_mode = #tpu.pipeline_mode<synchronous>, transform_indices = @transform_4, window_bounds = array<i64: 32, 1>}, {pipeline_mode = #tpu.pipeline_mode<synchronous>, transform_indices = @transform_5, window_bounds = array<i64: 1, 326>}, {pipeline_mode = #tpu.pipeline_mode<synchronous>, transform_indices = @transform_6, window_bounds = array<i64: 1, 288>}, {pipeline_mode = #tpu.pipeline_mode<synchronous>, transform_indices = @transform_7, window_bounds = array<i64: 32, 8>}, {pipeline_mode = #tpu.pipeline_mode<synchronous>, transform_indices = @transform_8, window_bounds = array<i64: 32, 8>}, {pipeline_mode = #tpu.pipeline_mode<synchronous>, transform_indices = @transform_9, window_bounds = array<i64: 16, 32>}, {pipeline_mode = #tpu.pipeline_mode<synchronous>, transform_indices = @transform_10, window_bounds = array<i64: 16, 1>}, {transform_indices = @transform_11, window_bounds = array<i64: 2, 16, 288>}]} {
    %c0 = arith.constant 0 : index
    %c0_0 = arith.constant 0 : index
    %0 = vector.load %arg2[%c0, %c0_0] : memref<32x16xbf16, #tpu.memory_space<vmem>>, vector<32x16xbf16>
    %c0_1 = arith.constant 0 : index
    %c0_2 = arith.constant 0 : index
    %1 = vector.load %arg10[%c0_1, %c0_2] : memref<16x32xbf16, #tpu.memory_space<vmem>>, vector<16x32xbf16>
    %c0_3 = arith.constant 0 : index
    %c0_4 = arith.constant 0 : index
    %2 = vector.load %arg4[%c0_3, %c0_4] : memref<32x9xf32, #tpu.memory_space<vmem>>, vector<32x9xf32>
    %c0_5 = arith.constant 0 : index
    %c0_6 = arith.constant 0 : index
    %3 = vector.load %arg3[%c0_5, %c0_6] : memref<32x1xf32, #tpu.memory_space<vmem>>, vector<32x1xf32>
    %c0_7 = arith.constant 0 : index
    %c0_8 = arith.constant 0 : index
    %4 = vector.load %arg5[%c0_7, %c0_8] : memref<32x1xf32, #tpu.memory_space<vmem>>, vector<32x1xf32>
    %c0_9 = arith.constant 0 : index
    %c0_10 = arith.constant 0 : index
    %5 = vector.load %arg11[%c0_9, %c0_10] : memref<16x1xf32, #tpu.memory_space<vmem>>, vector<16x1xf32>
    %c0_11 = arith.constant 0 : index
    %c0_12 = arith.constant 0 : index
    %6 = vector.load %arg6[%c0_11, %c0_12] : memref<1x326xf32, #tpu.memory_space<vmem>>, vector<1x326xf32>
    %c0_13 = arith.constant 0 : index
    %c0_14 = arith.constant 0 : index
    %c0_15 = arith.constant 0 : index
    %7 = vector.load %arg1[%c0_13, %c0_14, %c0_15] : memref<2x16x326xf32, #tpu.memory_space<vmem>>, vector<1x16x326xf32>
    %8 = vector.shape_cast %7 : vector<1x16x326xf32> to vector<16x326xf32>
    %9 = arith.truncf %8 : vector<16x326xf32> to vector<16x326xbf16>
    %cst = arith.constant dense<0.000000e+00> : vector<32x326xf32>
    %10 = tpu.matmul %0, %9, %cst {dimension_numbers = #tpu.dot_dimension_numbers<[1], [0], [0], [1], [0, 0, 1, 1], [], []>} : vector<32x16xbf16>, vector<16x326xbf16>, vector<32x326xf32> -> vector<32x326xf32>
    %11 = vector.broadcast %3 : vector<32x1xf32> to vector<32x326xf32>
    %12 = arith.addf %10, %11 : vector<32x326xf32>
    %cst_16 = arith.constant 3.000000e+00 : f32
    %13 = vector.broadcast %cst_16 : f32 to vector<32x326xf32>
    %14 = arith.addf %12, %13 : vector<32x326xf32>
    %cst_17 = arith.constant 0.000000e+00 : f32
    %cst_18 = arith.constant 6.000000e+00 : f32
    %15 = vector.broadcast %cst_17 : f32 to vector<32x326xf32>
    %16 = arith.maximumf %15, %14 : vector<32x326xf32>
    %17 = vector.broadcast %cst_18 : f32 to vector<32x326xf32>
    %18 = arith.minimumf %17, %16 : vector<32x326xf32>
    %cst_19 = arith.constant 0.166666672 : f32
    %19 = vector.broadcast %cst_19 : f32 to vector<32x326xf32>
    %20 = arith.mulf %18, %19 : vector<32x326xf32>
    %21 = arith.mulf %12, %20 : vector<32x326xf32>
    %22 = vector.broadcast %6 : vector<1x326xf32> to vector<32x326xf32>
    %23 = arith.mulf %21, %22 : vector<32x326xf32>
    %c0_20 = arith.constant 0 : index
    %c0_21 = arith.constant 0 : index
    %24 = vector.load %arg13[%c0_20, %c0_21] : memref<32x326xf32, #tpu.memory_space<vmem>>, vector<32x326xf32>
    tpu.vector_store %arg13[%c0_20, %c0_21], %23 {strides = array<i32>} : memref<32x326xf32, #tpu.memory_space<vmem>>, vector<32x326xf32>,
    %cst_22 = arith.constant 0.000000e+00 : f32
    %25 = vector.broadcast %cst_22 : f32 to vector<32x288xf32>
    %c0_23 = arith.constant 0 : index
    %c0_24 = arith.constant 0 : index
    %26 = vector.load %arg13[%c0_23, %c0_24] : memref<32x326xf32, #tpu.memory_space<vmem>>, vector<32x288xf32>
    %27 = vector.extract_strided_slice %2 {offsets = [0, 0], sizes = [32, 1], strides = [1, 1]} : vector<32x9xf32> to vector<32x1xf32>
    %28 = vector.broadcast %27 : vector<32x1xf32> to vector<32x288xf32>
    %29 = arith.mulf %26, %28 : vector<32x288xf32>
    %30 = arith.addf %25, %29 : vector<32x288xf32>
    %c0_25 = arith.constant 0 : index
    %c1 = arith.constant 1 : index
    %31 = vector.load %arg13[%c0_25, %c1] : memref<32x326xf32, #tpu.memory_space<vmem>>, vector<32x288xf32>
    %32 = vector.extract_strided_slice %2 {offsets = [0, 1], sizes = [32, 1], strides = [1, 1]} : vector<32x9xf32> to vector<32x1xf32>
    %33 = vector.broadcast %32 : vector<32x1xf32> to vector<32x288xf32>
    %34 = arith.mulf %31, %33 : vector<32x288xf32>
    %35 = arith.addf %30, %34 : vector<32x288xf32>
    %c0_26 = arith.constant 0 : index
    %c2 = arith.constant 2 : index
    %36 = vector.load %arg13[%c0_26, %c2] : memref<32x326xf32, #tpu.memory_space<vmem>>, vector<32x288xf32>
    %37 = vector.extract_strided_slice %2 {offsets = [0, 2], sizes = [32, 1], strides = [1, 1]} : vector<32x9xf32> to vector<32x1xf32>
    %38 = vector.broadcast %37 : vector<32x1xf32> to vector<32x288xf32>
    %39 = arith.mulf %36, %38 : vector<32x288xf32>
    %40 = arith.addf %35, %39 : vector<32x288xf32>
    %c0_27 = arith.constant 0 : index
    %c18 = arith.constant 18 : index
    %41 = vector.load %arg13[%c0_27, %c18] : memref<32x326xf32, #tpu.memory_space<vmem>>, vector<32x288xf32>
    %42 = vector.extract_strided_slice %2 {offsets = [0, 3], sizes = [32, 1], strides = [1, 1]} : vector<32x9xf32> to vector<32x1xf32>
    %43 = vector.broadcast %42 : vector<32x1xf32> to vector<32x288xf32>
    %44 = arith.mulf %41, %43 : vector<32x288xf32>
    %45 = arith.addf %40, %44 : vector<32x288xf32>
    %c0_28 = arith.constant 0 : index
    %c19 = arith.constant 19 : index
    %46 = vector.load %arg13[%c0_28, %c19] : memref<32x326xf32, #tpu.memory_space<vmem>>, vector<32x288xf32>
    %47 = vector.extract_strided_slice %2 {offsets = [0, 4], sizes = [32, 1], strides = [1, 1]} : vector<32x9xf32> to vector<32x1xf32>
    %48 = vector.broadcast %47 : vector<32x1xf32> to vector<32x288xf32>
    %49 = arith.mulf %46, %48 : vector<32x288xf32>
    %50 = arith.addf %45, %49 : vector<32x288xf32>
    %c0_29 = arith.constant 0 : index
    %c20 = arith.constant 20 : index
    %51 = vector.load %arg13[%c0_29, %c20] : memref<32x326xf32, #tpu.memory_space<vmem>>, vector<32x288xf32>
    %52 = vector.extract_strided_slice %2 {offsets = [0, 5], sizes = [32, 1], strides = [1, 1]} : vector<32x9xf32> to vector<32x1xf32>
    %53 = vector.broadcast %52 : vector<32x1xf32> to vector<32x288xf32>
    %54 = arith.mulf %51, %53 : vector<32x288xf32>
    %55 = arith.addf %50, %54 : vector<32x288xf32>
    %c0_30 = arith.constant 0 : index
    %c36 = arith.constant 36 : index
    %56 = vector.load %arg13[%c0_30, %c36] : memref<32x326xf32, #tpu.memory_space<vmem>>, vector<32x288xf32>
    %57 = vector.extract_strided_slice %2 {offsets = [0, 6], sizes = [32, 1], strides = [1, 1]} : vector<32x9xf32> to vector<32x1xf32>
    %58 = vector.broadcast %57 : vector<32x1xf32> to vector<32x288xf32>
    %59 = arith.mulf %56, %58 : vector<32x288xf32>
    %60 = arith.addf %55, %59 : vector<32x288xf32>
    %c0_31 = arith.constant 0 : index
    %c37 = arith.constant 37 : index
    %61 = vector.load %arg13[%c0_31, %c37] : memref<32x326xf32, #tpu.memory_space<vmem>>, vector<32x288xf32>
    %62 = vector.extract_strided_slice %2 {offsets = [0, 7], sizes = [32, 1], strides = [1, 1]} : vector<32x9xf32> to vector<32x1xf32>
    %63 = vector.broadcast %62 : vector<32x1xf32> to vector<32x288xf32>
    %64 = arith.mulf %61, %63 : vector<32x288xf32>
    %65 = arith.addf %60, %64 : vector<32x288xf32>
    %c0_32 = arith.constant 0 : index
    %c38 = arith.constant 38 : index
    %66 = vector.load %arg13[%c0_32, %c38] : memref<32x326xf32, #tpu.memory_space<vmem>>, vector<32x288xf32>
    %67 = vector.extract_strided_slice %2 {offsets = [0, 8], sizes = [32, 1], strides = [1, 1]} : vector<32x9xf32> to vector<32x1xf32>
    %68 = vector.broadcast %67 : vector<32x1xf32> to vector<32x288xf32>
    %69 = arith.mulf %66, %68 : vector<32x288xf32>
    %70 = arith.addf %65, %69 : vector<32x288xf32>
    %71 = vector.broadcast %4 : vector<32x1xf32> to vector<32x288xf32>
    %72 = arith.addf %70, %71 : vector<32x288xf32>
    %c0_33 = arith.constant 0 : index
    %c0_34 = arith.constant 0 : index
    %73 = vector.load %arg7[%c0_33, %c0_34] : memref<1x288xf32, #tpu.memory_space<vmem>>, vector<1x288xf32>
    %74 = vector.broadcast %73 : vector<1x288xf32> to vector<32x288xf32>
    %75 = arith.mulf %72, %74 : vector<32x288xf32>
    %cst_35 = arith.constant dense<0.000000e+00> : vector<32xf32>
    %76 = vector.multi_reduction <add>, %75, %cst_35 [1] : vector<32x288xf32> to vector<32xf32>
    %77 = vector.shape_cast %76 : vector<32xf32> to vector<32x1xf32>
    %cst_36 = arith.constant 3.906250e-03 : f32
    %78 = vector.broadcast %cst_36 : f32 to vector<32x1xf32>
    %79 = arith.mulf %77, %78 : vector<32x1xf32>
    %c0_37 = arith.constant 0 : index
    %c0_38 = arith.constant 0 : index
    %80 = vector.load %arg8[%c0_37, %c0_38] : memref<32x8xf32, #tpu.memory_space<vmem>>, vector<32x8xf32>
    %81 = vector.broadcast %79 : vector<32x1xf32> to vector<32x8xf32>
    %82 = arith.mulf %80, %81 : vector<32x8xf32>
    %cst_39 = arith.constant dense<0.000000e+00> : vector<8xf32>
    %83 = vector.multi_reduction <add>, %82, %cst_39 [0] : vector<32x8xf32> to vector<8xf32>
    %84 = vector.shape_cast %83 : vector<8xf32> to vector<1x8xf32>
    %cst_40 = arith.constant 0.000000e+00 : f32
    %85 = vector.broadcast %cst_40 : f32 to vector<1x8xf32>
    %86 = arith.maximumf %84, %85 : vector<1x8xf32>
    %c0_41 = arith.constant 0 : index
    %c0_42 = arith.constant 0 : index
    %87 = vector.load %arg9[%c0_41, %c0_42] : memref<32x8xf32, #tpu.memory_space<vmem>>, vector<32x8xf32>
    %88 = vector.broadcast %86 : vector<1x8xf32> to vector<32x8xf32>
    %89 = arith.mulf %87, %88 : vector<32x8xf32>
    %cst_43 = arith.constant dense<0.000000e+00> : vector<32xf32>
    %90 = vector.multi_reduction <add>, %89, %cst_43 [1] : vector<32x8xf32> to vector<32xf32>
    %91 = vector.shape_cast %90 : vector<32xf32> to vector<32x1xf32>
    %cst_44 = arith.constant 3.000000e+00 : f32
    %92 = vector.broadcast %cst_44 : f32 to vector<32x1xf32>
    %93 = arith.addf %91, %92 : vector<32x1xf32>
    %cst_45 = arith.constant 0.000000e+00 : f32
    %cst_46 = arith.constant 6.000000e+00 : f32
    %94 = vector.broadcast %cst_45 : f32 to vector<32x1xf32>
    %95 = arith.maximumf %94, %93 : vector<32x1xf32>
    %96 = vector.broadcast %cst_46 : f32 to vector<32x1xf32>
    %97 = arith.minimumf %96, %95 : vector<32x1xf32>
    %cst_47 = arith.constant 0.166666672 : f32
    %98 = vector.broadcast %cst_47 : f32 to vector<32x1xf32>
    %99 = arith.mulf %97, %98 : vector<32x1xf32>
    %100 = vector.broadcast %99 : vector<32x1xf32> to vector<32x288xf32>
    %101 = arith.mulf %72, %100 : vector<32x288xf32>
    %cst_48 = arith.constant 3.000000e+00 : f32
    %102 = vector.broadcast %cst_48 : f32 to vector<32x288xf32>
    %103 = arith.addf %101, %102 : vector<32x288xf32>
    %cst_49 = arith.constant 0.000000e+00 : f32
    %cst_50 = arith.constant 6.000000e+00 : f32
    %104 = vector.broadcast %cst_49 : f32 to vector<32x288xf32>
    %105 = arith.maximumf %104, %103 : vector<32x288xf32>
    %106 = vector.broadcast %cst_50 : f32 to vector<32x288xf32>
    %107 = arith.minimumf %106, %105 : vector<32x288xf32>
    %cst_51 = arith.constant 0.166666672 : f32
    %108 = vector.broadcast %cst_51 : f32 to vector<32x288xf32>
    %109 = arith.mulf %107, %108 : vector<32x288xf32>
    %110 = arith.mulf %101, %109 : vector<32x288xf32>
    %111 = arith.truncf %110 : vector<32x288xf32> to vector<32x288xbf16>
    %cst_52 = arith.constant dense<0.000000e+00> : vector<16x288xf32>
    %112 = tpu.matmul %1, %111, %cst_52 {dimension_numbers = #tpu.dot_dimension_numbers<[1], [0], [0], [1], [0, 0, 1, 1], [], []>} : vector<16x32xbf16>, vector<32x288xbf16>, vector<16x288xf32> -> vector<16x288xf32>
    %113 = vector.broadcast %5 : vector<16x1xf32> to vector<16x288xf32>
    %114 = arith.addf %112, %113 : vector<16x288xf32>
    %115 = vector.extract_strided_slice %8 {offsets = [0, 19], sizes = [16, 288], strides = [1, 1]} : vector<16x326xf32> to vector<16x288xf32>
    %116 = arith.addf %114, %115 : vector<16x288xf32>
    %c0_53 = arith.constant 0 : index
    %c0_54 = arith.constant 0 : index
    %c0_55 = arith.constant 0 : index
    %117 = vector.load %arg12[%c0_53, %c0_54, %c0_55] : memref<2x16x288xf32, #tpu.memory_space<vmem>>, vector<1x16x288xf32>
    %118 = vector.shape_cast %117 : vector<1x16x288xf32> to vector<16x288xf32>
    %119 = vector.shape_cast %116 : vector<16x288xf32> to vector<1x16x288xf32>
    tpu.vector_store %arg12[%c0_53, %c0_54, %c0_55], %119 {strides = array<i32>} : memref<2x16x288xf32, #tpu.memory_space<vmem>>, vector<1x16x288xf32>,
    %c1_56 = arith.constant 1 : index
    %c0_57 = arith.constant 0 : index
    %c0_58 = arith.constant 0 : index
    %120 = vector.load %arg1[%c1_56, %c0_57, %c0_58] : memref<2x16x326xf32, #tpu.memory_space<vmem>>, vector<1x16x326xf32>
    %121 = vector.shape_cast %120 : vector<1x16x326xf32> to vector<16x326xf32>
    %122 = arith.truncf %121 : vector<16x326xf32> to vector<16x326xbf16>
    %cst_59 = arith.constant dense<0.000000e+00> : vector<32x326xf32>
    %123 = tpu.matmul %0, %122, %cst_59 {dimension_numbers = #tpu.dot_dimension_numbers<[1], [0], [0], [1], [0, 0, 1, 1], [], []>} : vector<32x16xbf16>, vector<16x326xbf16>, vector<32x326xf32> -> vector<32x326xf32>
    %124 = vector.broadcast %3 : vector<32x1xf32> to vector<32x326xf32>
    %125 = arith.addf %123, %124 : vector<32x326xf32>
    %cst_60 = arith.constant 3.000000e+00 : f32
    %126 = vector.broadcast %cst_60 : f32 to vector<32x326xf32>
    %127 = arith.addf %125, %126 : vector<32x326xf32>
    %cst_61 = arith.constant 0.000000e+00 : f32
    %cst_62 = arith.constant 6.000000e+00 : f32
    %128 = vector.broadcast %cst_61 : f32 to vector<32x326xf32>
    %129 = arith.maximumf %128, %127 : vector<32x326xf32>
    %130 = vector.broadcast %cst_62 : f32 to vector<32x326xf32>
    %131 = arith.minimumf %130, %129 : vector<32x326xf32>
    %cst_63 = arith.constant 0.166666672 : f32
    %132 = vector.broadcast %cst_63 : f32 to vector<32x326xf32>
    %133 = arith.mulf %131, %132 : vector<32x326xf32>
    %134 = arith.mulf %125, %133 : vector<32x326xf32>
    %135 = vector.broadcast %6 : vector<1x326xf32> to vector<32x326xf32>
    %136 = arith.mulf %134, %135 : vector<32x326xf32>
    %c0_64 = arith.constant 0 : index
    %c0_65 = arith.constant 0 : index
    %137 = vector.load %arg13[%c0_64, %c0_65] : memref<32x326xf32, #tpu.memory_space<vmem>>, vector<32x326xf32>
    tpu.vector_store %arg13[%c0_64, %c0_65], %136 {strides = array<i32>} : memref<32x326xf32, #tpu.memory_space<vmem>>, vector<32x326xf32>,
    %cst_66 = arith.constant 0.000000e+00 : f32
    %138 = vector.broadcast %cst_66 : f32 to vector<32x288xf32>
    %c0_67 = arith.constant 0 : index
    %c0_68 = arith.constant 0 : index
    %139 = vector.load %arg13[%c0_67, %c0_68] : memref<32x326xf32, #tpu.memory_space<vmem>>, vector<32x288xf32>
    %140 = vector.extract_strided_slice %2 {offsets = [0, 0], sizes = [32, 1], strides = [1, 1]} : vector<32x9xf32> to vector<32x1xf32>
    %141 = vector.broadcast %140 : vector<32x1xf32> to vector<32x288xf32>
    %142 = arith.mulf %139, %141 : vector<32x288xf32>
    %143 = arith.addf %138, %142 : vector<32x288xf32>
    %c0_69 = arith.constant 0 : index
    %c1_70 = arith.constant 1 : index
    %144 = vector.load %arg13[%c0_69, %c1_70] : memref<32x326xf32, #tpu.memory_space<vmem>>, vector<32x288xf32>
    %145 = vector.extract_strided_slice %2 {offsets = [0, 1], sizes = [32, 1], strides = [1, 1]} : vector<32x9xf32> to vector<32x1xf32>
    %146 = vector.broadcast %145 : vector<32x1xf32> to vector<32x288xf32>
    %147 = arith.mulf %144, %146 : vector<32x288xf32>
    %148 = arith.addf %143, %147 : vector<32x288xf32>
    %c0_71 = arith.constant 0 : index
    %c2_72 = arith.constant 2 : index
    %149 = vector.load %arg13[%c0_71, %c2_72] : memref<32x326xf32, #tpu.memory_space<vmem>>, vector<32x288xf32>
    %150 = vector.extract_strided_slice %2 {offsets = [0, 2], sizes = [32, 1], strides = [1, 1]} : vector<32x9xf32> to vector<32x1xf32>
    %151 = vector.broadcast %150 : vector<32x1xf32> to vector<32x288xf32>
    %152 = arith.mulf %149, %151 : vector<32x288xf32>
    %153 = arith.addf %148, %152 : vector<32x288xf32>
    %c0_73 = arith.constant 0 : index
    %c18_74 = arith.constant 18 : index
    %154 = vector.load %arg13[%c0_73, %c18_74] : memref<32x326xf32, #tpu.memory_space<vmem>>, vector<32x288xf32>
    %155 = vector.extract_strided_slice %2 {offsets = [0, 3], sizes = [32, 1], strides = [1, 1]} : vector<32x9xf32> to vector<32x1xf32>
    %156 = vector.broadcast %155 : vector<32x1xf32> to vector<32x288xf32>
    %157 = arith.mulf %154, %156 : vector<32x288xf32>
    %158 = arith.addf %153, %157 : vector<32x288xf32>
    %c0_75 = arith.constant 0 : index
    %c19_76 = arith.constant 19 : index
    %159 = vector.load %arg13[%c0_75, %c19_76] : memref<32x326xf32, #tpu.memory_space<vmem>>, vector<32x288xf32>
    %160 = vector.extract_strided_slice %2 {offsets = [0, 4], sizes = [32, 1], strides = [1, 1]} : vector<32x9xf32> to vector<32x1xf32>
    %161 = vector.broadcast %160 : vector<32x1xf32> to vector<32x288xf32>
    %162 = arith.mulf %159, %161 : vector<32x288xf32>
    %163 = arith.addf %158, %162 : vector<32x288xf32>
    %c0_77 = arith.constant 0 : index
    %c20_78 = arith.constant 20 : index
    %164 = vector.load %arg13[%c0_77, %c20_78] : memref<32x326xf32, #tpu.memory_space<vmem>>, vector<32x288xf32>
    %165 = vector.extract_strided_slice %2 {offsets = [0, 5], sizes = [32, 1], strides = [1, 1]} : vector<32x9xf32> to vector<32x1xf32>
    %166 = vector.broadcast %165 : vector<32x1xf32> to vector<32x288xf32>
    %167 = arith.mulf %164, %166 : vector<32x288xf32>
    %168 = arith.addf %163, %167 : vector<32x288xf32>
    %c0_79 = arith.constant 0 : index
    %c36_80 = arith.constant 36 : index
    %169 = vector.load %arg13[%c0_79, %c36_80] : memref<32x326xf32, #tpu.memory_space<vmem>>, vector<32x288xf32>
    %170 = vector.extract_strided_slice %2 {offsets = [0, 6], sizes = [32, 1], strides = [1, 1]} : vector<32x9xf32> to vector<32x1xf32>
    %171 = vector.broadcast %170 : vector<32x1xf32> to vector<32x288xf32>
    %172 = arith.mulf %169, %171 : vector<32x288xf32>
    %173 = arith.addf %168, %172 : vector<32x288xf32>
    %c0_81 = arith.constant 0 : index
    %c37_82 = arith.constant 37 : index
    %174 = vector.load %arg13[%c0_81, %c37_82] : memref<32x326xf32, #tpu.memory_space<vmem>>, vector<32x288xf32>
    %175 = vector.extract_strided_slice %2 {offsets = [0, 7], sizes = [32, 1], strides = [1, 1]} : vector<32x9xf32> to vector<32x1xf32>
    %176 = vector.broadcast %175 : vector<32x1xf32> to vector<32x288xf32>
    %177 = arith.mulf %174, %176 : vector<32x288xf32>
    %178 = arith.addf %173, %177 : vector<32x288xf32>
    %c0_83 = arith.constant 0 : index
    %c38_84 = arith.constant 38 : index
    %179 = vector.load %arg13[%c0_83, %c38_84] : memref<32x326xf32, #tpu.memory_space<vmem>>, vector<32x288xf32>
    %180 = vector.extract_strided_slice %2 {offsets = [0, 8], sizes = [32, 1], strides = [1, 1]} : vector<32x9xf32> to vector<32x1xf32>
    %181 = vector.broadcast %180 : vector<32x1xf32> to vector<32x288xf32>
    %182 = arith.mulf %179, %181 : vector<32x288xf32>
    %183 = arith.addf %178, %182 : vector<32x288xf32>
    %184 = vector.broadcast %4 : vector<32x1xf32> to vector<32x288xf32>
    %185 = arith.addf %183, %184 : vector<32x288xf32>
    %c0_85 = arith.constant 0 : index
    %c0_86 = arith.constant 0 : index
    %186 = vector.load %arg7[%c0_85, %c0_86] : memref<1x288xf32, #tpu.memory_space<vmem>>, vector<1x288xf32>
    %187 = vector.broadcast %186 : vector<1x288xf32> to vector<32x288xf32>
    %188 = arith.mulf %185, %187 : vector<32x288xf32>
    %cst_87 = arith.constant dense<0.000000e+00> : vector<32xf32>
    %189 = vector.multi_reduction <add>, %188, %cst_87 [1] : vector<32x288xf32> to vector<32xf32>
    %190 = vector.shape_cast %189 : vector<32xf32> to vector<32x1xf32>
    %cst_88 = arith.constant 3.906250e-03 : f32
    %191 = vector.broadcast %cst_88 : f32 to vector<32x1xf32>
    %192 = arith.mulf %190, %191 : vector<32x1xf32>
    %c0_89 = arith.constant 0 : index
    %c0_90 = arith.constant 0 : index
    %193 = vector.load %arg8[%c0_89, %c0_90] : memref<32x8xf32, #tpu.memory_space<vmem>>, vector<32x8xf32>
    %194 = vector.broadcast %192 : vector<32x1xf32> to vector<32x8xf32>
    %195 = arith.mulf %193, %194 : vector<32x8xf32>
    %cst_91 = arith.constant dense<0.000000e+00> : vector<8xf32>
    %196 = vector.multi_reduction <add>, %195, %cst_91 [0] : vector<32x8xf32> to vector<8xf32>
    %197 = vector.shape_cast %196 : vector<8xf32> to vector<1x8xf32>
    %cst_92 = arith.constant 0.000000e+00 : f32
    %198 = vector.broadcast %cst_92 : f32 to vector<1x8xf32>
    %199 = arith.maximumf %197, %198 : vector<1x8xf32>
    %c0_93 = arith.constant 0 : index
    %c0_94 = arith.constant 0 : index
    %200 = vector.load %arg9[%c0_93, %c0_94] : memref<32x8xf32, #tpu.memory_space<vmem>>, vector<32x8xf32>
    %201 = vector.broadcast %199 : vector<1x8xf32> to vector<32x8xf32>
    %202 = arith.mulf %200, %201 : vector<32x8xf32>
    %cst_95 = arith.constant dense<0.000000e+00> : vector<32xf32>
    %203 = vector.multi_reduction <add>, %202, %cst_95 [1] : vector<32x8xf32> to vector<32xf32>
    %204 = vector.shape_cast %203 : vector<32xf32> to vector<32x1xf32>
    %cst_96 = arith.constant 3.000000e+00 : f32
    %205 = vector.broadcast %cst_96 : f32 to vector<32x1xf32>
    %206 = arith.addf %204, %205 : vector<32x1xf32>
    %cst_97 = arith.constant 0.000000e+00 : f32
    %cst_98 = arith.constant 6.000000e+00 : f32
    %207 = vector.broadcast %cst_97 : f32 to vector<32x1xf32>
    %208 = arith.maximumf %207, %206 : vector<32x1xf32>
    %209 = vector.broadcast %cst_98 : f32 to vector<32x1xf32>
    %210 = arith.minimumf %209, %208 : vector<32x1xf32>
    %cst_99 = arith.constant 0.166666672 : f32
    %211 = vector.broadcast %cst_99 : f32 to vector<32x1xf32>
    %212 = arith.mulf %210, %211 : vector<32x1xf32>
    %213 = vector.broadcast %212 : vector<32x1xf32> to vector<32x288xf32>
    %214 = arith.mulf %185, %213 : vector<32x288xf32>
    %cst_100 = arith.constant 3.000000e+00 : f32
    %215 = vector.broadcast %cst_100 : f32 to vector<32x288xf32>
    %216 = arith.addf %214, %215 : vector<32x288xf32>
    %cst_101 = arith.constant 0.000000e+00 : f32
    %cst_102 = arith.constant 6.000000e+00 : f32
    %217 = vector.broadcast %cst_101 : f32 to vector<32x288xf32>
    %218 = arith.maximumf %217, %216 : vector<32x288xf32>
    %219 = vector.broadcast %cst_102 : f32 to vector<32x288xf32>
    %220 = arith.minimumf %219, %218 : vector<32x288xf32>
    %cst_103 = arith.constant 0.166666672 : f32
    %221 = vector.broadcast %cst_103 : f32 to vector<32x288xf32>
    %222 = arith.mulf %220, %221 : vector<32x288xf32>
    %223 = arith.mulf %214, %222 : vector<32x288xf32>
    %224 = arith.truncf %223 : vector<32x288xf32> to vector<32x288xbf16>
    %cst_104 = arith.constant dense<0.000000e+00> : vector<16x288xf32>
    %225 = tpu.matmul %1, %224, %cst_104 {dimension_numbers = #tpu.dot_dimension_numbers<[1], [0], [0], [1], [0, 0, 1, 1], [], []>} : vector<16x32xbf16>, vector<32x288xbf16>, vector<16x288xf32> -> vector<16x288xf32>
    %226 = vector.broadcast %5 : vector<16x1xf32> to vector<16x288xf32>
    %227 = arith.addf %225, %226 : vector<16x288xf32>
    %228 = vector.extract_strided_slice %121 {offsets = [0, 19], sizes = [16, 288], strides = [1, 1]} : vector<16x326xf32> to vector<16x288xf32>
    %229 = arith.addf %227, %228 : vector<16x288xf32>
    %c1_105 = arith.constant 1 : index
    %c0_106 = arith.constant 0 : index
    %c0_107 = arith.constant 0 : index
    %230 = vector.load %arg12[%c1_105, %c0_106, %c0_107] : memref<2x16x288xf32, #tpu.memory_space<vmem>>, vector<1x16x288xf32>
    %231 = vector.shape_cast %230 : vector<1x16x288xf32> to vector<16x288xf32>
    %232 = vector.shape_cast %229 : vector<16x288xf32> to vector<1x16x288xf32>
    tpu.vector_store %arg12[%c1_105, %c0_106, %c0_107], %232 {strides = array<i32>} : memref<2x16x288xf32, #tpu.memory_space<vmem>>, vector<1x16x288xf32>,
    return
  }
  func.func @transform_0(%arg0: i32) -> (i32, i32, i32) {
    %c0_i32 = arith.constant 0 : i32
    %c0_i32_0 = arith.constant 0 : i32
    %c0_i32_1 = arith.constant 0 : i32
    return %arg0, %c0_i32, %c0_i32_0 : i32, i32, i32
  }
  func.func @transform_1(%arg0: i32) -> (i32, i32) {
    %c0_i32 = arith.constant 0 : i32
    %c0_i32_0 = arith.constant 0 : i32
    %c0_i32_1 = arith.constant 0 : i32
    return %c0_i32, %c0_i32_0 : i32, i32
  }
  func.func @transform_2(%arg0: i32) -> (i32, i32) {
    %c0_i32 = arith.constant 0 : i32
    %c0_i32_0 = arith.constant 0 : i32
    %c0_i32_1 = arith.constant 0 : i32
    return %c0_i32, %c0_i32_0 : i32, i32
  }
  func.func @transform_3(%arg0: i32) -> (i32, i32) {
    %c0_i32 = arith.constant 0 : i32
    %c0_i32_0 = arith.constant 0 : i32
    %c0_i32_1 = arith.constant 0 : i32
    return %c0_i32, %c0_i32_0 : i32, i32
  }
  func.func @transform_4(%arg0: i32) -> (i32, i32) {
    %c0_i32 = arith.constant 0 : i32
    %c0_i32_0 = arith.constant 0 : i32
    %c0_i32_1 = arith.constant 0 : i32
    return %c0_i32, %c0_i32_0 : i32, i32
  }
  func.func @transform_5(%arg0: i32) -> (i32, i32) {
    %c0_i32 = arith.constant 0 : i32
    %c0_i32_0 = arith.constant 0 : i32
    %c0_i32_1 = arith.constant 0 : i32
    return %c0_i32, %c0_i32_0 : i32, i32
  }
  func.func @transform_6(%arg0: i32) -> (i32, i32) {
    %c0_i32 = arith.constant 0 : i32
    %c0_i32_0 = arith.constant 0 : i32
    %c0_i32_1 = arith.constant 0 : i32
    return %c0_i32, %c0_i32_0 : i32, i32
  }
  func.func @transform_7(%arg0: i32) -> (i32, i32) {
    %c0_i32 = arith.constant 0 : i32
    %c0_i32_0 = arith.constant 0 : i32
    %c0_i32_1 = arith.constant 0 : i32
    return %c0_i32, %c0_i32_0 : i32, i32
  }
  func.func @transform_8(%arg0: i32) -> (i32, i32) {
    %c0_i32 = arith.constant 0 : i32
    %c0_i32_0 = arith.constant 0 : i32
    %c0_i32_1 = arith.constant 0 : i32
    return %c0_i32, %c0_i32_0 : i32, i32
  }
  func.func @transform_9(%arg0: i32) -> (i32, i32) {
    %c0_i32 = arith.constant 0 : i32
    %c0_i32_0 = arith.constant 0 : i32
    %c0_i32_1 = arith.constant 0 : i32
    return %c0_i32, %c0_i32_0 : i32, i32
  }
  func.func @transform_10(%arg0: i32) -> (i32, i32) {
    %c0_i32 = arith.constant 0 : i32
    %c0_i32_0 = arith.constant 0 : i32
    %c0_i32_1 = arith.constant 0 : i32
    return %c0_i32, %c0_i32_0 : i32, i32
  }
  func.func @transform_11(%arg0: i32) -> (i32, i32, i32) {
    %c0_i32 = arith.constant 0 : i32
    %c0_i32_0 = arith.constant 0 : i32
    %c0_i32_1 = arith.constant 0 : i32
    return %arg0, %c0_i32, %c0_i32_0 : i32, i32, i32
  }
}

</mosaic_0001>

<bundles_post_ra>
// kernel: tpu_custom_call.1
= control target key start
LH: loop header
LB: loop body
LE: loop exit
PB: predicated region body
PF: predicated region fallthrough
CT: control target
= control target key end

     0   :  { %v4955_v3 = vmov 0   ;;  %v2877_v11 = vmov 1   ;;  %vm100_vm0 = vcmask 130048   ;;  %s4943_s0 = inlined_call_operand.vmem [shape: f32[2,16,326], index: 0, kind: input, shape index: {}]   ;;  %s4944_s1 = inlined_call_operand.vmem [shape: bf16[32,16], index: 1, kind: input, shape index: {}]   ;;  %s4945_s2 = inlined_call_operand.vmem [shape: f32[32,1], index: 2, kind: input, shape index: {}]   ;;  %s4946_s3 = inlined_call_operand.vmem [shape: f32[32,9], index: 3, kind: input, shape index: {}]   ;;  %s4947_s4 = inlined_call_operand.vmem [shape: f32[32,1], index: 4, kind: input, shape index: {}]   ;;  %s4948_s5 = inlined_call_operand.vmem [shape: f32[1,326], index: 5, kind: input, shape index: {}]   ;;  %s4949_s6 = inlined_call_operand.vmem [shape: f32[1,288], index: 6, kind: input, shape index: {}]   ;;  %s4950_s7 = inlined_call_operand.vmem [shape: f32[32,8], index: 7, kind: input, shape index: {}]   ;;  %s4951_s8 = inlined_call_operand.vmem [shape: f32[32,8], index: 8, kind: input, shape index: {}]   ;;  %s4952_s9 = inlined_call_operand.vmem [shape: bf16[16,32], index: 9, kind: input, shape index: {}]   ;;  %s4953_s10 = inlined_call_operand.vmem [shape: f32[16,1], index: 10, kind: input, shape index: {}]   ;;  %s4954_s11 = inlined_call_operand.hbm [shape: f32[2,16,288], index: 11, kind: output, shape index: {}]  }
   0x1   :  { %v52_v0 = vld [vmem:[%s4945_s2 + $0x10] sm:$0xff]  ;;  %v62_v1 = vld [vmem:[%s4943_s0 + $0x8] sm:$0xff]  ;;  %v65_v2 = vld [vmem:[%s4943_s0 + $0x20] sm:$0xff]  ;;  %2804 = vset.pattern.permute.xlu1 %v4955_v3  ;;  %139 = vmatprep.mubr.bf16.mxu0 %v4955_v3 }
   0x2   :  { %v68_v4 = vpack.c.bf16 %v65_v2, %v62_v1  ;;  %v63_v5 = vld [vmem:[%s4943_s0 + $0x10] sm:$0xff]  ;;  %v66_v6 = vld [vmem:[%s4943_s0 + $0x28] sm:$0xff]  ;;  %v61_v7 = vld [vmem:[%s4943_s0] sm:$0xff]  ;;  %82 = vperm.xlu1 %2804, %v52_v0   ;;  %2805 = vset.pattern.permute.xlu0 %v2877_v11 }
   0x3   :  { %v69_v8 = vpack.c.bf16 %v66_v6, %v63_v5  ;;  %v64_v9 = vld [vmem:[%s4943_s0 + $0x18] sm:$0xff]  ;;  %v2834_v13 = vld [vmem:[%s4944_s1] sm:$0xff]   ;;  %v2835_v14 = vld [vmem:[%s4944_s1 + $0x8] sm:$0xff]  }
   0x4   :  { %v53_v10 = vld [vmem:[%s4945_s2 + $0x18] sm:$0xff]  ;;  %107 = vmatprep.subr.bf16.mxu0 %v68_v4  ;;  %v67_v12 = vpack.c.bf16 %v64_v9, %v61_v7  ;;  %v2993_v15 = vld [vmem:[%s4946_s3] sm:$0xff]  ;;  %2756 = vmatprep.mubr.msk.bf16.mxu1 %vm100_vm0, %v2834_v13  ;;  %v3002_v16 = vld [vmem:[%s4946_s3 + $0x8] sm:$0xff] }
   0x5   :  { %2754 = vmatprep.subr.bf16.mxu1 %v69_v8  ;;  %367 = vperm.xlu0 %2805, %v2993_v15  }
   0x6   :  { %108 = vmatpush1.bf16.msra.mxu0 %v67_v12  ;;  %2755 = vmatpush3.bf16.msra.mxu1 %v69_v8 }
   0x7   :  { %87 = vperm.xlu1 %2804, %v53_v10  }
   0x9   :  { %2723 = vmatmul.mubr.msk.bf16.vlgmr.msra.gmra.mrb[0].mxu0 %vm100_vm0, %v2834_v13  ;;  %2757 = vmatmul.mubr.msk.bf16.vlgmr.msra.gmra.mrb[0].mxu1 %vm100_vm0, %v2835_v14 }
   0xa   :  { %16 = vsyncpa [#allocation4], 0  ;;  %149 = vmatprep.mubr.bf16.mxu0 %v4955_v3  ;;  %1415 = vmatprep.mubr.bf16.mxu1 %v4955_v3  ;;  %v2878_v17 = vmov 2   ;;  %v3010_v18 = vld [vmem:[%s4946_s3 + $0x10] sm:$0xff]  ;;  %v2879_v19 = vmov 3   ;;  %v49_v20 = vld [vmem:[%s4946_s3 + $0x18] sm:$0xff]  ;;  %v270_v54 = vlaneseq }
   0xb   :  { %2806 = vset.pattern.permute.xlu1 %v2877_v11  ;;  %2807 = vset.pattern.permute.xlu0 %v2878_v17  ;;  %v2880_v21 = vmov 4   ;;  %v2881_v22 = vmov 5   ;;  %v2882_v23 = vmov 6   ;;  %v2883_v24 = vmov 7   ;;  %v50_v26 = vld [vmem:[%s4945_s2] sm:$0xff]  ;;  %v51_v27 = vld [vmem:[%s4945_s2 + $0x8] sm:$0xff] }
   0xc   :  { %371 = vperm.xlu1 %2806, %v3002_v16   ;;  %464 = vperm.xlu0 %2807, %v2993_v15   ;;  %v2884_v25 = vmov 8   ;;  %v54_v28 = vld [vmem:[%s4947_s4] sm:$0xff]  ;;  %v56_v29 = vld [vmem:[%s4947_s4 + $0x10] sm:$0xff]  ;;  %v55_v30 = vld [vmem:[%s4947_s4 + $0x8] sm:$0xff]  ;;  %v3108_v58 = vshrl.u32 %v270_v54, 7  ;;  %vm299_vm1 = vcmask 572416  }
   0xd   :  { %v3125_v12 = vld [vmem:[%s4948_s5] sm:$0x7]  ;;  %s2885_s5 = smov 126   ;;  %s2886_s17 = smov 127   ;;  %vm430_vm2 = vcmask 1039360   ;;  %vm527_vm3 = vcmask 1031168  }
   0xe   :  { %v3119_v9 = vsub.s32 0, %v3108_v58  ;;  %s2887_s18 = smov 110   ;;  %s2888_s19 = smov 109   ;;  %vm624_vm4 = vcmask 900096   ;;  %vm721_vm5 = vcmask 891904   ;;  %vm818_vm6 = vcmask 883712  }
   0xf   :  { %s2889_s20 = smov 108   ;;  %s2890_s21 = smov 92   ;;  %vm915_vm7 = vcmask 752640   ;;  %vm1012_vm8 = vcmask 744448   ;;  %vm1109_vm9 = vcmask 736256   ;;  %vm1204_vm10 = vcmask 261120  }
  0x10   :  { %375 = vperm.xlu1 %2806, %v3010_v18   ;;  %472 = vperm.xlu0 %2807, %v3010_v18   ;;  %s2891_s22 = smov 91   ;;  %s2892_s23 = smov 90   ;;  %vm1236_vm11 = vcmask 64512   ;;  %vm2894_vm12 = vmmov 0  }
  0x11   :  { %2724 = vmatmul.mubr.msk.bf16.gmra.mrb[4].mxu0 %vm100_vm0, %v2835_v14 }
  0x14   :  { %2808 = vset.pattern.permute.xlu1 %v2878_v17  ;;  %2811 = vset.pattern.permute.xlu0 %v2879_v19 }
  0x15   :  { %468 = vperm.xlu1 %2808, %v3002_v16   ;;  %565 = vperm.xlu0 %2811, %v3002_v16  }
  0x19   :  { %2809 = vset.pattern.permute.xlu1 %v2877_v11  ;;  %2814 = vset.pattern.permute.xlu0 %v2880_v21 }
  0x1a   :  { %379 = vperm.xlu1 %2809, %v49_v20   ;;  %658 = vperm.xlu0 %2814, %v2993_v15  }
  0x1e   :  { %2810 = vset.pattern.permute.xlu1 %v2879_v19  ;;  %666 = vperm.xlu0 %2814, %v3010_v18  }
  0x1f   :  { %561 = vperm.xlu1 %2810, %v2993_v15  }
  0x22   :  { %2818 = vset.pattern.permute.xlu0 %v2881_v22 }
  0x23   :  { %2812 = vset.pattern.permute.xlu1 %v2878_v17  ;;  %759 = vperm.xlu0 %2818, %v3002_v16  }
  0x24   :  { %476 = vperm.xlu1 %2812, %v49_v20  }
  0x27   :  { %2821 = vset.pattern.permute.xlu0 %v2882_v23 }
  0x28   :  { %2813 = vset.pattern.permute.xlu1 %v2879_v19  ;;  %852 = vperm.xlu0 %2821, %v2993_v15  }
  0x29   :  { %569 = vperm.xlu1 %2813, %v3010_v18  }
  0x2c   :  { %860 = vperm.xlu0 %2821, %v3010_v18  }
  0x2d   :  { %2815 = vset.pattern.permute.xlu1 %v2880_v21 }
  0x2e   :  { %662 = vperm.xlu1 %2815, %v3002_v16  }
  0x30   :  { %2825 = vset.pattern.permute.xlu0 %v2883_v24 }
  0x31   :  { %953 = vperm.xlu0 %2825, %v3002_v16  }
  0x32   :  { %2816 = vset.pattern.permute.xlu1 %v2879_v19 }
  0x33   :  { %573 = vperm.xlu1 %2816, %v49_v20  }
  0x35   :  { %2828 = vset.pattern.permute.xlu0 %v2884_v25 }
  0x36   :  { %1046 = vperm.xlu0 %2828, %v2993_v15  }
  0x37   :  { %2817 = vset.pattern.permute.xlu1 %v2881_v22 }
  0x38   :  { %755 = vperm.xlu1 %2817, %v2993_v15  }
  0x3a   :  { %1054 = vperm.xlu0 %2828, %v3010_v18  }
  0x3c   :  { %2819 = vset.pattern.permute.xlu1 %v2880_v21 }
  0x3d   :  { %670 = vperm.xlu1 %2819, %v49_v20  }
  0x3e   :  { %2831 = vset.pattern.permute.xlu0 %v4955_v3 }
  0x3f   :  { %72 = vperm.xlu0 %2831, %v50_v26  }
  0x41   :  { %2820 = vset.pattern.permute.xlu1 %v2881_v22 }
  0x42   :  { %763 = vperm.xlu1 %2820, %v3010_v18  }
  0x43   :  { %77 = vperm.xlu0 %2831, %v51_v27  }
  0x46   :  { %2822 = vset.pattern.permute.xlu1 %v2882_v23 }
  0x47   :  { %856 = vperm.xlu1 %2822, %v3002_v16   ;;  %324 = vperm.xlu0 %2831, %v2993_v15  }
  0x4b   :  { %2823 = vset.pattern.permute.xlu1 %v2881_v22  ;;  %339 = vperm.xlu0 %2831, %v49_v20  }
  0x4c   :  { %767 = vperm.xlu1 %2823, %v49_v20  }
  0x4f   :  { %1144 = vperm.xlu0 %2831, %v54_v28  }
  0x50   :  { %2824 = vset.pattern.permute.xlu1 %v2883_v24 }
  0x51   :  { %949 = vperm.xlu1 %2824, %v2993_v15   ;;  %v3128_v15 = vsub.s32 2, %v3108_v58 }
  0x53   :  { %1154 = vperm.xlu0 %2831, %v56_v29   ;;  %5103 = vst [vmem:[#allocation31_spill] sm:$0xff] %v3128_v15  ;;  %v3140_v29 = vrot.slane %v3125_v12, %v3128_v15 }
  0x55   :  { %2826 = vset.pattern.permute.xlu1 %v2882_v23  ;;  %v3134_v23 = vrot.slane %v3125_v12, %v3119_v9  ;;  %5106 = vst [vmem:[#allocation34_spill] sm:$0xff] %v3140_v29 }
  0x56   :  { %864 = vperm.xlu1 %2826, %v49_v20  }
  0x57   :  { %5105 = vst [vmem:[#allocation33_spill] sm:$0xff] %v3134_v23 }
  0x5a   :  { %2827 = vset.pattern.permute.xlu1 %v2883_v24 }
  0x5b   :  { %957 = vperm.xlu1 %2827, %v3010_v18  }
  0x5f   :  { %2829 = vset.pattern.permute.xlu1 %v2884_v25 }
  0x60   :  { %1050 = vperm.xlu1 %2829, %v3002_v16  }
  0x64   :  { %2830 = vset.pattern.permute.xlu1 %v2883_v24 }
  0x65   :  { %961 = vperm.xlu1 %2830, %v49_v20  }
  0x69   :  { %2832 = vset.pattern.permute.xlu1 %v2884_v25 }
  0x6a   :  { %1058 = vperm.xlu1 %2832, %v49_v20  }
  0x6e   :  { %2833 = vset.pattern.permute.xlu1 %v4955_v3 }
  0x6f   :  { %329 = vperm.xlu1 %2833, %v3002_v16  }
  0x73   :  { %334 = vperm.xlu1 %2833, %v3010_v18  }
  0x77   :  { %1149 = vperm.xlu1 %2833, %v55_v30  }
  0x81   :  { %v3064_v34 = vpop.permute.xlu1 %82 }
  0x82   :  { %5081 = vst [vmem:[#allocation9_spill] sm:$0xff] %v3064_v34 }
  0x84   :  { %v3058_v31 = vpop.permute.xlu0 %367 }
  0x85   :  { %5078 = vst [vmem:[#allocation6_spill] sm:$0xff] %v3058_v31 }
  0x86   :  { %v3068_v36 = vpop.permute.xlu1 %87 }
  0x87   :  { %5083 = vst [vmem:[#allocation11_spill] sm:$0xff] %v3068_v36 }
  0x8b   :  { %v3060_v32 = vpop.permute.xlu0 %464  ;;  %v3072_v38 = vpop.permute.xlu1 %371 }
  0x8c   :  { %5079 = vst [vmem:[#allocation7_spill] sm:$0xff] %v3060_v32  ;;  %5085 = vst [vmem:[#allocation13_spill] sm:$0xff] %v3072_v38 }
  0x8f   :  { %v3062_v33 = vpop.permute.xlu0 %472  ;;  %v3076_v40 = vpop.permute.xlu1 %375 }
  0x90   :  { %5080 = vst [vmem:[#allocation8_spill] sm:$0xff] %v3062_v33  ;;  %5087 = vst [vmem:[#allocation15_spill] sm:$0xff] %v3076_v40 }
  0x94   :  { %v3066_v35 = vpop.permute.xlu0 %565  ;;  %v3080_v42 = vpop.permute.xlu1 %468 }
  0x95   :  { %5082 = vst [vmem:[#allocation10_spill] sm:$0xff] %v3066_v35  ;;  %5089 = vst [vmem:[#allocation17_spill] sm:$0xff] %v3080_v42 }
  0x99   :  { %v3070_v37 = vpop.permute.xlu0 %658  ;;  %v3084_v44 = vpop.permute.xlu1 %379 }
  0x9a   :  { %5084 = vst [vmem:[#allocation12_spill] sm:$0xff] %v3070_v37  ;;  %5091 = vst [vmem:[#allocation19_spill] sm:$0xff] %v3084_v44 }
  0x9d   :  { %v3074_v39 = vpop.permute.xlu0 %666 }
  0x9e   :  { %5086 = vst [vmem:[#allocation14_spill] sm:$0xff] %v3074_v39  ;;  %v3088_v46 = vpop.permute.xlu1 %561 }
  0x9f   :  { %5093 = vst [vmem:[#allocation21_spill] sm:$0xff] %v3088_v46 }
  0xa2   :  { %v3078_v41 = vpop.permute.xlu0 %759 }
  0xa3   :  { %5088 = vst [vmem:[#allocation16_spill] sm:$0xff] %v3078_v41  ;;  %v3092_v48 = vpop.permute.xlu1 %476 }
  0xa4   :  { %5095 = vst [vmem:[#allocation23_spill] sm:$0xff] %v3092_v48 }
  0xa7   :  { %v3082_v43 = vpop.permute.xlu0 %852 }
  0xa8   :  { %5090 = vst [vmem:[#allocation18_spill] sm:$0xff] %v3082_v43  ;;  %v3096_v50 = vpop.permute.xlu1 %569 }
  0xa9   :  { %5097 = vst [vmem:[#allocation25_spill] sm:$0xff] %v3096_v50 }
  0xab   :  { %v3086_v45 = vpop.permute.xlu0 %860 }
  0xac   :  { %5092 = vst [vmem:[#allocation20_spill] sm:$0xff] %v3086_v45 }
  0xad   :  { %v3100_v52 = vpop.permute.xlu1 %662 }
  0xae   :  { %5099 = vst [vmem:[#allocation27_spill] sm:$0xff] %v3100_v52 }
  0xb0   :  { %v3090_v47 = vpop.permute.xlu0 %953 }
  0xb1   :  { %5094 = vst [vmem:[#allocation22_spill] sm:$0xff] %v3090_v47 }
  0xb2   :  { %v3104_v55 = vpop.permute.xlu1 %573 }
  0xb3   :  { %5101 = vst [vmem:[#allocation29_spill] sm:$0xff] %v3104_v55 }
  0xb5   :  { %v3094_v49 = vpop.permute.xlu0 %1046 }
  0xb6   :  { %5096 = vst [vmem:[#allocation24_spill] sm:$0xff] %v3094_v49 }
  0xb7   :  { %v3130_v17 = vpop.permute.xlu1 %755 }
  0xb8   :  { %5104 = vst [vmem:[#allocation32_spill] sm:$0xff] %v3130_v17 }
  0xb9   :  { %v3098_v51 = vpop.permute.xlu0 %1054 }
  0xba   :  { %5098 = vst [vmem:[#allocation26_spill] sm:$0xff] %v3098_v51 }
  0xbe   :  { %v3102_v53 = vpop.permute.xlu0 %72 }
  0xbf   :  { %5100 = vst [vmem:[#allocation28_spill] sm:$0xff] %v3102_v53 }
  0xc2   :  { %v3106_v56 = vpop.permute.xlu0 %77 }
  0xc3   :  { %5102 = vst [vmem:[#allocation30_spill] sm:$0xff] %v3106_v56 }
  0xdc   :  { %v141_v57 = vpop.f32.mrb[0].mxu0  ;;  %v2758_v59 = vpop.f32.mrb[0].mxu1 }
  0xdd   :  { %v142_v60 = vadd.f32 %v141_v57, %v3102_v53  ;;  %v203_v61 = vadd.f32 %v2758_v59, %v3064_v34  ;;  %v143_v62 = vpop.f32.mrb[1].mxu0  ;;  %v194_v63 = vpop.f32.mrb[1].mxu1 }
  0xde   :  { %v195_v0 = vadd.f32 %v194_v63, %v3102_v53  ;;  %v3113_v1 = vpop.f32.mrb[2].mxu0  ;;  %v2759_v2 = vpop.f32.mrb[2].mxu1 }
  0xdf   :  { %v209_v4 = vadd.f32 3.0, %v142_v60  ;;  %v217_v5 = vadd.f32 3.0, %v203_v61  ;;  %v206_v6 = vadd.f32 %v2759_v2, %v3068_v36  ;;  %v3116_v7 = vpop.f32.mrb[3].mxu0  ;;  %v197_v8 = vpop.f32.mrb[3].mxu1 }
  0xe0   :  { %v211_v10 = vadd.f32 3.0, %v195_v0  ;;  %v198_v11 = vadd.f32 %v197_v8, %v3106_v56 }
  0xe1   :  { %v221_v13 = vmax.f32 %v209_v4, 0.0  ;;  %v229_v14 = vmax.f32 %v217_v5, 0.0  ;;  %v220_v16 = vadd.f32 3.0, %v206_v6  ;;  %v3144_v5 = vpop.permute.xlu1 %670 }
  0xe2   :  { %v223_v18 = vmax.f32 %v211_v10, 0.0  ;;  %v214_v19 = vadd.f32 3.0, %v198_v11  ;;  %5107 = vst [vmem:[#allocation35_spill] sm:$0xff] %v3144_v5 }
  0xe3   :  { %v233_v20 = vmin.f32 %v221_v13, 6.0  ;;  %v241_v21 = vmin.f32 %v229_v14, 6.0  ;;  %v232_v22 = vmax.f32 %v220_v16, 0.0 }
  0xe4   :  { %v235_v24 = vmin.f32 %v223_v18, 6.0  ;;  %v226_v25 = vmax.f32 %v214_v19, 0.0  ;;  %v3136_v26 = vpop.f32.mrb[4].mxu0  ;;  %v144_v18 = vadd.f32 %v143_v62, %v3102_v53 }
  0xe5   :  { %v245_v27 = vmul.f32 0.16666667, %v233_v20  ;;  %v253_v28 = vmul.f32 0.16666667, %v241_v21  ;;  %v244_v30 = vmin.f32 %v232_v22, 6.0  ;;  %v3142_v4 = vpop.f32.mrb[5].mxu0 }
  0xe6   :  { %v247_v54 = vmul.f32 0.16666667, %v235_v24  ;;  %v238_v57 = vmin.f32 %v226_v25, 6.0  ;;  %v3146_v13 = vpop.f32.mrb[6].mxu0  ;;  %v210_v22 = vadd.f32 3.0, %v144_v18  ;;  %v3165_v24 = vpop.permute.xlu1 %763 }
  0xe7   :  { %v257_v59 = vmul.f32 %v245_v27, %v142_v60  ;;  %v265_v63 = vmul.f32 %v253_v28, %v203_v61  ;;  %v256_v2 = vmul.f32 0.16666667, %v244_v30  ;;  %v3153_v60 = vpop.f32.mrb[7].mxu0  ;;  %5108 = vst [vmem:[#allocation36_spill] sm:$0xff] %v3165_v24 }
  0xe8   :  { %v259_v8 = vmul.f32 %v247_v54, %v195_v0  ;;  %v250_v10 = vmul.f32 0.16666667, %v238_v57 }
  0xe9   :  { %v3149_v14 = vmul.f32 %v3134_v23, %v257_v59  ;;  %v293_v16 = vmul.f32 %v3140_v29, %v265_v63  ;;  %v268_v19 = vmul.f32 %v256_v2, %v206_v6  ;;  %v3186_v2 = vsub.s32 1, %v3108_v58 }
  0xea   :  { %v287_v61 = vmul.f32 %v3140_v29, %v259_v8  ;;  %v262_v20 = vmul.f32 %v250_v10, %v198_v11  ;;  %v222_v11 = vmax.f32 %v210_v22, 0.0  ;;  %v3177_v30 = vpop.permute.xlu1 %856  ;;  %v146_v22 = vadd.f32 %v3113_v1, %v3106_v56 }
  0xeb   :  { %306 = vst.msk [vmem:[#allocation2 + $0x40] sm:$0xff] %vm299_vm1, %v293_v16  ;;  %v296_v0 = vmul.f32 %v3140_v29, %v268_v19  ;;  %v479_v62 = vmul.f32 %v3060_v32, %v3149_v14  ;;  %v382_v6 = vmul.f32 %v3058_v31, %v3149_v14  ;;  %v576_v25 = vmul.f32 %v3088_v46, %v3149_v14 }
  0xec   :  { %300 = vst.msk [vmem:[#allocation2 + $0x10] sm:$0xff] %vm299_vm1, %v287_v61  ;;  %v290_v21 = vmul.f32 %v3140_v29, %v262_v20  ;;  %5110 = vst [vmem:[#allocation38_spill] sm:$0xff] %v3177_v30  ;;  %v234_v54 = vmin.f32 %v222_v11, 6.0  ;;  %v673_v57 = vmul.f32 %v3070_v37, %v3149_v14  ;;  %v770_v8 = vmul.f32 %v3130_v17, %v3149_v14 }
  0xed   :  { %309 = vst.msk [vmem:[#allocation2 + $0x58] sm:$0xff] %vm299_vm1, %v296_v0  ;;  %503 = vrot.lane.b32.xlu0 %v479_v62, %s2885_s5  ;;  %406 = vrot.lane.b32.xlu1 %v382_v6, %s2886_s17  ;;  %v3198_v61 = vrot.slane %v3125_v12, %v3186_v2  ;;  %v867_v58 = vmul.f32 %v3082_v43, %v3149_v14 }
  0xee   :  { %303 = vst.msk [vmem:[#allocation2 + $0x28] sm:$0xff] %vm299_vm1, %v290_v21  ;;  %v246_v63 = vmul.f32 0.16666667, %v234_v54  ;;  %v3191_v10 = vpop.permute.xlu1 %767 }
  0xef   :  { %5111 = vst [vmem:[#allocation39_spill] sm:$0xff] %v3191_v10  ;;  %5112 = vst [vmem:[#allocation40_spill] sm:$0xff] %v3198_v61 }
  0xf0   :  { %v258_v19 = vmul.f32 %v246_v63, %v144_v18 }
  0xf1   :  { %600 = vrot.lane.b32.xlu0 %v576_v25, %s2887_s18  ;;  %v212_v25 = vadd.f32 3.0, %v146_v22 }
  0xf2   :  { %v3172_v27 = vld [vmem:[#allocation2 + $0x40] sm:$0xff]  ;;  %v3206_v0 = vpop.permute.xlu1 %949  ;;  %v3209_v21 = vmul.f32 %v3198_v61, %v258_v19 }
  0xf3   :  { %5109 = vst [vmem:[#allocation37_spill] sm:$0xff] %v3172_v27  ;;  %v390_v28 = vmul.f32 %v3076_v40, %v3172_v27  ;;  %v487_v59 = vmul.f32 %v3062_v33, %v3172_v27  ;;  %v584_v16 = vmul.f32 %v3096_v50, %v3172_v27  ;;  %v681_v20 = vmul.f32 %v3074_v39, %v3172_v27  ;;  %v3222_v6 = vld [vmem:[#allocation2 + $0x10] sm:$0xff] }
  0xf4   :  { %5113 = vst [vmem:[#allocation41_spill] sm:$0xff] %v3206_v0  ;;  %v964_v12 = vmul.f32 %v3206_v0, %v3149_v14  ;;  %v778_v18 = vmul.f32 %v3165_v24, %v3172_v27  ;;  %v383_v62 = vmul.f32 %v3058_v31, %v3209_v21  ;;  %v875_v11 = vmul.f32 %v3086_v45, %v3172_v27 }
  0xf5   :  { %422 = vrot.lane.b32.xlu1 %v390_v28, %s2886_s17  ;;  %697 = vrot.lane.b32.xlu0 %v673_v57, %s2888_s19  ;;  %v481_v28 = vmul.f32 %v3060_v32, %v3222_v6  ;;  %v384_v1 = vmul.f32 %v3058_v31, %v3222_v6  ;;  %v224_v54 = vmax.f32 %v212_v25, 0.0  ;;  %v578_v57 = vmul.f32 %v3088_v46, %v3222_v6 }
  0xf6   :  { %v966_v25 = vmul.f32 %v3206_v0, %v3222_v6 }
  0xf7   :  { %v236_v63 = vmin.f32 %v224_v54, 6.0  ;;  %v3271_v54 = vld [vmem:[#allocation2 + $0x58] sm:$0xff] }
  0xf8   :  { %5114 = vst [vmem:[#allocation42_spill] sm:$0xff] %v3271_v54 }
  0xf9   :  { %519 = vrot.lane.b32.xlu1 %v487_v59, %s2885_s5  ;;  %794 = vrot.lane.b32.xlu0 %v770_v8, %s2889_s20  ;;  %v480_v59 = vmul.f32 %v3060_v32, %v3209_v21  ;;  %v675_v8 = vmul.f32 %v3070_v37, %v3222_v6  ;;  %v248_v19 = vmul.f32 0.16666667, %v236_v63  ;;  %v393_v63 = vmul.f32 %v3084_v44, %v3271_v54 }
  0xfd   :  { %616 = vrot.lane.b32.xlu1 %v584_v16, %s2887_s18  ;;  %891 = vrot.lane.b32.xlu0 %v867_v58, %s2890_s21  ;;  %v577_v16 = vmul.f32 %v3088_v46, %v3209_v21  ;;  %v772_v58 = vmul.f32 %v3130_v17, %v3222_v6 }
 0x101   :  { %713 = vrot.lane.b32.xlu1 %v681_v20, %s2888_s19  ;;  %988 = vrot.lane.b32.xlu0 %v964_v12, %s2891_s22  ;;  %v674_v20 = vmul.f32 %v3070_v37, %v3209_v21  ;;  %v260_v12 = vmul.f32 %v248_v19, %v146_v22  ;;  %v868_v22 = vmul.f32 %v3082_v43, %v3209_v21 }
 0x105   :  { %810 = vrot.lane.b32.xlu1 %v778_v18, %s2889_s20  ;;  %408 = vrot.lane.b32.xlu0 %v383_v62, %s2886_s17  ;;  %v869_v18 = vmul.f32 %v3082_v43, %v3222_v6  ;;  %v771_v62 = vmul.f32 %v3130_v17, %v3209_v21 }
 0x109   :  { %907 = vrot.lane.b32.xlu1 %v875_v11, %s2890_s21  ;;  %507 = vrot.lane.b32.xlu0 %v481_v28, %s2885_s5  ;;  %v3258_v11 = vmul.f32 %v3134_v23, %v260_v12  ;;  %v148_v28 = vadd.f32 %v3116_v7, %v3106_v56 }
 0x10b   :  { %v482_v7 = vmul.f32 %v3080_v42, %v3258_v11  ;;  %v579_v19 = vmul.f32 %v3066_v35, %v3258_v11  ;;  %v676_v12 = vmul.f32 %v3100_v52, %v3258_v11 }
 0x10d   :  { %410 = vrot.lane.b32.xlu1 %v384_v1, %s2886_s17  ;;  %604 = vrot.lane.b32.xlu0 %v578_v57, %s2887_s18  ;;  %v385_v1 = vmul.f32 %v3072_v38, %v3258_v11  ;;  %v965_v57 = vmul.f32 %v3206_v0, %v3209_v21 }
 0x111   :  { %505 = vrot.lane.b32.xlu1 %v480_v59, %s2885_s5  ;;  %701 = vrot.lane.b32.xlu0 %v675_v8, %s2888_s19  ;;  %v213_v59 = vadd.f32 3.0, %v148_v28 }
 0x113   :  { %v225_v8 = vmax.f32 %v213_v59, 0.0  ;;  %v3305_v59 = vld [vmem:[#allocation2 + $0x28] sm:$0xff] }
 0x115   :  { %602 = vrot.lane.b32.xlu1 %v577_v16, %s2887_s18  ;;  %798 = vrot.lane.b32.xlu0 %v772_v58, %s2889_s20  ;;  %v490_v16 = vmul.f32 %v3092_v48, %v3271_v54  ;;  %v237_v58 = vmin.f32 %v225_v8, 6.0  ;;  %v154_v8 = vadd.f32 %v3142_v4, %v3064_v34  ;;  %v152_v4 = vadd.f32 %v3136_v26, %v3064_v34 }
 0x119   :  { %699 = vrot.lane.b32.xlu1 %v674_v20, %s2888_s19  ;;  %895 = vrot.lane.b32.xlu0 %v869_v18, %s2890_s21  ;;  %v587_v20 = vmul.f32 %v3104_v55, %v3271_v54  ;;  %v249_v18 = vmul.f32 0.16666667, %v237_v58  ;;  %v216_v58 = vadd.f32 3.0, %v154_v8 }
 0x11d   :  { %796 = vrot.lane.b32.xlu1 %v771_v62, %s2889_s20  ;;  %992 = vrot.lane.b32.xlu0 %v966_v25, %s2891_s22  ;;  %v684_v62 = vmul.f32 %v3144_v5, %v3271_v54  ;;  %v773_v25 = vmul.f32 %v3078_v41, %v3258_v11 }
 0x121   :  { %893 = vrot.lane.b32.xlu1 %v868_v22, %s2890_s21  ;;  %412 = vrot.lane.b32.xlu0 %v385_v1, %s2886_s17  ;;  %v3300_v22 = vpop.permute.xlu1 %864  ;;  %v261_v1 = vmul.f32 %v249_v18, %v148_v28  ;;  %v387_v28 = vmul.f32 %v3072_v38, %v3305_v59 }
 0x122   :  { %5115 = vst [vmem:[#allocation43_spill] sm:$0xff] %v3300_v22 }
 0x125   :  { %990 = vrot.lane.b32.xlu1 %v965_v57, %s2891_s22  ;;  %428 = vrot.lane.b32.xlu0 %v393_v63, %s2886_s17  ;;  %v781_v57 = vmul.f32 %v3191_v10, %v3271_v54  ;;  %v870_v63 = vmul.f32 %v3177_v30, %v3258_v11 }
 0x129   :  { %509 = vrot.lane.b32.xlu1 %v482_v7, %s2885_s5  ;;  %525 = vrot.lane.b32.xlu0 %v490_v16, %s2885_s5  ;;  %v3311_v7 = vmul.f32 %v3198_v61, %v261_v1  ;;  %v3318_v16 = vpop.permute.xlu1 %957  ;;  %v215_v1 = vadd.f32 3.0, %v152_v4 }
 0x12a   :  { %5116 = vst [vmem:[#allocation44_spill] sm:$0xff] %v3318_v16 }
 0x12d   :  { %606 = vrot.lane.b32.xlu1 %v579_v19, %s2887_s18  ;;  %622 = vrot.lane.b32.xlu0 %v587_v20, %s2887_s18  ;;  %v967_v19 = vmul.f32 %v3090_v47, %v3258_v11  ;;  %v483_v20 = vmul.f32 %v3080_v42, %v3311_v7  ;;  %v3331_v18 = vpop.permute.xlu1 %1050 }
 0x12e   :  { %5117 = vst [vmem:[#allocation45_spill] sm:$0xff] %v3331_v18  ;;  %v1065_v56 = vmul.f32 %v3331_v18, %v3311_v7 }
 0x131   :  { %703 = vrot.lane.b32.xlu1 %v676_v12, %s2888_s19  ;;  %719 = vrot.lane.b32.xlu0 %v684_v62, %s2888_s19  ;;  %v386_v12 = vmul.f32 %v3072_v38, %v3311_v7  ;;  %v228_v62 = vmax.f32 %v216_v58, 0.0  ;;  %v581_v58 = vmul.f32 %v3066_v35, %v3305_v59 }
 0x133   :  { %v240_v26 = vmin.f32 %v228_v62, 6.0  ;;  %v3350_v62 = vpop.permute.xlu0 %324 }
 0x135   :  { %800 = vrot.lane.b32.xlu1 %v773_v25, %s2889_s20  ;;  %816 = vrot.lane.b32.xlu0 %v781_v57, %s2889_s20  ;;  %v580_v25 = vmul.f32 %v3066_v35, %v3311_v7  ;;  %v484_v57 = vmul.f32 %v3080_v42, %v3305_v59 }
 0x139   :  { %897 = vrot.lane.b32.xlu1 %v870_v63, %s2890_s21  ;;  %416 = vrot.lane.b32.xlu0 %v387_v28, %s2886_s17  ;;  %v677_v63 = vmul.f32 %v3100_v52, %v3311_v7  ;;  %v227_v28 = vmax.f32 %v215_v1, 0.0  ;;  %v678_v1 = vmul.f32 %v3100_v52, %v3305_v59 }
 0x13d   :  { %994 = vrot.lane.b32.xlu1 %v967_v19, %s2891_s22  ;;  %511 = vrot.lane.b32.xlu0 %v483_v20, %s2885_s5  ;;  %v3342_v19 = vpop.permute.xlu1 %961  ;;  %v252_v20 = vmul.f32 0.16666667, %v240_v26  ;;  %v871_v26 = vmul.f32 %v3177_v30, %v3311_v7 }
 0x13e   :  { %5118 = vst [vmem:[#allocation46_spill] sm:$0xff] %v3342_v19 }
 0x141   :  { %414 = vrot.lane.b32.xlu1 %v386_v12, %s2886_s17  ;;  %608 = vrot.lane.b32.xlu0 %v580_v25, %s2887_s18  ;;  %v774_v12 = vmul.f32 %v3078_v41, %v3311_v7  ;;  %v239_v25 = vmin.f32 %v227_v28, 6.0  ;;  %v3355_v3 = vpop.permute.xlu1 %1058  ;;  %v3363_v28 = vpop.permute.xlu0 %339 }
 0x142   :  { %5119 = vst [vmem:[#allocation47_spill] sm:$0xff] %v3355_v3  ;;  %5120 = vst [vmem:[#allocation48_spill] sm:$0xff] %v3363_v28 }
 0x145   :  { %513 = vrot.lane.b32.xlu1 %v484_v57, %s2885_s5  ;;  %705 = vrot.lane.b32.xlu0 %v677_v63, %s2888_s19  ;;  %v264_v57 = vmul.f32 %v252_v20, %v154_v8  ;;  %v251_v63 = vmul.f32 0.16666667, %v239_v25  ;;  %v156_v8 = vadd.f32 %v3146_v13, %v3068_v36  ;;  %v968_v20 = vmul.f32 %v3090_v47, %v3311_v7  ;;  %v3373_v25 = vpop.permute.xlu1 %329  ;;  %v3381_v13 = vpop.permute.xlu0 %1144 }
 0x149   :  { %610 = vrot.lane.b32.xlu1 %v581_v58, %s2887_s18  ;;  %802 = vrot.lane.b32.xlu0 %v774_v12, %s2889_s20  ;;  %v775_v58 = vmul.f32 %v3078_v41, %v3305_v59  ;;  %v3366_v12 = vmul.f32 %v3198_v61, %v264_v57  ;;  %v218_v41 = vadd.f32 3.0, %v156_v8 }
 0x14b   :  { %5121 = vst [vmem:[#allocation49_spill] sm:$0xff] %v3366_v12  ;;  %v389_v57 = vmul.f32 %v3076_v40, %v3366_v12  ;;  %v971_v31 = vmul.f32 %v3318_v16, %v3366_v12 }
 0x14d   :  { %707 = vrot.lane.b32.xlu1 %v678_v1, %s2888_s19  ;;  %899 = vrot.lane.b32.xlu0 %v871_v26, %s2890_s21  ;;  %v263_v1 = vmul.f32 %v251_v63, %v152_v4  ;;  %v872_v26 = vmul.f32 %v3177_v30, %v3305_v59  ;;  %v969_v4 = vmul.f32 %v3090_v47, %v3305_v59  ;;  %v230_v63 = vmax.f32 %v218_v41, 0.0 }
 0x14e   :  { %v158_v30 = vadd.f32 %v3153_v60, %v3068_v36 }
 0x14f   :  { %v242_v38 = vmin.f32 %v230_v63, 6.0  ;;  %v680_v63 = vmul.f32 %v3074_v39, %v3366_v12 }
 0x150   :  { %v219_v47 = vadd.f32 3.0, %v158_v30 }
 0x151   :  { %804 = vrot.lane.b32.xlu1 %v775_v58, %s2889_s20  ;;  %996 = vrot.lane.b32.xlu0 %v968_v20, %s2891_s22  ;;  %v3384_v58 = vmul.f32 %v3134_v23, %v263_v1  ;;  %v3389_v20 = vpop.permute.xlu1 %334 }
 0x152   :  { %5123 = vst [vmem:[#allocation51_spill] sm:$0xff] %v3389_v20 }
 0x153   :  { %5122 = vst [vmem:[#allocation50_spill] sm:$0xff] %v3384_v58  ;;  %v388_v1 = vmul.f32 %v3076_v40, %v3384_v58  ;;  %v485_v60 = vmul.f32 %v3062_v33, %v3384_v58  ;;  %v582_v42 = vmul.f32 %v3096_v50, %v3384_v58  ;;  %v878_v40 = vmul.f32 %v3300_v22, %v3271_v54 }
 0x155   :  { %901 = vrot.lane.b32.xlu1 %v872_v26, %s2890_s21  ;;  %420 = vrot.lane.b32.xlu0 %v389_v57, %s2886_s17  ;;  %v486_v26 = vmul.f32 %v3062_v33, %v3366_v12  ;;  %v3399_v57 = vpop.permute.xlu0 %1154  ;;  %v3402_v41 = vpop.permute.xlu1 %1149 }
 0x156   :  { %5124 = vst [vmem:[#allocation52_spill] sm:$0xff] %v3399_v57  ;;  %5125 = vst [vmem:[#allocation53_spill] sm:$0xff] %v3402_v41  ;;  %v1067_v57 = vmul.f32 %v3098_v51, %v3384_v58 }
 0x159   :  { %998 = vrot.lane.b32.xlu1 %v969_v4, %s2891_s22  ;;  %517 = vrot.lane.b32.xlu0 %v486_v26, %s2885_s5  ;;  %v583_v4 = vmul.f32 %v3096_v50, %v3366_v12  ;;  %v254_v26 = vmul.f32 0.16666667, %v242_v38  ;;  %v777_v38 = vmul.f32 %v3165_v24, %v3366_v12 }
 0x15d   :  { %418 = vrot.lane.b32.xlu1 %v388_v1, %s2886_s17  ;;  %614 = vrot.lane.b32.xlu0 %v583_v4, %s2887_s18  ;;  %v231_v1 = vmax.f32 %v219_v47, 0.0  ;;  %v266_v4 = vmul.f32 %v254_v26, %v156_v8  ;;  %v679_v47 = vmul.f32 %v3074_v39, %v3384_v58 }
 0x15f   :  { %v3410_v52 = vpop.permute.xlu0 %503  ;;  %v3414_v35 = vpop.permute.xlu1 %406 }
 0x161   :  { %515 = vrot.lane.b32.xlu1 %v485_v60, %s2885_s5  ;;  %711 = vrot.lane.b32.xlu0 %v680_v63, %s2888_s19  ;;  %v243_v60 = vmin.f32 %v231_v1, 6.0  ;;  %v3430_v63 = vmul.f32 %v3134_v23, %v266_v4  ;;  %v776_v1 = vmul.f32 %v3165_v24, %v3384_v58  ;;  %v1063_v23 = vmul.f32 %v3094_v49, %v3222_v6 }
 0x163   :  { %v3420_v0 = vpop.permute.xlu0 %600  ;;  %5127 = vst [vmem:[#allocation55_spill] sm:$0xff] %v3430_v63  ;;  %v255_v26 = vmul.f32 0.16666667, %v243_v60  ;;  %v391_v4 = vmul.f32 %v3084_v44, %v3430_v63  ;;  %v873_v60 = vmul.f32 %v3086_v45, %v3384_v58  ;;  %v973_v29 = vmul.f32 %v3342_v19, %v3430_v63 }
 0x165   :  { %612 = vrot.lane.b32.xlu1 %v582_v42, %s2887_s18  ;;  %808 = vrot.lane.b32.xlu0 %v777_v38, %s2889_s20  ;;  %v874_v42 = vmul.f32 %v3086_v45, %v3366_v12  ;;  %v682_v45 = vmul.f32 %v3144_v5, %v3430_v63 }
 0x167   :  { %v3424_v43 = vpop.permute.xlu1 %422  ;;  %v3433_v8 = vpop.permute.xlu0 %697 }
 0x168   :  { %5126 = vst [vmem:[#allocation54_spill] sm:$0xff] %v3424_v43 }
 0x169   :  { %709 = vrot.lane.b32.xlu1 %v679_v47, %s2888_s19  ;;  %905 = vrot.lane.b32.xlu0 %v874_v42, %s2890_s21  ;;  %v267_v47 = vmul.f32 %v255_v26, %v158_v30  ;;  %v876_v30 = vmul.f32 %v3300_v22, %v3430_v63 }
 0x16b   :  { %v3437_v17 = vpop.permute.xlu1 %519  ;;  %v3443_v38 = vpop.permute.xlu0 %794  ;;  %v3458_v24 = vmul.f32 %v3198_v61, %v267_v47  ;;  %v1061_v61 = vmul.f32 %v3094_v49, %v3149_v14 }
 0x16c   :  { %5128 = vst [vmem:[#allocation56_spill] sm:$0xff] %v3437_v17 }
 0x16d   :  { %806 = vrot.lane.b32.xlu1 %v776_v1, %s2889_s20  ;;  %424 = vrot.lane.b32.xlu0 %v391_v4, %s2886_s17  ;;  %v488_v1 = vmul.f32 %v3092_v48, %v3430_v63  ;;  %5130 = vst [vmem:[#allocation58_spill] sm:$0xff] %v3458_v24  ;;  %v585_v4 = vmul.f32 %v3104_v55, %v3430_v63 }
 0x16e   :  { %v392_v47 = vmul.f32 %v3084_v44, %v3458_v24  ;;  %v489_v46 = vmul.f32 %v3092_v48, %v3458_v24  ;;  %v779_v44 = vmul.f32 %v3191_v10, %v3430_v63  ;;  %v586_v50 = vmul.f32 %v3104_v55, %v3458_v24 }
 0x16f   :  { %v3447_v37 = vpop.permute.xlu1 %616  ;;  %v3453_v42 = vpop.permute.xlu0 %891  ;;  %v877_v48 = vmul.f32 %v3300_v22, %v3458_v24  ;;  %v683_v33 = vmul.f32 %v3144_v5, %v3458_v24  ;;  %v970_v55 = vmul.f32 %v3318_v16, %v3384_v58  ;;  %v780_v32 = vmul.f32 %v3191_v10, %v3458_v24 }
 0x170   :  { %5129 = vst [vmem:[#allocation57_spill] sm:$0xff] %v3447_v37  ;;  %v972_v5 = vmul.f32 %v3318_v16, %v3172_v27  ;;  %v1062_v10 = vmul.f32 %v3094_v49, %v3209_v21  ;;  %v1066_v16 = vmul.f32 %v3331_v18, %v3305_v59  ;;  %v975_v49 = vmul.f32 %v3342_v19, %v3271_v54 }
 0x171   :  { %903 = vrot.lane.b32.xlu1 %v873_v60, %s2890_s21  ;;  %521 = vrot.lane.b32.xlu0 %v488_v1, %s2885_s5  ;;  %v974_v53 = vmul.f32 %v3342_v19, %v3458_v24  ;;  %v1072_v19 = vmul.f32 %v3355_v3, %v3271_v54 }
 0x173   :  { %v3460_v39 = vpop.permute.xlu1 %713  ;;  %v3466_v26 = vpop.permute.xlu0 %988 }
 0x174   :  { %5131 = vst [vmem:[#allocation59_spill] sm:$0xff] %v3460_v39 }
 0x175   :  { %909 = vrot.lane.b32.xlu1 %v876_v30, %s2890_s21  ;;  %618 = vrot.lane.b32.xlu0 %v585_v4, %s2887_s18 }
 0x177   :  { %v3470_v60 = vpop.permute.xlu1 %810  ;;  %v3476_v1 = vpop.permute.xlu0 %408 }
 0x178   :  { %5132 = vst [vmem:[#allocation60_spill] sm:$0xff] %v3470_v60 }
 0x179   :  { %426 = vrot.lane.b32.xlu1 %v392_v47, %s2886_s17  ;;  %715 = vrot.lane.b32.xlu0 %v682_v45, %s2888_s19 }
 0x17b   :  { %v3480_v30 = vpop.permute.xlu1 %907  ;;  %v3486_v4 = vpop.permute.xlu0 %507 }
 0x17c   :  { %5133 = vst [vmem:[#allocation61_spill] sm:$0xff] %v3480_v30  ;;  %v1069_v30 = vmul.f32 %v3098_v51, %v3172_v27 }
 0x17d   :  { %523 = vrot.lane.b32.xlu1 %v489_v46, %s2885_s5  ;;  %812 = vrot.lane.b32.xlu0 %v779_v44, %s2889_s20 }
 0x17f   :  { %v3490_v47 = vpop.permute.xlu1 %410  ;;  %v3496_v45 = vpop.permute.xlu0 %604 }
 0x181   :  { %620 = vrot.lane.b32.xlu1 %v586_v50, %s2887_s18  ;;  %911 = vrot.lane.b32.xlu0 %v877_v48, %s2890_s21 }
 0x183   :  { %v3500_v46 = vpop.permute.xlu1 %505  ;;  %v3506_v44 = vpop.permute.xlu0 %701 }
 0x185   :  { %717 = vrot.lane.b32.xlu1 %v683_v33, %s2888_s19  ;;  %1000 = vrot.lane.b32.xlu0 %v970_v55, %s2891_s22 }
 0x187   :  { %v3510_v50 = vpop.permute.xlu1 %602  ;;  %v3516_v48 = vpop.permute.xlu0 %798 }
 0x189   :  { %814 = vrot.lane.b32.xlu1 %v780_v32, %s2889_s20  ;;  %1004 = vrot.lane.b32.xlu0 %v972_v5, %s2891_s22 }
 0x18b   :  { %v3520_v33 = vpop.permute.xlu1 %699  ;;  %v3526_v55 = vpop.permute.xlu0 %895 }
 0x18d   :  { %913 = vrot.lane.b32.xlu1 %v878_v40, %s2890_s21  ;;  %1087 = vrot.lane.b32.xlu0 %v1062_v10, %s2892_s23  ;;  %v1064_v40 = vmul.f32 %v3331_v18, %v3258_v11  ;;  %v1068_v18 = vmul.f32 %v3098_v51, %v3366_v12 }
 0x18f   :  { %v3530_v32 = vpop.permute.xlu1 %796  ;;  %v3536_v5 = vpop.permute.xlu0 %992 }
 0x191   :  { %1002 = vrot.lane.b32.xlu1 %v971_v31, %s2891_s22  ;;  %1091 = vrot.lane.b32.xlu0 %v1064_v40, %s2892_s23 }
 0x193   :  { %v3540_v22 = vpop.permute.xlu1 %893  ;;  %v3546_v10 = vpop.permute.xlu0 %412 }
 0x195   :  { %1085 = vrot.lane.b32.xlu1 %v1061_v61, %s2892_s23  ;;  %1095 = vrot.lane.b32.xlu0 %v1066_v16, %s2892_s23 }
 0x197   :  { %v3550_v31 = vpop.permute.xlu1 %990  ;;  %v3556_v40 = vpop.permute.xlu0 %428 }
 0x198   :  { %5134 = vst [vmem:[#allocation62_spill] sm:$0xff] %v3556_v40 }
 0x199   :  { %1089 = vrot.lane.b32.xlu1 %v1063_v23, %s2892_s23  ;;  %1006 = vrot.lane.b32.xlu0 %v973_v29, %s2891_s22  ;;  %v57_v23 = vld [vmem:[%s4947_s4 + $0x18] sm:$0xff] }
 0x19b   :  { %v3560_v61 = vpop.permute.xlu1 %509  ;;  %v3566_v16 = vpop.permute.xlu0 %525 }
 0x19c   :  { %5135 = vst [vmem:[#allocation63_spill] sm:$0xff] %v3566_v16 }
 0x19d   :  { %1093 = vrot.lane.b32.xlu1 %v1065_v56, %s2892_s23  ;;  %1010 = vrot.lane.b32.xlu0 %v975_v49, %s2891_s22  ;;  %v1070_v49 = vmul.f32 %v3355_v3, %v3430_v63 }
 0x19f   :  { %v3573_v36 = vpop.permute.xlu1 %606  ;;  %v3576_v29 = vpop.permute.xlu0 %622 }
 0x1a0   :  { %5136 = vst [vmem:[#allocation64_spill] sm:$0xff] %v3576_v29 }
 0x1a1   :  { %1159 = vperm.xlu1 %2833, %v57_v23   ;;  %1099 = vrot.lane.b32.xlu0 %v1068_v18, %s2892_s23 }
 0x1a3   :  { %v3580_v56 = vpop.permute.xlu1 %703  ;;  %v3586_v34 = vpop.permute.xlu0 %719 }
 0x1a4   :  { %5137 = vst [vmem:[#allocation65_spill] sm:$0xff] %v3586_v34 }
 0x1a5   :  { %1008 = vrot.lane.b32.xlu1 %v974_v53, %s2891_s22  ;;  %1103 = vrot.lane.b32.xlu0 %v1070_v49, %s2892_s23 }
 0x1a7   :  { %v3590_v23 = vpop.permute.xlu1 %800  ;;  %v3596_v18 = vpop.permute.xlu0 %816 }
 0x1a8   :  { %5138 = vst [vmem:[#allocation66_spill] sm:$0xff] %v3596_v18 }
 0x1a9   :  { %1097 = vrot.lane.b32.xlu1 %v1067_v57, %s2892_s23  ;;  %1107 = vrot.lane.b32.xlu0 %v1072_v19, %s2892_s23  ;;  %v1071_v57 = vmul.f32 %v3355_v3, %v3458_v24 }
 0x1ab   :  { %v3600_v53 = vpop.permute.xlu1 %897  ;;  %v3606_v49 = vpop.permute.xlu0 %416 }
 0x1ad   :  { %1101 = vrot.lane.b32.xlu1 %v1069_v30, %s2892_s23 }
 0x1af   :  { %v3608_v34 = vpop.permute.xlu1 %994  ;;  %v3613_v18 = vpop.permute.xlu0 %511 }
 0x1b1   :  { %1105 = vrot.lane.b32.xlu1 %v1071_v57, %s2892_s23 }
 0x1b3   :  { %v3615_v29 = vpop.permute.xlu1 %414  ;;  %v3617_v60 = vpop.permute.xlu0 %608 }
 0x1b7   :  { %v3619_v19 = vpop.permute.xlu1 %513  ;;  %v3621_v51 = vpop.permute.xlu0 %705 }
 0x1bb   :  { %v3623_v30 = vpop.permute.xlu1 %610  ;;  %v3625_v16 = vpop.permute.xlu0 %802 }
 0x1bf   :  { %v3627_v39 = vpop.permute.xlu1 %707  ;;  %v3629_v63 = vpop.permute.xlu0 %899 }
 0x1c3   :  { %v3631_v3 = vpop.permute.xlu1 %804  ;;  %v3633_v57 = vpop.permute.xlu0 %996 }
 0x1c7   :  { %v3635_v24 = vpop.permute.xlu1 %901  ;;  %v3637_v12 = vpop.permute.xlu0 %420 }
 0x1c8   :  { %5139 = vst [vmem:[#allocation67_spill] sm:$0xff] %v3637_v12 }
 0x1cb   :  { %v3639_v40 = vpop.permute.xlu1 %998  ;;  %v3641_v37 = vpop.permute.xlu0 %517 }
 0x1cc   :  { %5140 = vst [vmem:[#allocation68_spill] sm:$0xff] %v3641_v37 }
 0x1cf   :  { %v3643_v58 = vpop.permute.xlu1 %418  ;;  %v3645_v28 = vpop.permute.xlu0 %614 }
 0x1d0   :  { %5141 = vst [vmem:[#allocation69_spill] sm:$0xff] %v3643_v58  ;;  %5142 = vst [vmem:[#allocation70_spill] sm:$0xff] %v3645_v28 }
 0x1d3   :  { %v3647_v54 = vpop.permute.xlu1 %515  ;;  %v3649_v17 = vpop.permute.xlu0 %711 }
 0x1d4   :  { %5143 = vst [vmem:[#allocation71_spill] sm:$0xff] %v3647_v54  ;;  %5144 = vst [vmem:[#allocation72_spill] sm:$0xff] %v3649_v17 }
 0x1d7   :  { %v3651_v43 = vpop.permute.xlu1 %612  ;;  %v3653_v20 = vpop.permute.xlu0 %808 }
 0x1d8   :  { %5145 = vst [vmem:[#allocation73_spill] sm:$0xff] %v3651_v43  ;;  %5146 = vst [vmem:[#allocation74_spill] sm:$0xff] %v3653_v20  ;;  %v344_v20 = vmul.f32 %v3350_v62, %v3222_v6  ;;  %v431_v6 = vsel %vm430_vm2, %v3414_v35, %v3476_v1  ;;  %v432_v35 = vsel %vm430_vm2, %v3476_v1, %v3490_v47 }
 0x1d9   :  { %v625_v1 = vsel %vm624_vm4, %v3420_v0, %v3510_v50  ;;  %v530_v0 = vsel %vm527_vm3, %v3560_v61, %v3613_v18 }
 0x1db   :  { %v3655_v27 = vpop.permute.xlu1 %709  ;;  %v3657_v41 = vpop.permute.xlu0 %905 }
 0x1dc   :  { %5147 = vst [vmem:[#allocation75_spill] sm:$0xff] %v3657_v41 }
 0x1df   :  { %v3659_v12 = vpop.permute.xlu1 %806  ;;  %v3661_v15 = vpop.permute.xlu0 %424 }
 0x1e0   :  { %5148 = vst [vmem:[#allocation76_spill] sm:$0xff] %v3659_v12  ;;  %5149 = vst [vmem:[#allocation77_spill] sm:$0xff] %v3661_v15  ;;  %v453_v12 = vadd.f32 %v3490_v47, %v344_v20  ;;  %v433_v20 = vsel %vm430_vm2, %v3546_v10, %v3615_v29  ;;  %v528_v10 = vsel %vm527_vm3, %v3410_v52, %v3500_v46 }
 0x1e3   :  { %v3663_v37 = vpop.permute.xlu1 %903  ;;  %v3665_v58 = vpop.permute.xlu0 %521 }
 0x1e4   :  { %5150 = vst [vmem:[#allocation78_spill] sm:$0xff] %v3663_v37  ;;  %5151 = vst [vmem:[#allocation79_spill] sm:$0xff] %v3665_v58 }
 0x1e7   :  { %v3667_v28 = vpop.permute.xlu1 %909  ;;  %v3669_v54 = vpop.permute.xlu0 %618 }
 0x1e8   :  { %5152 = vst [vmem:[#allocation80_spill] sm:$0xff] %v3667_v28  ;;  %5153 = vst [vmem:[#allocation81_spill] sm:$0xff] %v3669_v54  ;;  %v550_v28 = vadd.f32 %v3486_v4, %v453_v12  ;;  %v345_v12 = vmul.f32 %v3373_v25, %v3258_v11  ;;  %v346_v11 = vmul.f32 %v3373_v25, %v3311_v7 }
 0x1e9   :  { %v626_v7 = vsel %vm624_vm4, %v3510_v50, %v3496_v45  ;;  %v434_v50 = vsel %vm430_vm2, %v3615_v29, %v3606_v49  ;;  %v531_v29 = vsel %vm527_vm3, %v3613_v18, %v3619_v19 }
 0x1eb   :  { %v3671_v17 = vpop.permute.xlu1 %426  ;;  %v3673_v43 = vpop.permute.xlu0 %715 }
 0x1ec   :  { %5154 = vst [vmem:[#allocation82_spill] sm:$0xff] %v3673_v43  ;;  %v647_v43 = vadd.f32 %v3496_v45, %v550_v28  ;;  %v347_v28 = vmul.f32 %v3373_v25, %v3305_v59  ;;  %v723_v45 = vsel %vm721_vm5, %v3520_v33, %v3506_v44 }
 0x1ee   :  { %v744_v59 = vadd.f32 %v3506_v44, %v647_v43  ;;  %v1174_v44 = vld [vmem:[%s4949_s6] sm:$0x7] }
 0x1ef   :  { %v3677_v41 = vpop.permute.xlu1 %523  ;;  %v3680_v15 = vpop.permute.xlu0 %812  ;;  %v3774_v18 = vrot.slane %v1174_v44, %v3119_v9 }
 0x1f0   :  { %5155 = vst [vmem:[#allocation83_spill] sm:$0xff] %v3680_v15  ;;  %v342_v15 = vmul.f32 %v3350_v62, %v3149_v14 }
 0x1f2   :  { %v451_v14 = vadd.f32 %v431_v6, %v342_v15 }
 0x1f3   :  { %v3682_v37 = vpop.permute.xlu1 %620  ;;  %v3685_v58 = vpop.permute.xlu0 %911 }
 0x1f4   :  { %5156 = vst [vmem:[#allocation84_spill] sm:$0xff] %v3682_v37  ;;  %5157 = vst [vmem:[#allocation85_spill] sm:$0xff] %v3685_v58  ;;  %v548_v15 = vadd.f32 %v528_v10, %v451_v14  ;;  %v820_v10 = vsel %vm818_vm6, %v3530_v32, %v3516_v48 }
 0x1f6   :  { %v645_v6 = vadd.f32 %v625_v1, %v548_v15 }
 0x1f7   :  { %v3687_v54 = vpop.permute.xlu1 %717  ;;  %v3700_v58 = vpop.permute.xlu0 %1000 }
 0x1f8   :  { %5158 = vst [vmem:[#allocation86_spill] sm:$0xff] %v3687_v54  ;;  %5159 = vst [vmem:[#allocation87_spill] sm:$0xff] %v3700_v58  ;;  %v343_v54 = vmul.f32 %v3350_v62, %v3209_v21  ;;  %v454_v58 = vadd.f32 %v433_v20, %v345_v12  ;;  %v529_v21 = vsel %vm527_vm3, %v3500_v46, %v3486_v4 }
 0x1f9   :  { %v722_v4 = vsel %vm721_vm5, %v3433_v8, %v3520_v33  ;;  %v456_v46 = vadd.f32 %v3606_v49, %v347_v28  ;;  %v819_v8 = vsel %vm818_vm6, %v3443_v38, %v3530_v32  ;;  %v916_v38 = vsel %vm915_vm7, %v3453_v42, %v3540_v22 }
 0x1fa   :  { %v452_v52 = vadd.f32 %v432_v35, %v343_v54  ;;  %v551_v43 = vadd.f32 %v530_v0, %v454_v58  ;;  %v841_v58 = vadd.f32 %v3516_v48, %v744_v59  ;;  %v742_v35 = vadd.f32 %v722_v4, %v645_v6 }
 0x1fb   :  { %v3714_v37 = vpop.permute.xlu1 %814  ;;  %v3723_v47 = vpop.permute.xlu0 %1004  ;;  %v553_v61 = vadd.f32 %v3619_v19, %v456_v46  ;;  %v627_v33 = vsel %vm624_vm4, %v3573_v36, %v3617_v60  ;;  %v455_v28 = vadd.f32 %v434_v50, %v346_v11  ;;  %v1013_v42 = vsel %vm1012_vm8, %v3466_v26, %v3550_v31 }
 0x1fc   :  { %v549_v54 = vadd.f32 %v529_v21, %v452_v52  ;;  %v839_v32 = vadd.f32 %v819_v8, %v742_v35  ;;  %v648_v21 = vadd.f32 %v627_v33, %v551_v43  ;;  %v628_v36 = vsel %vm624_vm4, %v3617_v60, %v3623_v30 }
 0x1fd   :  { %v650_v49 = vadd.f32 %v3623_v30, %v553_v61  ;;  %v938_v19 = vadd.f32 %v3526_v55, %v841_v58  ;;  %v552_v59 = vadd.f32 %v531_v29, %v455_v28  ;;  %v917_v4 = vsel %vm915_vm7, %v3540_v22, %v3526_v55  ;;  %v5160_v28 = vld [vmem:[#allocation31_spill] sm:$0xff] }
 0x1fe   :  { %v646_v12 = vadd.f32 %v626_v7, %v549_v54  ;;  %v936_v11 = vadd.f32 %v916_v38, %v839_v32  ;;  %v724_v26 = vsel %vm721_vm5, %v3580_v56, %v3621_v51  ;;  %v725_v60 = vsel %vm721_vm5, %v3621_v51, %v3627_v39 }
 0x1ff   :  { %v3735_v20 = vpop.permute.xlu1 %913  ;;  %v1088_v14 = vpop.permute.xlu0 %1087  ;;  %v747_v52 = vadd.f32 %v3627_v39, %v650_v49  ;;  %v1014_v46 = vsel %vm1012_vm8, %v3550_v31, %v3536_v5  ;;  %v745_v54 = vadd.f32 %v724_v26, %v648_v21  ;;  %v649_v6 = vadd.f32 %v628_v36, %v552_v59 }
 0x200   :  { %v743_v48 = vadd.f32 %v723_v45, %v646_v12  ;;  %v1033_v0 = vadd.f32 %v1013_v42, %v936_v11  ;;  %v821_v22 = vsel %vm818_vm6, %v3590_v23, %v3625_v16  ;;  %v822_v55 = vsel %vm818_vm6, %v3625_v16, %v3631_v3 }
 0x201   :  { %v844_v30 = vadd.f32 %v3631_v3, %v747_v52  ;;  %v1035_v56 = vadd.f32 %v3536_v5, %v938_v19  ;;  %v746_v31 = vadd.f32 %v725_v60, %v649_v6  ;;  %v918_v61 = vsel %vm915_vm7, %v3600_v53, %v3629_v63 }
 0x202   :  { %v840_v15 = vadd.f32 %v820_v10, %v743_v48  ;;  %v919_v23 = vsel %vm915_vm7, %v3629_v63, %v3635_v24  ;;  %v3807_v16 = vrot.slane %v1174_v44, %v3186_v2  ;;  %v842_v58 = vadd.f32 %v821_v22, %v745_v54  ;;  %v5162_v22 = vld [vmem:[#allocation37_spill] sm:$0xff] }
 0x203   :  { %v3764_v1 = vpop.permute.xlu1 %1002  ;;  %v1092_v7 = vpop.permute.xlu0 %1091  ;;  %v941_v39 = vadd.f32 %v3635_v24, %v844_v30  ;;  %v843_v5 = vadd.f32 %v822_v55, %v746_v31  ;;  %v1015_v35 = vsel %vm1012_vm8, %v3608_v34, %v3633_v57  ;;  %v1016_v53 = vsel %vm1012_vm8, %v3633_v57, %v3639_v40  ;;  %v5163_v55 = vld [vmem:[#allocation51_spill] sm:$0xff] }
 0x204   :  { %v937_v45 = vadd.f32 %v917_v4, %v840_v15  ;;  %v939_v33 = vadd.f32 %v918_v61, %v842_v58  ;;  %v3823_v34 = vrot.slane %v1174_v44, %v5160_v28  ;;  %v5168_v58 = vld [vmem:[#allocation42_spill] sm:$0xff] }
 0x205   :  { %v1038_v3 = vadd.f32 %v3639_v40, %v941_v39  ;;  %v940_v29 = vadd.f32 %v919_v23, %v843_v5  ;;  %v350_v39 = vmul.f32 %v5163_v55, %v5162_v22  ;;  %v5169_v5 = vld [vmem:[#allocation48_spill] sm:$0xff] }
 0x206   :  { %v1034_v12 = vadd.f32 %v1014_v46, %v937_v45  ;;  %v1036_v21 = vadd.f32 %v1015_v35, %v939_v33  ;;  %v353_v35 = vmul.f32 %v5169_v5, %v5168_v58 }
 0x207   :  { %v1086_v43 = vpop.permute.xlu1 %1085  ;;  %v1096_v50 = vpop.permute.xlu0 %1095  ;;  %v1037_v42 = vadd.f32 %v1016_v53, %v940_v29  ;;  %v5173_v29 = vld [vmem:[#allocation57_spill] sm:$0xff] }
 0x208   :  { %v1110_v51 = vsel %vm1109_vm9, %v1086_v43, %v1088_v14  ;;  %v1135_v38 = vadd.f32 %v1096_v50, %v1038_v3  ;;  %v5167_v3 = vld [vmem:[#allocation56_spill] sm:$0xff] }
 0x209   :  { %v1130_v8 = vadd.f32 %v1110_v51, %v1033_v0 }
 0x20b   :  { %v1090_v10 = vpop.permute.xlu1 %1089  ;;  %v3817_v49 = vadd.f32 %v3381_v13, %v1130_v8  ;;  %v3845_v30 = vpop.permute.xlu0 %1006  ;;  %v5165_v8 = vld [vmem:[#allocation67_spill] sm:$0xff] }
 0x20c   :  { %v1111_v24 = vsel %vm1109_vm9, %v1088_v14, %v1090_v10  ;;  %v1132_v63 = vadd.f32 %v1090_v10, %v1035_v56  ;;  %v5161_v14 = vld [vmem:[#allocation53_spill] sm:$0xff]  ;;  %v5164_v56 = vld [vmem:[#allocation54_spill] sm:$0xff] }
 0x20d   :  { %v1131_v48 = vadd.f32 %v1111_v24, %v1034_v12  ;;  %v3829_v36 = vadd.f32 %v5161_v14, %v1135_v38  ;;  %v1191_v44 = vmul.f32 %v3774_v18, %v3817_v49  ;;  %v459_v45 = vadd.f32 %v5164_v56, %v350_v39  ;;  %v5170_v10 = vld [vmem:[#allocation50_spill] sm:$0xff]  ;;  %v5171_v24 = vld [vmem:[#allocation68_spill] sm:$0xff] }
 0x20e   :  { %v3820_v32 = vadd.f32 %v3381_v13, %v1132_v63  ;;  %v348_v53 = vmul.f32 %v5163_v55, %v5170_v10  ;;  %v5172_v63 = vld [vmem:[#allocation71_spill] sm:$0xff] }
 0x20f   :  { %v3826_v40 = vadd.f32 %v3381_v13, %v1131_v48  ;;  %v1094_v57 = vpop.permute.xlu1 %1093  ;;  %v1196_v0 = vmul.f32 %v3823_v34, %v3829_v36  ;;  %v556_v12 = vadd.f32 %v5167_v3, %v459_v45  ;;  %v3866_v38 = vpop.permute.xlu0 %1010  ;;  %v532_v33 = vsel %vm527_vm3, %v5172_v63, %v5171_v24  ;;  %v5182_v45 = vld [vmem:[#allocation58_spill] sm:$0xff]  ;;  %v5188_v63 = vld [vmem:[#allocation76_spill] sm:$0xff] }
 0x210   :  { %v1112_v52 = vsel %vm1109_vm9, %v1092_v7, %v1094_v57  ;;  %v1113_v19 = vsel %vm1109_vm9, %v1094_v57, %v1096_v50  ;;  %v1193_v15 = vmul.f32 %v3823_v34, %v3820_v32  ;;  %v5166_v50 = vld [vmem:[#allocation69_spill] sm:$0xff]  ;;  %v436_v57 = vsel %vm430_vm2, %v5165_v8, %v5164_v56 }
 0x211   :  { %v1133_v11 = vadd.f32 %v1112_v52, %v1036_v21  ;;  %v1134_v59 = vadd.f32 %v1113_v19, %v1037_v42  ;;  %v1192_v4 = vmul.f32 %v3807_v16, %v3826_v40  ;;  %v1210_v31 = vsel %vm1204_vm10, %v1196_v0, 0.0  ;;  %v5174_v21 = vld [vmem:[#allocation62_spill] sm:$0xff]  ;;  %v5175_v19 = vld [vmem:[#allocation49_spill] sm:$0xff] }
 0x212   :  { %v1205_v46 = vsel %vm1204_vm10, %v1193_v15, 0.0  ;;  %v435_v61 = vsel %vm430_vm2, %v5166_v50, %v5165_v8  ;;  %v653_v48 = vadd.f32 %v5173_v29, %v556_v12  ;;  %v462_v42 = vadd.f32 %v5174_v21, %v353_v35  ;;  %v5183_v8 = vld [vmem:[#allocation77_spill] sm:$0xff]  ;;  %v5185_v12 = vld [vmem:[#allocation64_spill] sm:$0xff] }
 0x213   :  { %v3840_v26 = vadd.f32 %v5161_v14, %v1133_v11  ;;  %v3843_v60 = vadd.f32 %v5161_v14, %v1134_v59  ;;  %v1203_v7 = vadd.f32 %v1192_v4, %v1191_v44  ;;  %v457_v52 = vadd.f32 %v435_v61, %v348_v53  ;;  %v5176_v44 = vld [vmem:[#allocation70_spill] sm:$0xff]  ;;  %v5177_v11 = vld [vmem:[#allocation73_spill] sm:$0xff]  ;;  %v5178_v4 = vld [vmem:[#allocation55_spill] sm:$0xff]  ;;  %v1100_v10 = vpop.permute.xlu0 %1099 }
 0x214   :  { %v349_v15 = vmul.f32 %v5163_v55, %v5175_v19  ;;  %v629_v59 = vsel %vm624_vm4, %v5177_v11, %v5176_v44  ;;  %v437_v50 = vsel %vm430_vm2, %v5183_v8, %v3671_v17  ;;  %v5184_v61 = vld [vmem:[#allocation60_spill] sm:$0xff]  ;;  %v5195_v8 = vld [vmem:[#allocation86_spill] sm:$0xff] }
 0x215   :  { %v1206_v54 = vadd.f32 %v1205_v46, %v1203_v7  ;;  %v1194_v6 = vmul.f32 %v3774_v18, %v3840_v26  ;;  %v1195_v43 = vmul.f32 %v3807_v16, %v3843_v60  ;;  %v351_v7 = vmul.f32 %v5169_v5, %v5178_v4  ;;  %v5179_v46 = vld [vmem:[#allocation59_spill] sm:$0xff]  ;;  %v5192_v4 = vld [vmem:[#allocation78_spill] sm:$0xff] }
 0x216   :  { %v750_v0 = vadd.f32 %v5179_v46, %v653_v48  ;;  %v554_v22 = vadd.f32 %v532_v33, %v457_v52  ;;  %v458_v39 = vadd.f32 %v436_v57, %v349_v15  ;;  %v438_v48 = vsel %vm430_vm2, %v3671_v17, %v5174_v21  ;;  %v5190_v52 = vld [vmem:[#allocation65_spill] sm:$0xff]  ;;  %v5193_v21 = vld [vmem:[#allocation84_spill] sm:$0xff] }
 0x217   :  { %1207 = vadd.xlane.f32.xlu1 %v1206_v54  ;;  %v1209_v51 = vadd.f32 %v1195_v43, %v1194_v6  ;;  %v5180_v54 = vld [vmem:[#allocation63_spill] sm:$0xff]  ;;  %v533_v43 = vsel %vm527_vm3, %v5171_v24, %v5167_v3  ;;  %v630_v3 = vsel %vm624_vm4, %v5176_v44, %v5173_v29  ;;  %v5187_v24 = vld [vmem:[#allocation74_spill] sm:$0xff]  ;;  %v460_v44 = vadd.f32 %v437_v50, %v351_v7 }
 0x218   :  { %v559_v6 = vadd.f32 %v5180_v54, %v462_v42  ;;  %v651_v35 = vadd.f32 %v629_v59, %v554_v22  ;;  %v823_v33 = vsel %vm818_vm6, %v5188_v63, %v5187_v24  ;;  %v5189_v42 = vld [vmem:[#allocation79_spill] sm:$0xff]  ;;  %v535_v17 = vsel %vm527_vm3, %v3677_v41, %v5180_v54  ;;  %v5196_v50 = vld [vmem:[#allocation82_spill] sm:$0xff] }
 0x219   :  { %v1211_v23 = vadd.f32 %v1210_v31, %v1209_v51  ;;  %v5181_v51 = vld [vmem:[#allocation72_spill] sm:$0xff]  ;;  %v352_v31 = vmul.f32 %v5169_v5, %v5182_v45  ;;  %v534_v57 = vsel %vm527_vm3, %v5189_v42, %v3677_v41  ;;  %v5191_v59 = vld [vmem:[#allocation75_spill] sm:$0xff]  ;;  %v824_v22 = vsel %vm818_vm6, %v5187_v24, %v5184_v61  ;;  %v1104_v24 = vpop.permute.xlu0 %1103 }
 0x21a   :  { %v726_v56 = vsel %vm721_vm5, %v3655_v27, %v5181_v51  ;;  %v656_v58 = vadd.f32 %v5185_v12, %v559_v6  ;;  %v555_v27 = vadd.f32 %v533_v43, %v458_v39  ;;  %v727_v29 = vsel %vm721_vm5, %v5181_v51, %v5179_v46  ;;  %v5194_v6 = vld [vmem:[#allocation81_spill] sm:$0xff]  ;;  %v5197_v54 = vld [vmem:[#allocation87_spill] sm:$0xff] }
 0x21b   :  { %1212 = vadd.xlane.f32.xlu0 %v1211_v23  ;;  %v847_v23 = vadd.f32 %v5184_v61, %v750_v0  ;;  %v748_v15 = vadd.f32 %v726_v56, %v651_v35  ;;  %v920_v0 = vsel %vm915_vm7, %v5192_v4, %v5191_v59  ;;  %v631_v43 = vsel %vm624_vm4, %v5194_v6, %v5193_v21 }
 0x21c   :  { %v753_v19 = vadd.f32 %v5190_v52, %v656_v58  ;;  %v652_v11 = vadd.f32 %v630_v3, %v555_v27  ;;  %v461_v39 = vadd.f32 %v438_v48, %v352_v31  ;;  %v557_v7 = vadd.f32 %v534_v57, %v460_v44  ;;  %v5198_v3 = vld [vmem:[#allocation61_spill] sm:$0xff]  ;;  %v5199_v48 = vld [vmem:[#allocation83_spill] sm:$0xff]  ;;  %v5200_v57 = vld [vmem:[#allocation66_spill] sm:$0xff] }
 0x21d   :  { %v845_v46 = vadd.f32 %v823_v33, %v748_v15  ;;  %v632_v45 = vsel %vm624_vm4, %v5193_v21, %v5185_v12  ;;  %v728_v41 = vsel %vm721_vm5, %v5196_v50, %v5195_v8  ;;  %v1017_v58 = vsel %vm1012_vm8, %v5197_v54, %v3764_v1 }
 0x21e   :  { %v749_v56 = vadd.f32 %v727_v29, %v652_v11  ;;  %v921_v61 = vsel %vm915_vm7, %v5191_v59, %v5198_v3  ;;  %v558_v35 = vadd.f32 %v535_v17, %v461_v39  ;;  %v654_v27 = vadd.f32 %v631_v43, %v557_v7  ;;  %v5202_v39 = vld [vmem:[#allocation80_spill] sm:$0xff] }
 0x21f   :  { %v942_v31 = vadd.f32 %v920_v0, %v845_v46  ;;  %v944_v63 = vadd.f32 %v5198_v3, %v847_v23  ;;  %v729_v12 = vsel %vm721_vm5, %v5195_v8, %v5190_v52  ;;  %v825_v42 = vsel %vm818_vm6, %v5199_v48, %v3714_v37  ;;  %v5203_v3 = vld [vmem:[#allocation52_spill] sm:$0xff] }
 0x220   :  { %v3901_v53 = vpop.permute.xlu1 %1159  ;;  %v846_v33 = vadd.f32 %v824_v22, %v749_v56  ;;  %v850_v29 = vadd.f32 %v5200_v57, %v753_v19  ;;  %v655_v15 = vadd.f32 %v632_v45, %v558_v35  ;;  %v751_v44 = vadd.f32 %v728_v41, %v654_v27  ;;  %v5201_v22 = vld [vmem:[#allocation85_spill] sm:$0xff]  ;;  %v1108_v45 = vpop.permute.xlu0 %1107 }
 0x221   :  { %5186 = vst [vmem:[#allocation31_spill] sm:$0xff] %v3901_v53  ;;  %v1039_v11 = vadd.f32 %v1017_v58, %v942_v31  ;;  %v826_v23 = vsel %vm818_vm6, %v3714_v37, %v5200_v57  ;;  %v1018_v0 = vsel %vm1012_vm8, %v3764_v1, %v3723_v47  ;;  %v1041_v43 = vadd.f32 %v3723_v47, %v944_v63 }
 0x222   :  { %v943_v4 = vadd.f32 %v921_v61, %v846_v33  ;;  %v752_v17 = vadd.f32 %v729_v12, %v655_v15  ;;  %v848_v21 = vadd.f32 %v825_v42, %v751_v44  ;;  %v947_v6 = vadd.f32 %v3735_v20, %v850_v29 }
 0x223   :  { %v923_v46 = vsel %vm915_vm7, %v5201_v22, %v3735_v20  ;;  %v922_v37 = vsel %vm915_vm7, %v5202_v39, %v5201_v22 }
 0x224   :  { %v1009_v51 = vpop.permute.xlu1 %1008  ;;  %v849_v7 = vadd.f32 %v826_v23, %v752_v17  ;;  %v1040_v56 = vadd.f32 %v1018_v0, %v943_v4  ;;  %v1044_v1 = vadd.f32 %v3866_v38, %v947_v6  ;;  %v945_v58 = vadd.f32 %v922_v37, %v848_v21 }
 0x225   :  { %v1019_v50 = vsel %vm1012_vm8, %v3845_v30, %v1009_v51  ;;  %v1020_v47 = vsel %vm1012_vm8, %v1009_v51, %v3866_v38 }
 0x226   :  { %v946_v20 = vadd.f32 %v923_v46, %v849_v7  ;;  %v1141_v35 = vadd.f32 %v1108_v45, %v1044_v1  ;;  %v1042_v63 = vadd.f32 %v1019_v50, %v945_v58 }
 0x228   :  { %v1098_v59 = vpop.permute.xlu1 %1097  ;;  %v1043_v33 = vadd.f32 %v1020_v47, %v946_v20  ;;  %v3983_v48 = vadd.f32 %v3901_v53, %v1141_v35 }
 0x229   :  { %v1114_v52 = vsel %vm1109_vm9, %v1098_v59, %v1100_v10 }
 0x22a   :  { %v1136_v19 = vadd.f32 %v1114_v52, %v1039_v11  ;;  %v1202_v4 = vmul.f32 %v3823_v34, %v3983_v48 }
 0x22c   :  { %v1102_v8 = vpop.permute.xlu1 %1101  ;;  %v3970_v61 = vadd.f32 %v5203_v3, %v1136_v19  ;;  %v1220_v21 = vsel %vm1204_vm10, %v1202_v4, 0.0 }
 0x22d   :  { %v1115_v41 = vsel %vm1109_vm9, %v1100_v10, %v1102_v8  ;;  %v1138_v54 = vadd.f32 %v1102_v8, %v1041_v43  ;;  %v1231_v8 = vld [vmem:[%s4950_s7 + $0x18] sm:$0xff] }
 0x22e   :  { %v1137_v31 = vadd.f32 %v1115_v41, %v1040_v56  ;;  %v1197_v42 = vmul.f32 %v3774_v18, %v3970_v61 }
 0x22f   :  { %v3973_v27 = vadd.f32 %v5203_v3, %v1138_v54 }
 0x230   :  { %v3976_v30 = vadd.f32 %v5203_v3, %v1137_v31  ;;  %v1106_v12 = vpop.permute.xlu1 %1105 }
 0x231   :  { %v1116_v38 = vsel %vm1109_vm9, %v1104_v24, %v1106_v12  ;;  %v1117_v10 = vsel %vm1109_vm9, %v1106_v12, %v1108_v45  ;;  %v1199_v51 = vmul.f32 %v3823_v34, %v3973_v27  ;;  %v1229_v34 = vld [vmem:[%s4950_s7 + $0x8] sm:$0xff] }
 0x232   :  { %v1139_v57 = vadd.f32 %v1116_v38, %v1042_v63  ;;  %v1140_v29 = vadd.f32 %v1117_v10, %v1043_v33  ;;  %v1198_v15 = vmul.f32 %v3807_v16, %v3976_v30 }
 0x233   :  { %v1215_v59 = vsel %vm1204_vm10, %v1199_v51, 0.0 }
 0x234   :  { %v3990_v44 = vadd.f32 %v3901_v53, %v1139_v57  ;;  %v3993_v24 = vadd.f32 %v3901_v53, %v1140_v29  ;;  %v1214_v11 = vadd.f32 %v1198_v15, %v1197_v42  ;;  %v1252_v57 = vld [vmem:[%s4951_s8 + $0x8] sm:$0xff]  ;;  %v1251_v29 = vld [vmem:[%s4951_s8] sm:$0xff] }
 0x236   :  { %v1216_v23 = vadd.f32 %v1215_v59, %v1214_v11  ;;  %v1200_v0 = vmul.f32 %v3774_v18, %v3990_v44  ;;  %v1201_v52 = vmul.f32 %v3807_v16, %v3993_v24  ;;  %v1228_v18 = vld [vmem:[%s4950_s7] sm:$0xff]  ;;  %v1230_v16 = vld [vmem:[%s4950_s7 + $0x10] sm:$0xff]  ;;  %v1254_v11 = vld [vmem:[%s4951_s8 + $0x18] sm:$0xff] }
 0x237   :  { %v1253_v59 = vld [vmem:[%s4951_s8 + $0x10] sm:$0xff] }
 0x238   :  { %1217 = vadd.xlane.f32.xlu0 %v1216_v23  ;;  %v1219_v17 = vadd.f32 %v1201_v52, %v1200_v0 }
 0x23a   :  { %v1221_v6 = vadd.f32 %v1220_v21, %v1219_v17 }
 0x23c   :  { %1222 = vadd.xlane.f32.xlu1 %v1221_v6 }
 0x2a4   :  { %v1208_v43 = vpop.xlane.xlu1 %1207 }
 0x2a5   :  { %v1224_v46 = vmul.f32 0.00390625, %v1208_v43  ;;  %v5067_v43 = vmov 0.0  }
 0x2a6   :  { %2760 = vmatprep.subr.bf16.mxu0 %v5067_v43  ;;  %2764 = vmatprep.mubr.msk.bf16.mxu0 %vm2894_vm12, %v5067_v43 }
 0x2a7   :  { %v1232_v7 = vmul.f32 %v1228_v18, %v1224_v46 }
 0x2a8   :  { %v1213_v19 = vpop.xlane.xlu0 %1212 }
 0x2a9   :  { %v1225_v22 = vmul.f32 0.00390625, %v1213_v19  ;;  %v1237_v47 = vsel %vm1236_vm11, %v1232_v7, 0.0 }
 0x2ab   :  { %v1233_v39 = vmul.f32 %v1229_v34, %v1225_v22 }
 0x2ad   :  { %v1238_v1 = vsel %vm1236_vm11, %v1233_v39, 0.0 }
 0x2ae   :  { %v1239_v20 = vadd.f32 %v1238_v1, %v1237_v47 }
 0x2c5   :  { %v1218_v37 = vpop.xlane.xlu0 %1217 }
 0x2c6   :  { %v1226_v56 = vmul.f32 0.00390625, %v1218_v37 }
 0x2c8   :  { %v1234_v45 = vmul.f32 %v1230_v16, %v1226_v56 }
 0x2c9   :  { %v1223_v50 = vpop.xlane.xlu1 %1222 }
 0x2ca   :  { %v1240_v41 = vsel %vm1236_vm11, %v1234_v45, 0.0  ;;  %v1227_v54 = vmul.f32 0.00390625, %v1223_v50 }
 0x2cb   :  { %v1241_v31 = vadd.f32 %v1240_v41, %v1239_v20 }
 0x2cc   :  { %v1235_v58 = vmul.f32 %v1231_v8, %v1227_v54 }
 0x2ce   :  { %v1242_v35 = vsel %vm1236_vm11, %v1235_v58, 0.0 }
 0x2cf   :  { %v1243_v63 = vadd.f32 %v1242_v35, %v1241_v31 }
 0x2d1   :  { %v1244_v33 = vrot.slane %v1243_v63, 4 }
 0x2d3   :  { %v1245_v12 = vadd.f32 %v1244_v33, %v1243_v63 }
 0x2d5   :  { %v1246_v38 = vrot.slane %v1245_v12, 2 }
 0x2d7   :  { %v1247_v10 = vadd.f32 %v1246_v38, %v1245_v12 }
 0x2d9   :  { %v1248_v51 = vrot.slane %v1247_v10, 1 }
 0x2db   :  { %v1249_v42 = vadd.f32 %v1248_v51, %v1247_v10 }
 0x2dd   :  { %v1250_v15 = vmax.f32 %v1249_v42, 0.0 }
 0x2df   :  { %v1256_v4 = vmul.f32 %v1252_v57, %v1250_v15  ;;  %v1255_v23 = vmul.f32 %v1251_v29, %v1250_v15  ;;  %v1258_v17 = vmul.f32 %v1254_v11, %v1250_v15  ;;  %v1257_v21 = vmul.f32 %v1253_v59, %v1250_v15 }
 0x2e1   :  { %v1262_v0 = vsel %vm1236_vm11, %v1256_v4, 0.0  ;;  %v1259_v52 = vsel %vm1236_vm11, %v1255_v23, 0.0  ;;  %v1268_v6 = vsel %vm1236_vm11, %v1258_v17, 0.0  ;;  %v1265_v19 = vsel %vm1236_vm11, %v1257_v21, 0.0 }
 0x2e2   :  { %1263 = vadd.xlane.f32.xlu1 %v1262_v0  ;;  %1260 = vadd.xlane.f32.xlu0 %v1259_v52 }
 0x2e6   :  { %1269 = vadd.xlane.f32.xlu1 %v1268_v6  ;;  %1266 = vadd.xlane.f32.xlu0 %v1265_v19 }
 0x36f   :  { %v1264_v22 = vpop.xlane.xlu1 %1263  ;;  %v1261_v34 = vpop.xlane.xlu0 %1260 }
 0x370   :  { %v1272_v46 = vadd.f32 3.0, %v1264_v22  ;;  %v1271_v18 = vadd.f32 3.0, %v1261_v34 }
 0x372   :  { %v1276_v39 = vmax.f32 %v1272_v46, 0.0  ;;  %v1275_v16 = vmax.f32 %v1271_v18, 0.0 }
 0x373   :  { %v1270_v37 = vpop.xlane.xlu1 %1269  ;;  %v1267_v7 = vpop.xlane.xlu0 %1266 }
 0x374   :  { %v1280_v56 = vmin.f32 %v1276_v39, 6.0  ;;  %v1279_v1 = vmin.f32 %v1275_v16, 6.0  ;;  %v1274_v45 = vadd.f32 3.0, %v1270_v37  ;;  %v1273_v8 = vadd.f32 3.0, %v1267_v7 }
 0x376   :  { %v1284_v50 = vmul.f32 0.16666667, %v1280_v56  ;;  %v1283_v47 = vmul.f32 0.16666667, %v1279_v1  ;;  %v1278_v41 = vmax.f32 %v1274_v45, 0.0  ;;  %v1277_v54 = vmax.f32 %v1273_v8, 0.0 }
 0x378   :  { %v1290_v20 = vmul.f32 %v1284_v50, %v3840_v26  ;;  %v1291_v58 = vmul.f32 %v1284_v50, %v3843_v60  ;;  %v1292_v31 = vmul.f32 %v1284_v50, %v3829_v36  ;;  %v1287_v35 = vmul.f32 %v1283_v47, %v3817_v49 }
 0x379   :  { %v1288_v63 = vmul.f32 %v1283_v47, %v3826_v40  ;;  %v1289_v33 = vmul.f32 %v1283_v47, %v3820_v32  ;;  %v1282_v12 = vmin.f32 %v1278_v41, 6.0  ;;  %v1281_v38 = vmin.f32 %v1277_v54, 6.0 }
 0x37a   :  { %v1302_v10 = vadd.f32 3.0, %v1290_v20  ;;  %v1304_v51 = vadd.f32 3.0, %v1292_v31  ;;  %v1299_v42 = vadd.f32 3.0, %v1287_v35  ;;  %v1303_v57 = vadd.f32 3.0, %v1291_v58 }
 0x37b   :  { %v1301_v29 = vadd.f32 3.0, %v1289_v33  ;;  %v1286_v15 = vmul.f32 0.16666667, %v1282_v12  ;;  %v1285_v11 = vmul.f32 0.16666667, %v1281_v38  ;;  %v1300_v26 = vadd.f32 3.0, %v1288_v63 }
 0x37c   :  { %v1314_v59 = vmax.f32 %v1302_v10, 0.0  ;;  %v1316_v60 = vmax.f32 %v1304_v51, 0.0  ;;  %v1311_v4 = vmax.f32 %v1299_v42, 0.0  ;;  %v1315_v36 = vmax.f32 %v1303_v57, 0.0 }
 0x37d   :  { %v1313_v23 = vmax.f32 %v1301_v29, 0.0  ;;  %v1296_v49 = vmul.f32 %v1286_v15, %v3990_v44  ;;  %v4046_v40 = vmul.f32 %v1286_v15, %v3993_v24  ;;  %v1298_v32 = vmul.f32 %v1286_v15, %v3983_v48 }
 0x37e   :  { %v1326_v0 = vmin.f32 %v1314_v59, 6.0  ;;  %v1328_v52 = vmin.f32 %v1316_v60, 6.0  ;;  %v1323_v17 = vmin.f32 %v1311_v4, 6.0  ;;  %v1293_v21 = vmul.f32 %v1285_v11, %v3970_v61  ;;  %v2732_v4 = vld [vmem:[%s4943_s0 + $0x40] sm:$0xff] }
 0x37f   :  { %v1325_v6 = vmin.f32 %v1313_v23, 6.0  ;;  %v1308_v19 = vadd.f32 3.0, %v1296_v49  ;;  %v1310_v22 = vadd.f32 3.0, %v1298_v32  ;;  %v1294_v34 = vmul.f32 %v1285_v11, %v3976_v30 }
 0x380   :  { %v1338_v46 = vmul.f32 0.16666667, %v1326_v0  ;;  %v1340_v18 = vmul.f32 0.16666667, %v1328_v52  ;;  %v1335_v39 = vmul.f32 0.16666667, %v1323_v17  ;;  %v1295_v44 = vmul.f32 %v1285_v11, %v3973_v27 }
 0x381   :  { %v1337_v16 = vmul.f32 0.16666667, %v1325_v6  ;;  %v1320_v24 = vmax.f32 %v1308_v19, 0.0  ;;  %v1322_v37 = vmax.f32 %v1310_v22, 0.0  ;;  %v1305_v7 = vadd.f32 3.0, %v1293_v21 }
 0x382   :  { %v1307_v48 = vadd.f32 3.0, %v1295_v44  ;;  %v1312_v56 = vmax.f32 %v1300_v26, 0.0  ;;  %v1327_v1 = vmin.f32 %v1315_v36, 6.0  ;;  %v1352_v45 = vmul.f32 %v1340_v18, %v1292_v31  ;;  %v2836_v18 = vld [vmem:[%s4952_s9] sm:$0xff]  }
 0x383   :  { %v1332_v8 = vmin.f32 %v1320_v24, 6.0  ;;  %v1334_v61 = vmin.f32 %v1322_v37, 6.0  ;;  %v1317_v50 = vmax.f32 %v1305_v7, 0.0  ;;  %v1349_v47 = vmul.f32 %v1337_v16, %v1289_v33  ;;  %v2730_v7 = vld [vmem:[%s4943_s0 + $0x30] sm:$0xff] }
 0x384   :  { %v1319_v41 = vmax.f32 %v1307_v48, 0.0  ;;  %v1324_v54 = vmin.f32 %v1312_v56, 6.0  ;;  %v1339_v30 = vmul.f32 0.16666667, %v1327_v1  ;;  %v1347_v51 = vmul.f32 %v1335_v39, %v1287_v35  ;;  %v2731_v39 = vld [vmem:[%s4943_s0 + $0x38] sm:$0xff]  ;;  %v2733_v48 = vld [vmem:[%s4943_s0 + $0x48] sm:$0xff] }
 0x385   :  { %v1346_v12 = vmul.f32 0.16666667, %v1334_v61  ;;  %v1329_v38 = vmin.f32 %v1317_v50, 6.0  ;;  %v1361_v10 = vpack.c.bf16 %v1352_v45, %v1349_v47  ;;  %v1350_v29 = vmul.f32 %v1338_v46, %v1290_v20  ;;  %v2838_v1 = vld [vmem:[%s4944_s1 + $0x8] sm:$0xff]  }
 0x386   :  { %v1331_v27 = vmin.f32 %v1319_v41, 6.0  ;;  %v1336_v42 = vmul.f32 0.16666667, %v1324_v54  ;;  %v1351_v57 = vmul.f32 %v1339_v30, %v1291_v58  ;;  %v1344_v15 = vmul.f32 0.16666667, %v1332_v8  ;;  %v2735_v58 = vld [vmem:[%s4943_s0 + $0x58] sm:$0xff] }
 0x387   :  { %2761 = vmatpush3.bf16.msra.mxu0 %v1361_v10  ;;  %v1306_v11 = vadd.f32 3.0, %v1294_v34  ;;  %v1309_v31 = vadd.f32 3.0, %v4046_v40  ;;  %v1341_v26 = vmul.f32 0.16666667, %v1329_v38  ;;  %v1358_v33 = vmul.f32 %v1346_v12, %v1298_v32  ;;  %v5211_v38 = vld [vmem:[#allocation9_spill] sm:$0xff] }
 0x388   :  { %v1343_v59 = vmul.f32 0.16666667, %v1331_v27  ;;  %v1348_v60 = vmul.f32 %v1336_v42, %v1288_v63  ;;  %2762 = vmatprep.subr.bf16.mxu0 %v5067_v43  ;;  %v1359_v20 = vpack.c.bf16 %v1350_v29, %v1347_v51  ;;  %v1516_v6 = vpack.c.bf16 %v2735_v58, %v2732_v4  ;;  %v5212_v27 = vld [vmem:[#allocation28_spill] sm:$0xff] }
 0x389   :  { %v1318_v35 = vmax.f32 %v1306_v11, 0.0  ;;  %v1321_v36 = vmax.f32 %v1309_v31, 0.0  ;;  %v1353_v19 = vmul.f32 %v1341_v26, %v1293_v21  ;;  %v1356_v32 = vmul.f32 %v1344_v15, %v1296_v49  ;;  %v5213_v15 = vld [vmem:[#allocation11_spill] sm:$0xff] }
 0x38a   :  { %v1360_v23 = vpack.c.bf16 %v1351_v57, %v1348_v60  ;;  %v1355_v0 = vmul.f32 %v1343_v59, %v1295_v44  ;;  %v2734_v44 = vld [vmem:[%s4943_s0 + $0x50] sm:$0xff]  ;;  %v5204_v56 = vmov 0   ;;  %v5214_v59 = vld [vmem:[#allocation30_spill] sm:$0xff] }
 0x38b   :  { %v1330_v52 = vmin.f32 %v1318_v35, 6.0  ;;  %v1333_v17 = vmin.f32 %v1321_v36, 6.0  ;;  %v1362_v49 = vpack.c.bf16 %v1356_v32, %v1353_v19  ;;  %v1515_v37 = vpack.c.bf16 %v2734_v44, %v2731_v39 }
 0x38c   :  { %1383 = vmatprep.subr.bf16.mxu1 %v1360_v23  ;;  %v1364_v63 = vpack.c.bf16 %v1358_v33, %v1355_v0 }
 0x38d   :  { %1384 = vmatpush1.bf16.msra.mxu1 %v1359_v20  ;;  %v1342_v22 = vmul.f32 0.16666667, %v1330_v52  ;;  %v1345_v46 = vmul.f32 0.16666667, %v1333_v17 }
 0x38e   :  { %2763 = vmatpush3.bf16.msra.mxu0 %v1364_v63 }
 0x38f   :  { %v1354_v16 = vmul.f32 %v1342_v22, %v1294_v34  ;;  %v1357_v21 = vmul.f32 %v1345_v46, %v4046_v40  ;;  %2768 = vmatprep.subr.bf16.mxu0 %v1516_v6  ;;  %v2837_v34 = vld [vmem:[%s4944_s1] sm:$0xff]   ;;  %v1514_v40 = vpack.c.bf16 %v2733_v48, %v2730_v7 }
 0x391   :  { %v1363_v24 = vpack.c.bf16 %v1357_v21, %v1354_v16  ;;  %2765 = vmatmul.mubr.msk.bf16.vlgmr.msra.gmra.mrb[8].mxu0 %vm1204_vm10, %v2836_v18 }
 0x392   :  { %2769 = vmatpush3.bf16.msra.mxu0 %v1516_v6  ;;  %2770 = vmatprep.mubr.msk.bf16.mxu0 %vm100_vm0, %v2837_v34 }
 0x393   :  { %1385 = vmatprep.subr.bf16.mxu1 %v1363_v24 }
 0x394   :  { %1386 = vmatpush1.bf16.msra.mxu1 %v1362_v49 }
 0x395   :  { %1517 = vmatprep.subr.bf16.mxu1 %v1515_v37 }
 0x397   :  { %2728 = vmatmul.mubr.msk.bf16.vlgmr.msra.gmra.mrb[4].mxu1 %vm1204_vm10, %v2836_v18 }
 0x398   :  { %1518 = vmatpush1.bf16.msra.mxu1 %v1514_v40  ;;  %1549 = vmatprep.mubr.bf16.mxu1 %v5204_v56 }
 0x399   :  { %2771 = vmatmul.mubr.msk.bf16.vlgmr.msra.gmra.mrb[12].mxu0 %vm100_vm0, %v2838_v1  ;;  %2774 = vmatprep.subr.bf16.mxu1 %v5067_v43 }
 0x39a   :  { %2612 = vmatprep.mubr.bf16.mxu0 %v5204_v56 }
 0x39f   :  { %2736 = vmatmul.mubr.msk.bf16.vlgmr.msra.gmra.mrb[8].mxu1 %vm100_vm0, %v2837_v34 }
 0x3a0   :  { %1559 = vmatprep.mubr.bf16.mxu1 %v5204_v56 }
 0x3a7   :  { %2737 = vmatmul.mubr.msk.bf16.gmra.mrb[12].mxu1 %vm100_vm0, %v2838_v1 }
 0x3a8   :  { %2778 = vmatprep.mubr.msk.bf16.mxu1 %vm2894_vm12, %v5067_v43 }
 0x464   :  { %v4094_v45 = vpop.f32.mrb[8].mxu0 }
 0x465   :  { %5205 = vst [vmem:[#allocation53_spill] sm:$0xff] %v4094_v45  ;;  %v2766_v8 = vpop.f32.mrb[9].mxu0 }
 0x466   :  { %v4096_v61 = vpop.f32.mrb[10].mxu0  ;;  %v5215_v8 = vld [vmem:[#allocation34_spill] sm:$0xff] }
 0x467   :  { %5206 = vst [vmem:[#allocation37_spill] sm:$0xff] %v4096_v61  ;;  %v2767_v50 = vpop.f32.mrb[11].mxu0 }
 0x46a   :  { %v4098_v47 = vpop.f32.mrb[4].mxu1 }
 0x46b   :  { %5207 = vst [vmem:[#allocation51_spill] sm:$0xff] %v4098_v47  ;;  %v4100_v41 = vpop.f32.mrb[5].mxu1 }
 0x46c   :  { %5208 = vst [vmem:[#allocation54_spill] sm:$0xff] %v4100_v41  ;;  %v4102_v54 = vpop.f32.mrb[6].mxu1  ;;  %v2772_v30 = vpop.f32.mrb[12].mxu0 }
 0x46d   :  { %5209 = vst [vmem:[#allocation67_spill] sm:$0xff] %v4102_v54  ;;  %v4104_v12 = vpop.f32.mrb[7].mxu1  ;;  %v1613_v10 = vadd.f32 %v2772_v30, %v5211_v38  ;;  %v1604_v51 = vpop.f32.mrb[13].mxu0 }
 0x46e   :  { %5210 = vst [vmem:[#allocation69_spill] sm:$0xff] %v4104_v12  ;;  %v1605_v42 = vadd.f32 %v1604_v51, %v5212_v27  ;;  %v2773_v57 = vpop.f32.mrb[14].mxu0 }
 0x46f   :  { %v1627_v29 = vadd.f32 3.0, %v1613_v10  ;;  %v1616_v11 = vadd.f32 %v2773_v57, %v5213_v15  ;;  %v1607_v31 = vpop.f32.mrb[15].mxu0 }
 0x470   :  { %v1621_v26 = vadd.f32 3.0, %v1605_v42  ;;  %v1608_v60 = vadd.f32 %v1607_v31, %v5214_v59 }
 0x471   :  { %v1639_v33 = vmax.f32 %v1627_v29, 0.0  ;;  %v1630_v4 = vadd.f32 3.0, %v1616_v11 }
 0x472   :  { %v1551_v58 = vpop.f32.mrb[8].mxu1  ;;  %v1633_v20 = vmax.f32 %v1621_v26, 0.0  ;;  %v1624_v35 = vadd.f32 3.0, %v1608_v60 }
 0x473   :  { %v1651_v36 = vmin.f32 %v1639_v33, 6.0  ;;  %v1552_v23 = vadd.f32 %v1551_v58, %v5212_v27  ;;  %v1553_v0 = vpop.f32.mrb[9].mxu1  ;;  %v1642_v52 = vmax.f32 %v1630_v4, 0.0 }
 0x474   :  { %v1645_v17 = vmin.f32 %v1633_v20, 6.0  ;;  %v1554_v6 = vadd.f32 %v1553_v0, %v5212_v27  ;;  %v1555_v63 = vpop.f32.mrb[10].mxu1  ;;  %v1636_v19 = vmax.f32 %v1624_v35, 0.0 }
 0x475   :  { %v1663_v32 = vmul.f32 0.16666667, %v1651_v36  ;;  %v1619_v22 = vadd.f32 3.0, %v1552_v23  ;;  %v1654_v46 = vmin.f32 %v1642_v52, 6.0  ;;  %v1556_v18 = vadd.f32 %v1555_v63, %v5214_v59  ;;  %v1557_v39 = vpop.f32.mrb[11].mxu1 }
 0x476   :  { %v1657_v44 = vmul.f32 0.16666667, %v1645_v17  ;;  %v1620_v16 = vadd.f32 3.0, %v1554_v6  ;;  %v1648_v21 = vmin.f32 %v1636_v19, 6.0  ;;  %v1558_v49 = vadd.f32 %v1557_v39, %v5214_v59 }
 0x477   :  { %v1675_v24 = vmul.f32 %v1663_v32, %v1613_v10  ;;  %v1631_v37 = vmax.f32 %v1619_v22, 0.0  ;;  %v1666_v7 = vmul.f32 0.16666667, %v1654_v46  ;;  %v1622_v48 = vadd.f32 3.0, %v1556_v18 }
 0x478   :  { %v1669_v34 = vmul.f32 %v1657_v44, %v1605_v42  ;;  %v1632_v40 = vmax.f32 %v1620_v16, 0.0  ;;  %v1660_v56 = vmul.f32 0.16666667, %v1648_v21  ;;  %v1623_v1 = vadd.f32 3.0, %v1558_v49  ;;  %v5216_v44 = vld [vmem:[#allocation33_spill] sm:$0xff] }
 0x479   :  { %v1687_v50 = vmul.f32 %v1675_v24, %v5215_v8  ;;  %v1643_v30 = vmin.f32 %v1631_v37, 6.0  ;;  %v1678_v51 = vmul.f32 %v1666_v7, %v1616_v11  ;;  %v1634_v27 = vmax.f32 %v1622_v48, 0.0  ;;  %v5217_v24 = vld [vmem:[#allocation40_spill] sm:$0xff] }
 0x47a   :  { %v1681_v57 = vmul.f32 %v1669_v34, %v5215_v8  ;;  %v1644_v29 = vmin.f32 %v1632_v40, 6.0  ;;  %v1672_v31 = vmul.f32 %v1660_v56, %v1608_v60  ;;  %v1635_v26 = vmax.f32 %v1623_v1, 0.0  ;;  %v1561_v33 = vpop.f32.mrb[12].mxu1  ;;  %v5218_v1 = vld [vmem:[#allocation6_spill] sm:$0xff] }
 0x47b   :  { %1699 = vst.msk [vmem:[#allocation2 + $0x40] sm:$0xff] %vm299_vm1, %v1687_v50  ;;  %v1655_v10 = vmul.f32 0.16666667, %v1643_v30  ;;  %v1690_v59 = vmul.f32 %v1678_v51, %v5215_v8  ;;  %v1646_v42 = vmin.f32 %v1634_v27, 6.0  ;;  %v1562_v4 = vadd.f32 %v1561_v33, %v5211_v38  ;;  %v1563_v58 = vpop.f32.mrb[13].mxu1 }
 0x47c   :  { %1693 = vst.msk [vmem:[#allocation2 + $0x10] sm:$0xff] %vm299_vm1, %v1681_v57  ;;  %v1656_v20 = vmul.f32 0.16666667, %v1644_v29  ;;  %v1684_v11 = vmul.f32 %v1672_v31, %v5215_v8  ;;  %v1647_v35 = vmin.f32 %v1635_v26, 6.0  ;;  %v1564_v36 = vadd.f32 %v1563_v58, %v5211_v38  ;;  %v1565_v60 = vpop.f32.mrb[14].mxu1 }
 0x47d   :  { %v1667_v0 = vmul.f32 %v1655_v10, %v1552_v23  ;;  %1702 = vst.msk [vmem:[#allocation2 + $0x58] sm:$0xff] %vm299_vm1, %v1690_v59  ;;  %v1658_v52 = vmul.f32 0.16666667, %v1646_v42  ;;  %v1625_v17 = vadd.f32 3.0, %v1562_v4  ;;  %v1566_v63 = vadd.f32 %v1565_v60, %v5213_v15  ;;  %v1567_v19 = vpop.f32.mrb[15].mxu1  ;;  %v5220_v59 = vld [vmem:[#allocation7_spill] sm:$0xff] }
 0x47e   :  { %v1668_v32 = vmul.f32 %v1656_v20, %v1554_v6  ;;  %1696 = vst.msk [vmem:[#allocation2 + $0x28] sm:$0xff] %vm299_vm1, %v1684_v11  ;;  %v1659_v22 = vmul.f32 0.16666667, %v1647_v35  ;;  %v1626_v46 = vadd.f32 3.0, %v1564_v36  ;;  %v1568_v39 = vadd.f32 %v1567_v19, %v5213_v15  ;;  %v5221_v60 = vld [vmem:[#allocation8_spill] sm:$0xff] }
 0x47f   :  { %v4127_v16 = vmul.f32 %v1667_v0, %v5216_v44  ;;  %v1670_v38 = vmul.f32 %v1658_v52, %v1556_v18  ;;  %v1637_v21 = vmax.f32 %v1625_v17, 0.0  ;;  %v1628_v23 = vadd.f32 3.0, %v1566_v63 }
 0x480   :  { %v4130_v37 = vmul.f32 %v1668_v32, %v5217_v24  ;;  %v1671_v7 = vmul.f32 %v1659_v22, %v1558_v49  ;;  %v1638_v48 = vmax.f32 %v1626_v46, 0.0  ;;  %v1629_v34 = vadd.f32 3.0, %v1568_v39  ;;  %v5219_v49 = vld [vmem:[#allocation15_spill] sm:$0xff]  ;;  %v5224_v22 = vld [vmem:[#allocation21_spill] sm:$0xff] }
 0x481   :  { %v4133_v6 = vmul.f32 %v1670_v38, %v5216_v44  ;;  %v1649_v40 = vmin.f32 %v1637_v21, 6.0  ;;  %v1640_v56 = vmax.f32 %v1628_v23, 0.0  ;;  %v1739_v15 = vmul.f32 %v4127_v16, %v5218_v1  ;;  %v5225_v38 = vld [vmem:[#allocation14_spill] sm:$0xff]  ;;  %v5226_v21 = vld [vmem:[#allocation36_spill] sm:$0xff] }
 0x482   :  { %v4138_v8 = vmul.f32 %v1671_v7, %v5217_v24  ;;  %v1650_v18 = vmin.f32 %v1638_v48, 6.0  ;;  %v1641_v50 = vmax.f32 %v1629_v34, 0.0  ;;  %v4140_v30 = vld [vmem:[#allocation2 + $0x40] sm:$0xff]  ;;  %v1819_v42 = vmul.f32 %v4127_v16, %v5220_v59  ;;  %v5228_v48 = vld [vmem:[#allocation20_spill] sm:$0xff] }
 0x483   :  { %v1661_v51 = vmul.f32 0.16666667, %v1649_v40  ;;  %v1652_v27 = vmin.f32 %v1640_v56, 6.0  ;;  %v1747_v57 = vmul.f32 %v4140_v30, %v5219_v49  ;;  %1763 = vrot.lane.b32.xlu0 %v1739_v15, %s2886_s17  ;;  %v4145_v26 = vld [vmem:[#allocation2 + $0x10] sm:$0xff]  ;;  %v1827_v0 = vmul.f32 %v4140_v30, %v5221_v60 }
 0x484   :  { %v1662_v29 = vmul.f32 0.16666667, %v1650_v18  ;;  %v1653_v31 = vmin.f32 %v1641_v50, 6.0  ;;  %v1899_v46 = vmul.f32 %v4127_v16, %v5224_v22  ;;  %v2067_v23 = vmul.f32 %v4140_v30, %v5226_v21  ;;  %v5229_v56 = vld [vmem:[#allocation44_spill] sm:$0xff] }
 0x485   :  { %v1673_v33 = vmul.f32 %v1661_v51, %v1562_v4  ;;  %v1664_v10 = vmul.f32 0.16666667, %v1652_v27  ;;  %1779 = vrot.lane.b32.xlu1 %v1747_v57, %s2886_s17  ;;  %v1821_v4 = vmul.f32 %v4145_v26, %v5220_v59  ;;  %v2147_v34 = vmul.f32 %v4140_v30, %v5228_v48  ;;  %v5230_v18 = vld [vmem:[#allocation32_spill] sm:$0xff]  ;;  %v5231_v51 = vld [vmem:[#allocation26_spill] sm:$0xff] }
 0x486   :  { %v1674_v58 = vmul.f32 %v1662_v29, %v1564_v36  ;;  %v1665_v20 = vmul.f32 0.16666667, %v1653_v31  ;;  %v2227_v15 = vmul.f32 %v4140_v30, %v5229_v56  ;;  %v2059_v50 = vmul.f32 %v4127_v16, %v5230_v18  ;;  %v5232_v31 = vld [vmem:[#allocation18_spill] sm:$0xff] }
 0x487   :  { %v4151_v11 = vmul.f32 %v1673_v33, %v5216_v44  ;;  %v1676_v35 = vmul.f32 %v1664_v10, %v1566_v63  ;;  %1843 = vrot.lane.b32.xlu0 %v1819_v42, %s2885_s5  ;;  %v5223_v63 = vld [vmem:[#allocation25_spill] sm:$0xff]  ;;  %v2307_v27 = vmul.f32 %v4140_v30, %v5231_v51  ;;  %v2061_v57 = vmul.f32 %v4145_v26, %v5230_v18 }
 0x488   :  { %v4159_v52 = vmul.f32 %v1674_v58, %v5217_v24  ;;  %v1677_v17 = vmul.f32 %v1665_v20, %v1568_v39  ;;  %v1907_v32 = vmul.f32 %v4140_v30, %v5223_v63  ;;  %v1987_v39 = vmul.f32 %v4140_v30, %v5225_v38  ;;  %v5233_v20 = vld [vmem:[#allocation41_spill] sm:$0xff] }
 0x489   :  { %v4162_v19 = vmul.f32 %v1676_v35, %v5216_v44  ;;  %1859 = vrot.lane.b32.xlu1 %v1827_v0, %s2885_s5  ;;  %v1901_v44 = vmul.f32 %v4145_v26, %v5224_v22  ;;  %v1741_v29 = vmul.f32 %v4145_v26, %v5218_v1  ;;  %v2139_v33 = vmul.f32 %v4127_v16, %v5232_v31 }
 0x48a   :  { %v4166_v36 = vmul.f32 %v1677_v17, %v5217_v24  ;;  %v5227_v24 = vld [vmem:[#allocation12_spill] sm:$0xff]  ;;  %v1740_v10 = vmul.f32 %v4130_v37, %v5218_v1  ;;  %v2141_v42 = vmul.f32 %v4145_v26, %v5232_v31  ;;  %v1820_v58 = vmul.f32 %v4130_v37, %v5220_v59 }
 0x48b   :  { %1847 = vrot.lane.b32.xlu0 %v1821_v4, %s2885_s5  ;;  %v1979_v7 = vmul.f32 %v4127_v16, %v5227_v24  ;;  %v1981_v40 = vmul.f32 %v4145_v26, %v5227_v24  ;;  %v2219_v35 = vmul.f32 %v4127_v16, %v5233_v20  ;;  %v1900_v1 = vmul.f32 %v4130_v37, %v5224_v22  ;;  %v5234_v4 = vld [vmem:[#allocation24_spill] sm:$0xff] }
 0x48c   :  { %5222 = vst [vmem:[#allocation56_spill] sm:$0xff] %v4166_v36  ;;  %v2221_v0 = vmul.f32 %v4145_v26, %v5233_v20  ;;  %v1980_v59 = vmul.f32 %v4130_v37, %v5227_v24  ;;  %v2299_v17 = vmul.f32 %v4127_v16, %v5234_v4  ;;  %v2301_v22 = vmul.f32 %v4145_v26, %v5234_v4 }
 0x48d   :  { %1939 = vrot.lane.b32.xlu1 %v1907_v32, %s2887_s18  ;;  %v2060_v32 = vmul.f32 %v4130_v37, %v5230_v18  ;;  %v2220_v24 = vmul.f32 %v4130_v37, %v5233_v20 }
 0x48f   :  { %1923 = vrot.lane.b32.xlu0 %v1899_v46, %s2887_s18  ;;  %v4240_v46 = vld [vmem:[#allocation2 + $0x58] sm:$0xff] }
 0x491   :  { %2019 = vrot.lane.b32.xlu1 %v1987_v39, %s2888_s19  ;;  %v2140_v39 = vmul.f32 %v4130_v37, %v5232_v31 }
 0x493   :  { %1927 = vrot.lane.b32.xlu0 %v1901_v44, %s2887_s18  ;;  %v5235_v44 = vld [vmem:[#allocation19_spill] sm:$0xff] }
 0x495   :  { %2099 = vrot.lane.b32.xlu1 %v2067_v23, %s2889_s20  ;;  %v1750_v23 = vmul.f32 %v4240_v46, %v5235_v44 }
 0x497   :  { %2003 = vrot.lane.b32.xlu0 %v1979_v7, %s2888_s19  ;;  %v5236_v7 = vld [vmem:[#allocation23_spill] sm:$0xff] }
 0x499   :  { %2179 = vrot.lane.b32.xlu1 %v2147_v34, %s2890_s21  ;;  %v1830_v34 = vmul.f32 %v4240_v46, %v5236_v7 }
 0x49b   :  { %2007 = vrot.lane.b32.xlu0 %v1981_v40, %s2888_s19  ;;  %v2300_v40 = vmul.f32 %v4130_v37, %v5234_v4 }
 0x49d   :  { %2259 = vrot.lane.b32.xlu1 %v2227_v15, %s2891_s22  ;;  %v5237_v15 = vld [vmem:[#allocation29_spill] sm:$0xff] }
 0x49e   :  { %v1910_v18 = vmul.f32 %v4240_v46, %v5237_v15 }
 0x49f   :  { %2083 = vrot.lane.b32.xlu0 %v2059_v50, %s2889_s20  ;;  %v5238_v50 = vld [vmem:[#allocation17_spill] sm:$0xff] }
 0x4a1   :  { %2339 = vrot.lane.b32.xlu1 %v2307_v27, %s2892_s23  ;;  %v1822_v27 = vmul.f32 %v4133_v6, %v5238_v50 }
 0x4a3   :  { %2087 = vrot.lane.b32.xlu0 %v2061_v57, %s2889_s20  ;;  %v4263_v57 = vld [vmem:[#allocation2 + $0x28] sm:$0xff] }
 0x4a5   :  { %1767 = vrot.lane.b32.xlu1 %v1741_v29, %s2886_s17  ;;  %v5239_v29 = vld [vmem:[#allocation35_spill] sm:$0xff] }
 0x4a6   :  { %v1990_v31 = vmul.f32 %v4240_v46, %v5239_v29 }
 0x4a7   :  { %2163 = vrot.lane.b32.xlu0 %v2139_v33, %s2890_s21  ;;  %v1824_v33 = vmul.f32 %v4263_v57, %v5238_v50 }
 0x4a9   :  { %1765 = vrot.lane.b32.xlu1 %v1740_v10, %s2886_s17  ;;  %v5240_v10 = vld [vmem:[#allocation39_spill] sm:$0xff] }
 0x4ab   :  { %2167 = vrot.lane.b32.xlu0 %v2141_v42, %s2890_s21  ;;  %v2070_v42 = vmul.f32 %v4240_v46, %v5240_v10 }
 0x4ad   :  { %1845 = vrot.lane.b32.xlu1 %v1820_v58, %s2885_s5  ;;  %v5241_v58 = vld [vmem:[#allocation10_spill] sm:$0xff] }
 0x4ae   :  { %v1902_v20 = vmul.f32 %v4133_v6, %v5241_v58 }
 0x4af   :  { %2243 = vrot.lane.b32.xlu0 %v2219_v35, %s2891_s22  ;;  %v5242_v35 = vld [vmem:[#allocation43_spill] sm:$0xff] }
 0x4b1   :  { %1925 = vrot.lane.b32.xlu1 %v1900_v1, %s2887_s18  ;;  %v2150_v1 = vmul.f32 %v4240_v46, %v5242_v35 }
 0x4b3   :  { %2247 = vrot.lane.b32.xlu0 %v2221_v0, %s2891_s22  ;;  %v1904_v0 = vmul.f32 %v4263_v57, %v5241_v58 }
 0x4b5   :  { %2005 = vrot.lane.b32.xlu1 %v1980_v59, %s2888_s19  ;;  %v5243_v59 = vld [vmem:[#allocation46_spill] sm:$0xff] }
 0x4b6   :  { %v2230_v4 = vmul.f32 %v4240_v46, %v5243_v59 }
 0x4b7   :  { %2323 = vrot.lane.b32.xlu0 %v2299_v17, %s2892_s23  ;;  %v5244_v17 = vld [vmem:[#allocation27_spill] sm:$0xff] }
 0x4b9   :  { %2085 = vrot.lane.b32.xlu1 %v2060_v32, %s2889_s20  ;;  %v1982_v32 = vmul.f32 %v4133_v6, %v5244_v17 }
 0x4bb   :  { %2327 = vrot.lane.b32.xlu0 %v2301_v22, %s2892_s23  ;;  %v5245_v22 = vld [vmem:[#allocation13_spill] sm:$0xff] }
 0x4bd   :  { %2165 = vrot.lane.b32.xlu1 %v2140_v39, %s2890_s21  ;;  %v1742_v39 = vmul.f32 %v4133_v6, %v5245_v22 }
 0x4bf   :  { %1785 = vrot.lane.b32.xlu0 %v1750_v23, %s2886_s17  ;;  %v1984_v23 = vmul.f32 %v4263_v57, %v5244_v17 }
 0x4c1   :  { %2245 = vrot.lane.b32.xlu1 %v2220_v24, %s2891_s22  ;;  %v1744_v24 = vmul.f32 %v4263_v57, %v5245_v22 }
 0x4c3   :  { %1865 = vrot.lane.b32.xlu0 %v1830_v34, %s2885_s5  ;;  %v5246_v34 = vld [vmem:[#allocation16_spill] sm:$0xff] }
 0x4c5   :  { %2325 = vrot.lane.b32.xlu1 %v2300_v40, %s2892_s23  ;;  %v2062_v40 = vmul.f32 %v4133_v6, %v5246_v34 }
 0x4c7   :  { %1945 = vrot.lane.b32.xlu0 %v1910_v18, %s2887_s18  ;;  %v1823_v18 = vmul.f32 %v4138_v8, %v5238_v50  ;;  %v1983_v50 = vmul.f32 %v4138_v8, %v5244_v17 }
 0x4c9   :  { %1849 = vrot.lane.b32.xlu1 %v1822_v27, %s2885_s5  ;;  %v2064_v27 = vmul.f32 %v4263_v57, %v5246_v34 }
 0x4cb   :  { %2025 = vrot.lane.b32.xlu0 %v1990_v31, %s2888_s19  ;;  %v1903_v31 = vmul.f32 %v4138_v8, %v5241_v58  ;;  %v2063_v58 = vmul.f32 %v4138_v8, %v5246_v34 }
 0x4cd   :  { %1853 = vrot.lane.b32.xlu1 %v1824_v33, %s2885_s5  ;;  %v5247_v33 = vld [vmem:[#allocation38_spill] sm:$0xff] }
 0x4cf   :  { %2105 = vrot.lane.b32.xlu0 %v2070_v42, %s2889_s20  ;;  %v2142_v42 = vmul.f32 %v4133_v6, %v5247_v33 }
 0x4d1   :  { %1929 = vrot.lane.b32.xlu1 %v1902_v20, %s2887_s18  ;;  %v2144_v20 = vmul.f32 %v4263_v57, %v5247_v33 }
 0x4d3   :  { %2185 = vrot.lane.b32.xlu0 %v2150_v1, %s2890_s21  ;;  %v5248_v1 = vld [vmem:[#allocation22_spill] sm:$0xff] }
 0x4d4   :  { %v2224_v17 = vmul.f32 %v4263_v57, %v5248_v1 }
 0x4d5   :  { %1933 = vrot.lane.b32.xlu1 %v1904_v0, %s2887_s18  ;;  %v2222_v0 = vmul.f32 %v4133_v6, %v5248_v1 }
 0x4d7   :  { %2265 = vrot.lane.b32.xlu0 %v2230_v4, %s2891_s22  ;;  %v2143_v4 = vmul.f32 %v4138_v8, %v5247_v33 }
 0x4d9   :  { %2009 = vrot.lane.b32.xlu1 %v1982_v32, %s2888_s19 }
 0x4db   :  { %1769 = vrot.lane.b32.xlu0 %v1742_v39, %s2886_s17  ;;  %v2223_v39 = vmul.f32 %v4138_v8, %v5248_v1  ;;  %v1826_v1 = vmul.f32 %v4159_v52, %v5221_v60 }
 0x4dd   :  { %2013 = vrot.lane.b32.xlu1 %v1984_v23, %s2888_s19 }
 0x4df   :  { %1773 = vrot.lane.b32.xlu0 %v1744_v24, %s2886_s17  ;;  %v5249_v24 = vld [vmem:[#allocation45_spill] sm:$0xff] }
 0x4e0   :  { %v2302_v34 = vmul.f32 %v4133_v6, %v5249_v24 }
 0x4e1   :  { %2089 = vrot.lane.b32.xlu1 %v2062_v40, %s2889_s20 }
 0x4e3   :  { %1851 = vrot.lane.b32.xlu0 %v1823_v18, %s2885_s5  ;;  %v2303_v18 = vmul.f32 %v4138_v8, %v5249_v24 }
 0x4e5   :  { %2093 = vrot.lane.b32.xlu1 %v2064_v27, %s2889_s20 }
 0x4e7   :  { %1931 = vrot.lane.b32.xlu0 %v1903_v31, %s2887_s18  ;;  %v2304_v31 = vmul.f32 %v4263_v57, %v5249_v24  ;;  %v1825_v24 = vmul.f32 %v4151_v11, %v5221_v60  ;;  %v2066_v60 = vmul.f32 %v4159_v52, %v5226_v21 }
 0x4e9   :  { %2169 = vrot.lane.b32.xlu1 %v2142_v42, %s2890_s21  ;;  %v1746_v42 = vmul.f32 %v4159_v52, %v5219_v49 }
 0x4eb   :  { %2011 = vrot.lane.b32.xlu0 %v1983_v50, %s2888_s19 }
 0x4ed   :  { %2173 = vrot.lane.b32.xlu1 %v2144_v20, %s2890_s21  ;;  %v1743_v20 = vmul.f32 %v4138_v8, %v5245_v22  ;;  %v1906_v22 = vmul.f32 %v4159_v52, %v5223_v63 }
 0x4ef   :  { %2091 = vrot.lane.b32.xlu0 %v2063_v58, %s2889_s20 }
 0x4f1   :  { %2249 = vrot.lane.b32.xlu1 %v2222_v0, %s2891_s22 }
 0x4f3   :  { %2171 = vrot.lane.b32.xlu0 %v2143_v4, %s2890_s21  ;;  %v1745_v4 = vmul.f32 %v4151_v11, %v5219_v49  ;;  %v1986_v49 = vmul.f32 %v4159_v52, %v5225_v38 }
 0x4f5   :  { %2253 = vrot.lane.b32.xlu1 %v2224_v17, %s2891_s22  ;;  %v4332_v32 = vpop.permute.xlu0 %1763 }
 0x4f7   :  { %v4336_v23 = vpop.permute.xlu1 %1779  ;;  %2251 = vrot.lane.b32.xlu0 %v2223_v39, %s2891_s22 }
 0x4f9   :  { %2329 = vrot.lane.b32.xlu1 %v2302_v34, %s2892_s23  ;;  %v4342_v40 = vpop.permute.xlu0 %1843 }
 0x4fb   :  { %v4346_v27 = vpop.permute.xlu1 %1859  ;;  %2331 = vrot.lane.b32.xlu0 %v2303_v18, %s2892_s23 }
 0x4fd   :  { %2333 = vrot.lane.b32.xlu1 %v2304_v31, %s2892_s23  ;;  %v4352_v33 = vpop.permute.xlu0 %1847  ;;  %v1905_v31 = vmul.f32 %v4151_v11, %v5223_v63  ;;  %v2146_v63 = vmul.f32 %v4159_v52, %v5228_v48 }
 0x4ff   :  { %v4356_v50 = vpop.permute.xlu1 %1939  ;;  %1777 = vrot.lane.b32.xlu0 %v1746_v42, %s2886_s17 }
 0x501   :  { %1771 = vrot.lane.b32.xlu1 %v1743_v20, %s2886_s17  ;;  %v4362_v58 = vpop.permute.xlu0 %1923 }
 0x503   :  { %v4366_v0 = vpop.permute.xlu1 %2019  ;;  %1857 = vrot.lane.b32.xlu0 %v1826_v1, %s2885_s5  ;;  %v1985_v1 = vmul.f32 %v4151_v11, %v5225_v38  ;;  %v2226_v38 = vmul.f32 %v4159_v52, %v5229_v56 }
 0x505   :  { %1775 = vrot.lane.b32.xlu1 %v1745_v4, %s2886_s17  ;;  %v4372_v17 = vpop.permute.xlu0 %1927 }
 0x507   :  { %v4376_v39 = vpop.permute.xlu1 %2099  ;;  %1937 = vrot.lane.b32.xlu0 %v1906_v22, %s2887_s18 }
 0x509   :  { %1855 = vrot.lane.b32.xlu1 %v1825_v24, %s2885_s5  ;;  %v4382_v34 = vpop.permute.xlu0 %2003  ;;  %v2065_v24 = vmul.f32 %v4151_v11, %v5226_v21  ;;  %v2306_v21 = vmul.f32 %v4159_v52, %v5231_v51 }
 0x50b   :  { %v4386_v18 = vpop.permute.xlu1 %2179  ;;  %2017 = vrot.lane.b32.xlu0 %v1986_v49, %s2888_s19 }
 0x50d   :  { %1935 = vrot.lane.b32.xlu1 %v1905_v31, %s2887_s18  ;;  %v4392_v42 = vpop.permute.xlu0 %2007 }
 0x50f   :  { %v4396_v20 = vpop.permute.xlu1 %2259  ;;  %2097 = vrot.lane.b32.xlu0 %v2066_v60, %s2889_s20  ;;  %v2145_v60 = vmul.f32 %v4151_v11, %v5228_v48  ;;  %v1748_v48 = vmul.f32 %v4162_v19, %v5235_v44 }
 0x511   :  { %2015 = vrot.lane.b32.xlu1 %v1985_v1, %s2888_s19  ;;  %v4402_v4 = vpop.permute.xlu0 %2083 }
 0x513   :  { %v4406_v22 = vpop.permute.xlu1 %2339  ;;  %2177 = vrot.lane.b32.xlu0 %v2146_v63, %s2890_s21 }
 0x515   :  { %2095 = vrot.lane.b32.xlu1 %v2065_v24, %s2889_s20  ;;  %v4412_v49 = vpop.permute.xlu0 %2087  ;;  %v2225_v24 = vmul.f32 %v4151_v11, %v5229_v56  ;;  %v1828_v56 = vmul.f32 %v4162_v19, %v5236_v7 }
 0x517   :  { %v4416_v31 = vpop.permute.xlu1 %1767  ;;  %2257 = vrot.lane.b32.xlu0 %v2226_v38, %s2891_s22 }
 0x519   :  { %2175 = vrot.lane.b32.xlu1 %v2145_v60, %s2890_s21  ;;  %v4422_v1 = vpop.permute.xlu0 %2163  ;;  %v2305_v60 = vmul.f32 %v4151_v11, %v5231_v51  ;;  %v1908_v51 = vmul.f32 %v4162_v19, %v5237_v15 }
 0x51b   :  { %v4426_v63 = vpop.permute.xlu1 %1765  ;;  %2337 = vrot.lane.b32.xlu0 %v2306_v21, %s2892_s23 }
 0x51d   :  { %2255 = vrot.lane.b32.xlu1 %v2225_v24, %s2891_s22  ;;  %v4432_v43 = vpop.permute.xlu0 %2167  ;;  %v1749_v24 = vmul.f32 %v4166_v36, %v5235_v44  ;;  %v1988_v44 = vmul.f32 %v4162_v19, %v5239_v29 }
 0x51f   :  { %v4436_v38 = vpop.permute.xlu1 %1845  ;;  %1781 = vrot.lane.b32.xlu0 %v1748_v48, %s2886_s17 }
 0x521   :  { %2335 = vrot.lane.b32.xlu1 %v2305_v60, %s2892_s23  ;;  %v4442_v61 = vpop.permute.xlu0 %2243  ;;  %v1829_v60 = vmul.f32 %v4166_v36, %v5236_v7  ;;  %v2068_v7 = vmul.f32 %v4162_v19, %v5240_v10 }
 0x523   :  { %v4446_v21 = vpop.permute.xlu1 %1925  ;;  %1861 = vrot.lane.b32.xlu0 %v1828_v56, %s2885_s5 }
 0x525   :  { %1783 = vrot.lane.b32.xlu1 %v1749_v24, %s2886_s17  ;;  %v4452_v12 = vpop.permute.xlu0 %2247  ;;  %v1909_v24 = vmul.f32 %v4166_v36, %v5237_v15  ;;  %v2148_v15 = vmul.f32 %v4162_v19, %v5242_v35 }
 0x527   :  { %v4456_v48 = vpop.permute.xlu1 %2005  ;;  %1941 = vrot.lane.b32.xlu0 %v1908_v51, %s2887_s18 }
 0x529   :  { %1863 = vrot.lane.b32.xlu1 %v1829_v60, %s2885_s5  ;;  %v4462_v54 = vpop.permute.xlu0 %2323  ;;  %v1989_v60 = vmul.f32 %v4166_v36, %v5239_v29  ;;  %v2228_v29 = vmul.f32 %v4162_v19, %v5243_v59 }
 0x52b   :  { %v2086_v56 = vpop.permute.xlu1 %2085  ;;  %2021 = vrot.lane.b32.xlu0 %v1988_v44, %s2888_s19 }
 0x52d   :  { %1943 = vrot.lane.b32.xlu1 %v1909_v24, %s2887_s18  ;;  %v4470_v41 = vpop.permute.xlu0 %2327  ;;  %v2069_v24 = vmul.f32 %v4166_v36, %v5240_v10  ;;  %v5253_v10 = vld [vmem:[#allocation47_spill] sm:$0xff] }
 0x52f   :  { %v2166_v51 = vpop.permute.xlu1 %2165  ;;  %2101 = vrot.lane.b32.xlu0 %v2068_v7, %s2889_s20 }
 0x531   :  { %2023 = vrot.lane.b32.xlu1 %v1989_v60, %s2888_s19  ;;  %v4478_v47 = vpop.permute.xlu0 %1785  ;;  %v2149_v60 = vmul.f32 %v4166_v36, %v5242_v35 }
 0x532   :  { %5250 = vst [vmem:[#allocation42_spill] sm:$0xff] %v4478_v47  ;;  %v2229_v47 = vmul.f32 %v4166_v36, %v5243_v59 }
 0x533   :  { %v2246_v44 = vpop.permute.xlu1 %2245  ;;  %2181 = vrot.lane.b32.xlu0 %v2148_v15, %s2890_s21  ;;  %v2308_v15 = vmul.f32 %v4162_v19, %v5253_v10 }
 0x535   :  { %2103 = vrot.lane.b32.xlu1 %v2069_v24, %s2889_s20  ;;  %v4486_v45 = vpop.permute.xlu0 %1865  ;;  %v1717_v24 = vmul.f32 %v4145_v26, %v3350_v62  ;;  %v2309_v26 = vmul.f32 %v4166_v36, %v5253_v10 }
 0x536   :  { %5251 = vst [vmem:[#allocation48_spill] sm:$0xff] %v4486_v45 }
 0x537   :  { %v2326_v7 = vpop.permute.xlu1 %2325  ;;  %2261 = vrot.lane.b32.xlu0 %v2228_v29, %s2891_s22  ;;  %v1809_v35 = vadd.f32 %v4416_v31, %v1717_v24  ;;  %v1788_v24 = vsel %vm430_vm2, %v4426_v63, %v4416_v31 }
 0x539   :  { %2183 = vrot.lane.b32.xlu1 %v2149_v60, %s2890_s21  ;;  %v4494_v53 = vpop.permute.xlu0 %1945  ;;  %v2310_v60 = vmul.f32 %v4240_v46, %v5253_v10  ;;  %v1889_v59 = vadd.f32 %v4352_v33, %v1809_v35  ;;  %v1716_v10 = vmul.f32 %v4130_v37, %v3350_v62 }
 0x53a   :  { %5252 = vst [vmem:[#allocation50_spill] sm:$0xff] %v4494_v53 }
 0x53b   :  { %v4500_v45 = vpop.permute.xlu1 %1849  ;;  %2341 = vrot.lane.b32.xlu0 %v2308_v15, %s2892_s23  ;;  %v1969_v35 = vadd.f32 %v4372_v17, %v1889_v59  ;;  %v1808_v31 = vadd.f32 %v1788_v24, %v1716_v10 }
 0x53d   :  { %2263 = vrot.lane.b32.xlu1 %v2229_v47, %s2891_s22  ;;  %v4507_v29 = vpop.permute.xlu0 %2025  ;;  %v1787_v47 = vsel %vm430_vm2, %v4332_v32, %v4426_v63  ;;  %v1868_v32 = vsel %vm527_vm3, %v4436_v38, %v4352_v33  ;;  %v2027_v33 = vsel %vm721_vm5, %v4382_v34, %v4456_v48 }
 0x53e   :  { %5254 = vst [vmem:[#allocation68_spill] sm:$0xff] %v4507_v29  ;;  %v1715_v29 = vmul.f32 %v4127_v16, %v3350_v62  ;;  %v1947_v62 = vsel %vm624_vm4, %v4362_v58, %v4446_v21  ;;  %v1948_v16 = vsel %vm624_vm4, %v4446_v21, %v4372_v17  ;;  %v1888_v59 = vadd.f32 %v1868_v32, %v1808_v31 }
 0x53f   :  { %v4511_v53 = vpop.permute.xlu1 %1853  ;;  %2345 = vrot.lane.b32.xlu0 %v2310_v60, %s2892_s23  ;;  %v2107_v17 = vsel %vm818_vm6, %v4402_v4, %v2086_v56  ;;  %v2108_v21 = vsel %vm818_vm6, %v2086_v56, %v4412_v49  ;;  %v2267_v4 = vsel %vm1012_vm8, %v4442_v61, %v2246_v44  ;;  %v2268_v56 = vsel %vm1012_vm8, %v2246_v44, %v4452_v12 }
 0x540   :  { %v1968_v58 = vadd.f32 %v1948_v16, %v1888_v59 }
 0x541   :  { %2343 = vrot.lane.b32.xlu1 %v2309_v26, %s2892_s23  ;;  %v4518_v15 = vpop.permute.xlu0 %2105  ;;  %v1867_v26 = vsel %vm527_vm3, %v4342_v40, %v4436_v38  ;;  %v2049_v40 = vadd.f32 %v4392_v42, %v1969_v35  ;;  %v2028_v38 = vsel %vm721_vm5, %v4456_v48, %v4392_v42  ;;  %v2187_v35 = vsel %vm915_vm7, %v4422_v1, %v2166_v51 }
 0x542   :  { %5255 = vst [vmem:[#allocation71_spill] sm:$0xff] %v4518_v15  ;;  %v1807_v15 = vadd.f32 %v1787_v47, %v1715_v29  ;;  %v2048_v24 = vadd.f32 %v2028_v38, %v1968_v58  ;;  %v2188_v42 = vsel %vm915_vm7, %v2166_v51, %v4432_v43  ;;  %v2347_v1 = vsel %vm1109_vm9, %v4462_v54, %v2326_v7 }
 0x543   :  { %v4530_v60 = vpop.permute.xlu1 %1929  ;;  %v2129_v34 = vadd.f32 %v4412_v49, %v2049_v40  ;;  %v2348_v51 = vsel %vm1109_vm9, %v2326_v7, %v4470_v41 }
 0x544   :  { %v1887_v37 = vadd.f32 %v1867_v26, %v1807_v15  ;;  %v2128_v26 = vadd.f32 %v2108_v21, %v2048_v24 }
 0x545   :  { %v4539_v63 = vpop.permute.xlu0 %2185  ;;  %v2209_v49 = vadd.f32 %v4432_v43, %v2129_v34  ;;  %v2391_v43 = vld [vmem:[%s4949_s6] sm:$0x7] }
 0x546   :  { %v1967_v29 = vadd.f32 %v1947_v62, %v1887_v37  ;;  %v2208_v62 = vadd.f32 %v2188_v42, %v2128_v26  ;;  %v4588_v54 = vrot.slane %v2391_v43, %v3119_v9  ;;  %v4591_v7 = vrot.slane %v2391_v43, %v3186_v2 }
 0x547   :  { %v4547_v36 = vpop.permute.xlu1 %1933  ;;  %v2289_v44 = vadd.f32 %v4452_v12, %v2209_v49  ;;  %v4607_v2 = vrot.slane %v2391_v43, %v5160_v28 }
 0x548   :  { %v2047_v15 = vadd.f32 %v2027_v33, %v1967_v29  ;;  %v2288_v59 = vadd.f32 %v2268_v56, %v2208_v62 }
 0x549   :  { %v4556_v47 = vpop.permute.xlu0 %2265  ;;  %v2369_v58 = vadd.f32 %v4470_v41, %v2289_v44 }
 0x54a   :  { %v2127_v48 = vadd.f32 %v2107_v17, %v2047_v15  ;;  %v2368_v61 = vadd.f32 %v2348_v51, %v2288_v59 }
 0x54b   :  { %v4562_v10 = vpop.permute.xlu1 %2009  ;;  %v4600_v24 = vadd.f32 %v2369_v58, %v3381_v13  ;;  %v1718_v58 = vmul.f32 %v4133_v6, %v3373_v25 }
 0x54c   :  { %v2207_v31 = vadd.f32 %v2187_v35, %v2127_v48  ;;  %v4597_v21 = vadd.f32 %v2368_v61, %v3381_v13 }
 0x54d   :  { %v1770_v32 = vpop.permute.xlu0 %1769  ;;  %5257 = vst [vmem:[#allocation62_spill] sm:$0xff] %v4600_v24  ;;  %v2410_v42 = vmul.f32 %v4607_v2, %v4600_v24 }
 0x54e   :  { %v2287_v37 = vadd.f32 %v2267_v4, %v2207_v31  ;;  %5256 = vst [vmem:[#allocation57_spill] sm:$0xff] %v4597_v21  ;;  %v2409_v9 = vmul.f32 %v4591_v7, %v4597_v21 }
 0x54f   :  { %v4573_v16 = vpop.permute.xlu1 %2013 }
 0x550   :  { %v2367_v33 = vadd.f32 %v2347_v1, %v2287_v37  ;;  %v1720_v1 = vmul.f32 %v4263_v57, %v3373_v25 }
 0x551   :  { %v1774_v40 = vpop.permute.xlu0 %1773 }
 0x552   :  { %v4594_v17 = vadd.f32 %v2367_v33, %v3381_v13  ;;  %v2421_v13 = vsel %vm1204_vm10, %v2410_v42, 0.0  ;;  %v1812_v28 = vadd.f32 %v1774_v40, %v1720_v1 }
 0x553   :  { %v4580_v38 = vpop.permute.xlu1 %2089 }
 0x554   :  { %v2408_v41 = vmul.f32 %v4588_v54, %v4594_v17  ;;  %v1892_v33 = vadd.f32 %v4511_v53, %v1812_v28 }
 0x555   :  { %v1852_v29 = vpop.permute.xlu0 %1851 }
 0x556   :  { %v2420_v26 = vadd.f32 %v2409_v9, %v2408_v41  ;;  %v1972_v43 = vadd.f32 %v4547_v36, %v1892_v33  ;;  %v1719_v41 = vmul.f32 %v4138_v8, %v3373_v25  ;;  %v1869_v28 = vsel %vm527_vm3, %v4500_v45, %v1852_v29 }
 0x557   :  { %v2094_v12 = vpop.permute.xlu1 %2093  ;;  %v1870_v33 = vsel %vm527_vm3, %v1852_v29, %v4511_v53 }
 0x558   :  { %v2422_v31 = vadd.f32 %v2421_v13, %v2420_v26  ;;  %v2052_v1 = vadd.f32 %v4573_v16, %v1972_v43 }
 0x559   :  { %v1932_v15 = vpop.permute.xlu0 %1931 }
 0x55a   :  { %v2132_v25 = vadd.f32 %v2094_v12, %v2052_v1  ;;  %v1949_v8 = vsel %vm624_vm4, %v4530_v60, %v1932_v15 }
 0x55b   :  { %v2170_v34 = vpop.permute.xlu1 %2169 }
 0x55d   :  { %v2012_v35 = vpop.permute.xlu0 %2011 }
 0x55e   :  { %v2029_v45 = vsel %vm721_vm5, %v4562_v10, %v2012_v35  ;;  %v2030_v53 = vsel %vm721_vm5, %v2012_v35, %v4573_v16  ;;  %v1723_v16 = vmul.f32 %v4140_v30, %v5163_v55 }
 0x55f   :  { %v2174_v48 = vpop.permute.xlu1 %2173 }
 0x560   :  { %v2212_v43 = vadd.f32 %v2174_v48, %v2132_v25 }
 0x561   :  { %v2092_v4 = vpop.permute.xlu0 %2091 }
 0x562   :  { %v2110_v60 = vsel %vm818_vm6, %v2092_v4, %v2094_v12 }
 0x563   :  { %v2250_v56 = vpop.permute.xlu1 %2249 }
 0x565   :  { %2423 = vadd.xlane.f32.xlu1 %v2422_v31  ;;  %v2172_v62 = vpop.permute.xlu0 %2171 }
 0x566   :  { %v2190_v1 = vsel %vm915_vm7, %v2172_v62, %v2174_v48 }
 0x567   :  { %v2254_v49 = vpop.permute.xlu1 %2253 }
 0x569   :  { %v2252_v51 = vpop.permute.xlu0 %2251 }
 0x56b   :  { %v2330_v37 = vpop.permute.xlu1 %2329 }
 0x56d   :  { %v2332_v59 = vpop.permute.xlu0 %2331 }
 0x56f   :  { %v2334_v61 = vpop.permute.xlu1 %2333 }
 0x571   :  { %v1778_v44 = vpop.permute.xlu0 %1777 }
 0x572   :  { %v1792_v12 = vsel %vm430_vm2, %v1778_v44, %v4336_v23 }
 0x573   :  { %v1772_v9 = vpop.permute.xlu1 %1771 }
 0x574   :  { %v1789_v42 = vsel %vm430_vm2, %v1770_v32, %v1772_v9  ;;  %v1790_v57 = vsel %vm430_vm2, %v1772_v9, %v1774_v40  ;;  %v1950_v32 = vsel %vm624_vm4, %v1932_v15, %v4547_v36 }
 0x575   :  { %v1810_v26 = vadd.f32 %v1789_v42, %v1718_v58  ;;  %v1811_v13 = vadd.f32 %v1790_v57, %v1719_v41  ;;  %v1858_v31 = vpop.permute.xlu0 %1857  ;;  %v2109_v57 = vsel %vm818_vm6, %v4580_v38, %v2092_v4  ;;  %v2270_v38 = vsel %vm1012_vm8, %v2252_v51, %v2254_v49 }
 0x576   :  { %v1815_v4 = vadd.f32 %v4336_v23, %v1723_v16 }
 0x577   :  { %v1890_v6 = vadd.f32 %v1869_v28, %v1810_v26  ;;  %v1891_v21 = vadd.f32 %v1870_v33, %v1811_v13  ;;  %v1776_v24 = vpop.permute.xlu1 %1775  ;;  %v2292_v26 = vadd.f32 %v2254_v49, %v2212_v43  ;;  %v2189_v13 = vsel %vm915_vm7, %v2170_v34, %v2172_v62 }
 0x578   :  { %v1722_v34 = vmul.f32 %v4159_v52, %v5163_v55  ;;  %v1872_v49 = vsel %vm527_vm3, %v1858_v31, %v4346_v27  ;;  %v1791_v52 = vsel %vm430_vm2, %v1776_v24, %v1778_v44 }
 0x579   :  { %v1970_v40 = vadd.f32 %v1949_v8, %v1890_v6  ;;  %v1971_v58 = vadd.f32 %v1950_v32, %v1891_v21  ;;  %v1938_v41 = vpop.permute.xlu0 %1937  ;;  %v2372_v10 = vadd.f32 %v2334_v61, %v2292_v26  ;;  %v2269_v6 = vsel %vm1012_vm8, %v2250_v56, %v2252_v51 }
 0x57a   :  { %v2349_v8 = vsel %vm1109_vm9, %v2330_v37, %v2332_v59  ;;  %v2350_v56 = vsel %vm1109_vm9, %v2332_v59, %v2334_v61  ;;  %v1814_v51 = vadd.f32 %v1792_v12, %v1722_v34  ;;  %v1952_v43 = vsel %vm624_vm4, %v1938_v41, %v4356_v50 }
 0x57b   :  { %v2050_v29 = vadd.f32 %v2029_v45, %v1970_v40  ;;  %v2051_v9 = vadd.f32 %v2030_v53, %v1971_v58  ;;  %v1856_v42 = vpop.permute.xlu1 %1855  ;;  %v4650_v30 = vadd.f32 %v2372_v10, %v5161_v14  ;;  %v1895_v58 = vadd.f32 %v4346_v27, %v1815_v4 }
 0x57c   :  { %v1721_v45 = vmul.f32 %v4151_v11, %v5163_v55  ;;  %v1894_v37 = vadd.f32 %v1872_v49, %v1814_v51  ;;  %v1871_v24 = vsel %vm527_vm3, %v1856_v42, %v1858_v31 }
 0x57d   :  { %v2130_v36 = vadd.f32 %v2109_v57, %v2050_v29  ;;  %v2131_v15 = vadd.f32 %v2110_v60, %v2051_v9  ;;  %v2018_v21 = vpop.permute.xlu0 %2017  ;;  %v1975_v29 = vadd.f32 %v4356_v50, %v1895_v58  ;;  %v2413_v27 = vmul.f32 %v4607_v2, %v4650_v30 }
 0x57e   :  { %v2032_v44 = vsel %vm721_vm5, %v2018_v21, %v4366_v0  ;;  %v1813_v9 = vadd.f32 %v1791_v52, %v1721_v45  ;;  %v1974_v55 = vadd.f32 %v1952_v43, %v1894_v37 }
 0x57f   :  { %v2210_v35 = vadd.f32 %v2189_v13, %v2130_v36  ;;  %v2211_v28 = vadd.f32 %v2190_v1, %v2131_v15  ;;  %v1936_v33 = vpop.permute.xlu1 %1935  ;;  %v2055_v60 = vadd.f32 %v4366_v0, %v1975_v29  ;;  %v2426_v16 = vsel %vm1204_vm10, %v2413_v27, 0.0 }
 0x580   :  { %v1951_v50 = vsel %vm624_vm4, %v1936_v33, %v1938_v41  ;;  %v1893_v31 = vadd.f32 %v1871_v24, %v1813_v9  ;;  %v2054_v42 = vadd.f32 %v2032_v44, %v1974_v55 }
 0x581   :  { %v2098_v48 = vpop.permute.xlu0 %2097  ;;  %v2290_v62 = vadd.f32 %v2269_v6, %v2210_v35  ;;  %v2291_v25 = vadd.f32 %v2270_v38, %v2211_v28  ;;  %v2135_v13 = vadd.f32 %v4376_v39, %v2055_v60  ;;  %v1726_v60 = vmul.f32 %v4240_v46, %v5169_v5 }
 0x582   :  { %v2112_v26 = vsel %vm818_vm6, %v2098_v48, %v4376_v39  ;;  %v1973_v35 = vadd.f32 %v1951_v50, %v1893_v31 }
 0x583   :  { %v2016_v32 = vpop.permute.xlu1 %2015  ;;  %v2370_v40 = vadd.f32 %v2349_v8, %v2290_v62  ;;  %v2371_v23 = vadd.f32 %v2350_v56, %v2291_v25  ;;  %v2134_v0 = vadd.f32 %v2112_v26, %v2054_v42  ;;  %v2215_v33 = vadd.f32 %v4386_v18, %v2135_v13  ;;  %v5258_v26 = vld [vmem:[#allocation42_spill] sm:$0xff]  ;;  %v5259_v13 = vld [vmem:[#allocation56_spill] sm:$0xff] }
 0x584   :  { %v2031_v1 = vsel %vm721_vm5, %v2016_v32, %v2018_v21  ;;  %v1818_v31 = vadd.f32 %v5258_v26, %v1726_v60 }
 0x585   :  { %v2178_v53 = vpop.permute.xlu0 %2177  ;;  %v4663_v59 = vadd.f32 %v2370_v40, %v5161_v14  ;;  %v4666_v61 = vadd.f32 %v2371_v23, %v5161_v14  ;;  %v2053_v12 = vadd.f32 %v2031_v1, %v1973_v35  ;;  %v2295_v4 = vadd.f32 %v4396_v20, %v2215_v33 }
 0x586   :  { %v2192_v10 = vsel %vm915_vm7, %v2178_v53, %v4386_v18  ;;  %v1725_v1 = vmul.f32 %v5259_v13, %v5169_v5 }
 0x587   :  { %v2096_v11 = vpop.permute.xlu1 %2095  ;;  %v2411_v57 = vmul.f32 %v4588_v54, %v4663_v59  ;;  %v2412_v14 = vmul.f32 %v4591_v7, %v4666_v61  ;;  %v2214_v39 = vadd.f32 %v2192_v10, %v2134_v0  ;;  %v2375_v18 = vadd.f32 %v4406_v22, %v2295_v4  ;;  %v5262_v4 = vld [vmem:[#allocation68_spill] sm:$0xff] }
 0x588   :  { %v2111_v6 = vsel %vm818_vm6, %v2096_v11, %v2098_v48 }
 0x589   :  { %v2258_v36 = vpop.permute.xlu0 %2257  ;;  %v2425_v15 = vadd.f32 %v2412_v14, %v2411_v57  ;;  %v2133_v25 = vadd.f32 %v2111_v6, %v2053_v12  ;;  %v4698_v58 = vadd.f32 %v2375_v18, %v5203_v3  ;;  %v5261_v6 = vld [vmem:[#allocation50_spill] sm:$0xff] }
 0x58a   :  { %v2272_v38 = vsel %vm1012_vm8, %v2258_v36, %v4396_v20 }
 0x58b   :  { %v2176_v28 = vpop.permute.xlu1 %2175  ;;  %v2427_v41 = vadd.f32 %v2426_v16, %v2425_v15  ;;  %v2294_v8 = vadd.f32 %v2272_v38, %v2214_v39  ;;  %v1724_v15 = vmul.f32 %v4162_v19, %v5169_v5  ;;  %v5260_v16 = vld [vmem:[#allocation48_spill] sm:$0xff] }
 0x58c   :  { %v2191_v34 = vsel %vm915_vm7, %v2176_v28, %v2178_v53  ;;  %v2416_v53 = vmul.f32 %v4607_v2, %v4698_v58  ;;  %v1898_v35 = vadd.f32 %v5260_v16, %v1818_v31  ;;  %v5264_v31 = vld [vmem:[#allocation31_spill] sm:$0xff] }
 0x58d   :  { %2428 = vadd.xlane.f32.xlu0 %v2427_v41  ;;  %v2338_v21 = vpop.permute.xlu0 %2337  ;;  %v2213_v49 = vadd.f32 %v2191_v34, %v2133_v25 }
 0x58e   :  { %v2352_v62 = vsel %vm1109_vm9, %v2338_v21, %v4406_v22  ;;  %v2431_v55 = vsel %vm1204_vm10, %v2416_v53, 0.0  ;;  %v1978_v38 = vadd.f32 %v5261_v6, %v1898_v35 }
 0x58f   :  { %v2256_v56 = vpop.permute.xlu1 %2255  ;;  %v2374_v51 = vadd.f32 %v2352_v62, %v2294_v8 }
 0x590   :  { %v2271_v48 = vsel %vm1012_vm8, %v2256_v56, %v2258_v36  ;;  %v2058_v34 = vadd.f32 %v5262_v4, %v1978_v38  ;;  %v2445_v38 = vld [vmem:[%s4950_s7 + $0x8] sm:$0xff] }
 0x591   :  { %v1782_v32 = vpop.permute.xlu0 %1781  ;;  %v2293_v40 = vadd.f32 %v2271_v48, %v2213_v49  ;;  %v4702_v52 = vadd.f32 %v2374_v51, %v5203_v3  ;;  %v5263_v48 = vld [vmem:[#allocation71_spill] sm:$0xff] }
 0x592   :  { %v2138_v49 = vadd.f32 %v5263_v48, %v2058_v34 }
 0x593   :  { %v2336_v23 = vpop.permute.xlu1 %2335  ;;  %v2415_v29 = vmul.f32 %v4591_v7, %v4702_v52 }
 0x594   :  { %v2351_v20 = vsel %vm1109_vm9, %v2336_v23, %v2338_v21 }
 0x595   :  { %v2373_v43 = vadd.f32 %v2351_v20, %v2293_v40  ;;  %v1862_v45 = vpop.permute.xlu0 %1861 }
 0x597   :  { %v4705_v37 = vadd.f32 %v2373_v43, %v5203_v3  ;;  %v1784_v22 = vpop.permute.xlu1 %1783  ;;  %v2218_v43 = vadd.f32 %v4539_v63, %v2138_v49 }
 0x598   :  { %v1793_v42 = vsel %vm430_vm2, %v1782_v32, %v1784_v22  ;;  %v1794_v36 = vsel %vm430_vm2, %v1784_v22, %v5258_v26 }
 0x599   :  { %v2414_v27 = vmul.f32 %v4588_v54, %v4705_v37  ;;  %v1942_v24 = vpop.permute.xlu0 %1941  ;;  %v1816_v28 = vadd.f32 %v1793_v42, %v1724_v15  ;;  %v1817_v41 = vadd.f32 %v1794_v36, %v1725_v1 }
 0x59b   :  { %v1864_v44 = vpop.permute.xlu1 %1863  ;;  %v2430_v9 = vadd.f32 %v2415_v29, %v2414_v27 }
 0x59c   :  { %v1873_v0 = vsel %vm527_vm3, %v1862_v45, %v1864_v44  ;;  %v1874_v46 = vsel %vm527_vm3, %v1864_v44, %v5260_v16 }
 0x59d   :  { %v2432_v11 = vadd.f32 %v2431_v55, %v2430_v9  ;;  %v2022_v57 = vpop.permute.xlu0 %2021  ;;  %v1896_v39 = vadd.f32 %v1873_v0, %v1816_v28  ;;  %v1897_v5 = vadd.f32 %v1874_v46, %v1817_v41 }
 0x59f   :  { %v1944_v14 = vpop.permute.xlu1 %1943  ;;  %2433 = vadd.xlane.f32.xlu0 %v2432_v11 }
 0x5a0   :  { %v1953_v12 = vsel %vm624_vm4, %v1942_v24, %v1944_v14  ;;  %v1954_v19 = vsel %vm624_vm4, %v1944_v14, %v5261_v6  ;;  %v2298_v24 = vadd.f32 %v4556_v47, %v2218_v43 }
 0x5a1   :  { %v2102_v3 = vpop.permute.xlu0 %2101  ;;  %v1976_v8 = vadd.f32 %v1953_v12, %v1896_v39  ;;  %v1977_v56 = vadd.f32 %v1954_v19, %v1897_v5 }
 0x5a3   :  { %v2024_v50 = vpop.permute.xlu1 %2023 }
 0x5a4   :  { %v2033_v62 = vsel %vm721_vm5, %v2022_v57, %v2024_v50  ;;  %v2034_v25 = vsel %vm721_vm5, %v2024_v50, %v5262_v4  ;;  %v2447_v4 = vld [vmem:[%s4950_s7 + $0x18] sm:$0xff] }
 0x5a5   :  { %v2182_v10 = vpop.permute.xlu0 %2181  ;;  %v2056_v40 = vadd.f32 %v2033_v62, %v1976_v8  ;;  %v2057_v23 = vadd.f32 %v2034_v25, %v1977_v56 }
 0x5a7   :  { %v2104_v33 = vpop.permute.xlu1 %2103 }
 0x5a8   :  { %v2113_v51 = vsel %vm818_vm6, %v2102_v3, %v2104_v33  ;;  %v2114_v32 = vsel %vm818_vm6, %v2104_v33, %v5263_v48 }
 0x5a9   :  { %v2262_v21 = vpop.permute.xlu0 %2261  ;;  %v2136_v53 = vadd.f32 %v2113_v51, %v2056_v40  ;;  %v2137_v29 = vadd.f32 %v2114_v32, %v2057_v23 }
 0x5ab   :  { %v2184_v18 = vpop.permute.xlu1 %2183 }
 0x5ac   :  { %v2193_v45 = vsel %vm915_vm7, %v2182_v10, %v2184_v18  ;;  %v2194_v22 = vsel %vm915_vm7, %v2184_v18, %v4539_v63 }
 0x5ad   :  { %v2342_v20 = vpop.permute.xlu0 %2341  ;;  %v2216_v55 = vadd.f32 %v2193_v45, %v2136_v53  ;;  %v2217_v11 = vadd.f32 %v2194_v22, %v2137_v29  ;;  %v2467_v22 = vld [vmem:[%s4951_s8 + $0x8] sm:$0xff]  ;;  %v2466_v53 = vld [vmem:[%s4951_s8] sm:$0xff] }
 0x5af   :  { %v2264_v27 = vpop.permute.xlu1 %2263 }
 0x5b0   :  { %v2273_v44 = vsel %vm1012_vm8, %v2262_v21, %v2264_v27  ;;  %v2274_v9 = vsel %vm1012_vm8, %v2264_v27, %v4556_v47  ;;  %v2469_v27 = vld [vmem:[%s4951_s8 + $0x18] sm:$0xff] }
 0x5b1   :  { %v2346_v57 = vpop.permute.xlu0 %2345  ;;  %v2296_v3 = vadd.f32 %v2273_v44, %v2216_v55  ;;  %v2297_v60 = vadd.f32 %v2274_v9, %v2217_v11 }
 0x5b2   :  { %v2378_v14 = vadd.f32 %v2346_v57, %v2298_v24  ;;  %v2468_v24 = vld [vmem:[%s4951_s8 + $0x10] sm:$0xff] }
 0x5b3   :  { %v2344_v50 = vpop.permute.xlu1 %2343 }
 0x5b4   :  { %v2353_v26 = vsel %vm1109_vm9, %v2342_v20, %v2344_v50  ;;  %v2354_v63 = vsel %vm1109_vm9, %v2344_v50, %v2346_v57  ;;  %v4751_v42 = vadd.f32 %v2378_v14, %v5264_v31  ;;  %v59_v50 = vld [vmem:[%s4953_s10 + $0x8] sm:$0xff] }
 0x5b5   :  { %v2376_v36 = vadd.f32 %v2353_v26, %v2296_v3  ;;  %v2377_v15 = vadd.f32 %v2354_v63, %v2297_v60  ;;  %v58_v26 = vld [vmem:[%s4953_s10] sm:$0xff] }
 0x5b6   :  { %v2419_v1 = vmul.f32 %v4607_v2, %v4751_v42  ;;  %v2839_v63 = vld [vmem:[%s4943_s0] sm:$0xff] }
 0x5b7   :  { %v4754_v13 = vadd.f32 %v2376_v36, %v5264_v31  ;;  %v4757_v47 = vadd.f32 %v2377_v15, %v5264_v31  ;;  %v2840_v31 = vld [vmem:[%s4943_s0 + $0x10] sm:$0xff]  ;;  %v2841_v36 = vld [vmem:[%s4943_s0 + $0x8] sm:$0xff]  ;;  %v2842_v15 = vld [vmem:[%s4943_s0 + $0x20] sm:$0xff] }
 0x5b8   :  { %v2436_v0 = vsel %vm1204_vm10, %v2419_v1, 0.0  ;;  %v2843_v1 = vld [vmem:[%s4943_s0 + $0x18] sm:$0xff] }
 0x5b9   :  { %v2417_v10 = vmul.f32 %v4588_v54, %v4754_v13  ;;  %v2418_v16 = vmul.f32 %v4591_v7, %v4757_v47  ;;  %v2444_v54 = vld [vmem:[%s4950_s7] sm:$0xff]  ;;  %v2446_v7 = vld [vmem:[%s4950_s7 + $0x10] sm:$0xff] }
 0x5bb   :  { %v2435_v35 = vadd.f32 %v2418_v16, %v2417_v10  ;;  %v2844_v10 = vld [vmem:[%s4943_s0 + $0x30] sm:$0xff]  ;;  %v2845_v16 = vld [vmem:[%s4943_s0 + $0x28] sm:$0xff] }
 0x5bd   :  { %v2437_v46 = vadd.f32 %v2436_v0, %v2435_v35  ;;  %v2846_v35 = vld [vmem:[%s4943_s0 + $0x40] sm:$0xff]  ;;  %v2847_v0 = vld [vmem:[%s4943_s0 + $0x38] sm:$0xff] }
 0x5bf   :  { %2438 = vadd.xlane.f32.xlu1 %v2437_v46  ;;  %v2848_v46 = vld [vmem:[%s4943_s0 + $0x50] sm:$0xff] }
 0x5f2   :  { %v2424_v41 = vpop.xlane.xlu1 %2423 }
 0x5f3   :  { %v2440_v2 = vmul.f32 0.00390625, %v2424_v41  ;;  %v2850_v41 = vld [vmem:[%s4943_s0 + $0x58] sm:$0xff] }
 0x5f5   :  { %v2448_v39 = vmul.f32 %v2444_v54, %v2440_v2 }
 0x5f7   :  { %v2452_v62 = vsel %vm1236_vm11, %v2448_v39, 0.0 }
 0x61a   :  { %v2429_v28 = vpop.xlane.xlu0 %2428 }
 0x61b   :  { %v2441_v6 = vmul.f32 0.00390625, %v2429_v28  ;;  %v2849_v28 = vld [vmem:[%s4943_s0 + $0x48] sm:$0xff] }
 0x61d   :  { %v2449_v19 = vmul.f32 %v2445_v38, %v2441_v6 }
 0x61f   :  { %v2453_v21 = vsel %vm1236_vm11, %v2449_v19, 0.0 }
 0x620   :  { %v2454_v56 = vadd.f32 %v2453_v21, %v2452_v62 }
 0x62c   :  { %v2434_v33 = vpop.xlane.xlu0 %2433 }
 0x62d   :  { %v2442_v12 = vmul.f32 0.00390625, %v2434_v33 }
 0x62f   :  { %v2450_v5 = vmul.f32 %v2446_v7, %v2442_v12 }
 0x631   :  { %v2455_v25 = vsel %vm1236_vm11, %v2450_v5, 0.0 }
 0x632   :  { %v2456_v48 = vadd.f32 %v2455_v25, %v2454_v56 }
 0x64c   :  { %v2439_v34 = vpop.xlane.xlu1 %2438 }
 0x64d   :  { %v2443_v8 = vmul.f32 0.00390625, %v2439_v34 }
 0x64f   :  { %v2451_v18 = vmul.f32 %v2447_v4, %v2443_v8 }
 0x651   :  { %v2457_v49 = vsel %vm1236_vm11, %v2451_v18, 0.0 }
 0x652   :  { %v2458_v51 = vadd.f32 %v2457_v49, %v2456_v48 }
 0x654   :  { %v2459_v32 = vrot.slane %v2458_v51, 4 }
 0x656   :  { %v2460_v40 = vadd.f32 %v2459_v32, %v2458_v51  ;;  %v5265_v51 = vld [vmem:[#allocation62_spill] sm:$0xff] }
 0x658   :  { %v2461_v23 = vrot.slane %v2460_v40, 2 }
 0x65a   :  { %v2462_v20 = vadd.f32 %v2461_v23, %v2460_v40 }
 0x65c   :  { %v2463_v43 = vrot.slane %v2462_v20, 1 }
 0x65e   :  { %v2464_v45 = vadd.f32 %v2463_v43, %v2462_v20 }
 0x660   :  { %v2465_v29 = vmax.f32 %v2464_v45, 0.0 }
 0x662   :  { %v2471_v44 = vmul.f32 %v2467_v22, %v2465_v29  ;;  %v2470_v9 = vmul.f32 %v2466_v53, %v2465_v29  ;;  %v2473_v57 = vmul.f32 %v2469_v27, %v2465_v29  ;;  %v2472_v14 = vmul.f32 %v2468_v24, %v2465_v29 }
 0x664   :  { %v2477_v55 = vsel %vm1236_vm11, %v2471_v44, 0.0  ;;  %v2474_v11 = vsel %vm1236_vm11, %v2470_v9, 0.0  ;;  %v2483_v3 = vsel %vm1236_vm11, %v2473_v57, 0.0  ;;  %v2480_v60 = vsel %vm1236_vm11, %v2472_v14, 0.0  ;;  %v5266_v9 = vld [vmem:[#allocation57_spill] sm:$0xff] }
 0x665   :  { %2478 = vadd.xlane.f32.xlu1 %v2477_v55  ;;  %2475 = vadd.xlane.f32.xlu0 %v2474_v11 }
 0x669   :  { %2484 = vadd.xlane.f32.xlu1 %v2483_v3  ;;  %2481 = vadd.xlane.f32.xlu0 %v2480_v60 }
 0x67a   :  { %1372 = vperm.xlu1 %2833, %v59_v50  }
 0x67e   :  { %1473 = vrot.lane.b32.xlu1 %v2839_v63, %s2888_s19 }
 0x67f   :  { %1367 = vperm.xlu0 %2831, %v58_v26  }
 0x682   :  { %1477 = vrot.lane.b32.xlu1 %v2840_v31, %s2888_s19 }
 0x683   :  { %1475 = vrot.lane.b32.xlu0 %v2841_v36, %s2888_s19 }
 0x686   :  { %1481 = vrot.lane.b32.xlu1 %v2842_v15, %s2888_s19 }
 0x687   :  { %1479 = vrot.lane.b32.xlu0 %v2843_v1, %s2888_s19 }
 0x68a   :  { %2670 = vrot.lane.b32.xlu1 %v2844_v10, %s2888_s19 }
 0x68b   :  { %1483 = vrot.lane.b32.xlu0 %v2845_v16, %s2888_s19 }
 0x68e   :  { %2674 = vrot.lane.b32.xlu1 %v2846_v35, %s2888_s19 }
 0x68f   :  { %2672 = vrot.lane.b32.xlu0 %v2847_v0, %s2888_s19 }
 0x692   :  { %2678 = vrot.lane.b32.xlu1 %v2848_v46, %s2888_s19 }
 0x693   :  { %2676 = vrot.lane.b32.xlu0 %v2849_v28, %s2888_s19 }
 0x697   :  { %2680 = vrot.lane.b32.xlu0 %v2850_v41, %s2888_s19 }
 0x6f2   :  { %v2479_v33 = vpop.xlane.xlu1 %2478  ;;  %v2476_v6 = vpop.xlane.xlu0 %2475 }
 0x6f3   :  { %v2487_v38 = vadd.f32 3.0, %v2479_v33  ;;  %v2486_v2 = vadd.f32 3.0, %v2476_v6 }
 0x6f5   :  { %v2491_v12 = vmax.f32 %v2487_v38, 0.0  ;;  %v2490_v54 = vmax.f32 %v2486_v2, 0.0 }
 0x6f6   :  { %v2485_v7 = vpop.xlane.xlu1 %2484  ;;  %v2482_v19 = vpop.xlane.xlu0 %2481 }
 0x6f7   :  { %v2495_v39 = vmin.f32 %v2491_v12, 6.0  ;;  %v2494_v5 = vmin.f32 %v2490_v54, 6.0  ;;  %v2489_v21 = vadd.f32 3.0, %v2485_v7  ;;  %v2488_v4 = vadd.f32 3.0, %v2482_v19 }
 0x6f9   :  { %v2499_v34 = vmul.f32 0.16666667, %v2495_v39  ;;  %v2498_v62 = vmul.f32 0.16666667, %v2494_v5  ;;  %v2493_v25 = vmax.f32 %v2489_v21, 0.0  ;;  %v2492_v8 = vmax.f32 %v2488_v4, 0.0 }
 0x6fa   :  { %v4852_v56 = vpop.permute.xlu1 %1372  ;;  %v5268_v4 = vld [vmem:[#allocation51_spill] sm:$0xff] }
 0x6fb   :  { %v2505_v18 = vmul.f32 %v2499_v34, %v4663_v59  ;;  %v2507_v48 = vmul.f32 %v2499_v34, %v4650_v30  ;;  %v2502_v49 = vmul.f32 %v2498_v62, %v4594_v17  ;;  %v2504_v32 = vmul.f32 %v2498_v62, %v5265_v51 }
 0x6fc   :  { %v2497_v40 = vmin.f32 %v2493_v25, 6.0  ;;  %v2496_v23 = vmin.f32 %v2492_v8, 6.0  ;;  %v4859_v22 = vmul.f32 %v2499_v34, %v4666_v61  ;;  %v4864_v17 = vmul.f32 %v2498_v62, %v5266_v9  ;;  %v5269_v25 = vld [vmem:[#allocation54_spill] sm:$0xff] }
 0x6fd   :  { %v2517_v20 = vadd.f32 3.0, %v2505_v18  ;;  %v2519_v43 = vadd.f32 3.0, %v2507_v48  ;;  %v2514_v45 = vadd.f32 3.0, %v2502_v49  ;;  %v2516_v53 = vadd.f32 3.0, %v2504_v32 }
 0x6fe   :  { %v2501_v29 = vmul.f32 0.16666667, %v2497_v40  ;;  %v2500_v27 = vmul.f32 0.16666667, %v2496_v23  ;;  %v1474_v24 = vpop.permute.xlu1 %1473  ;;  %v4861_v44 = vpop.permute.xlu0 %1367  ;;  %v2518_v63 = vadd.f32 3.0, %v4859_v22 }
 0x6ff   :  { %v2529_v59 = vmax.f32 %v2517_v20, 0.0  ;;  %v2531_v30 = vmax.f32 %v2519_v43, 0.0  ;;  %v2526_v55 = vmax.f32 %v2514_v45, 0.0  ;;  %v2528_v11 = vmax.f32 %v2516_v53, 0.0 }
 0x700   :  { %v4867_v57 = vmul.f32 %v2501_v29, %v4754_v13  ;;  %v4870_v14 = vmul.f32 %v2501_v29, %v4757_v47  ;;  %v2513_v61 = vmul.f32 %v2501_v29, %v4751_v42  ;;  %v4874_v26 = vmul.f32 %v2500_v27, %v4705_v37  ;;  %v5267_v42 = vld [vmem:[#allocation53_spill] sm:$0xff] }
 0x701   :  { %v2541_v3 = vmin.f32 %v2529_v59, 6.0  ;;  %v2543_v60 = vmin.f32 %v2531_v30, 6.0  ;;  %v2538_v50 = vmin.f32 %v2526_v55, 6.0  ;;  %v2540_v31 = vmin.f32 %v2528_v11, 6.0 }
 0x702   :  { %v2523_v36 = vadd.f32 3.0, %v4867_v57  ;;  %v2525_v15 = vadd.f32 3.0, %v2513_v61  ;;  %v1478_v1 = vpop.permute.xlu1 %1477  ;;  %v1476_v13 = vpop.permute.xlu0 %1475  ;;  %v2515_v47 = vadd.f32 3.0, %v4864_v17  ;;  %v1461_v35 = vadd.f32 %v5267_v42, %v4861_v44 }
 0x703   :  { %v2553_v10 = vmul.f32 0.16666667, %v2541_v3  ;;  %v2555_v16 = vmul.f32 0.16666667, %v2543_v60  ;;  %v2552_v0 = vmul.f32 0.16666667, %v2540_v31  ;;  %v2510_v37 = vmul.f32 %v2500_v27, %v4698_v58 }
 0x704   :  { %v2535_v46 = vmax.f32 %v2523_v36, 0.0  ;;  %v2537_v28 = vmax.f32 %v2525_v15, 0.0  ;;  %v2550_v41 = vmul.f32 0.16666667, %v2538_v50  ;;  %v2524_v33 = vadd.f32 3.0, %v4870_v14  ;;  %v5271_v31 = vld [vmem:[#allocation69_spill] sm:$0xff] }
 0x705   :  { %v4884_v6 = vmul.f32 %v2500_v27, %v4702_v52  ;;  %v2520_v38 = vadd.f32 3.0, %v4874_v26  ;;  %v4887_v2 = vmul.f32 %v2553_v10, %v2505_v18  ;;  %v2567_v12 = vmul.f32 %v2555_v16, %v2507_v48 }
 0x706   :  { %v2547_v54 = vmin.f32 %v2535_v46, 6.0  ;;  %v2549_v7 = vmin.f32 %v2537_v28, 6.0  ;;  %v1480_v19 = vpop.permute.xlu0 %1479  ;;  %v2522_v39 = vadd.f32 3.0, %v2510_v37  ;;  %v1497_v21 = vadd.f32 %v1478_v1, %v1461_v35  ;;  %v1482_v51 = vpop.permute.xlu1 %1481 }
 0x707   :  { %v2532_v5 = vmax.f32 %v2520_v38, 0.0  ;;  %v1418_v58 = vadd.f32 %v5268_v4, %v4861_v44  ;;  %v2564_v34 = vmul.f32 %v2552_v0, %v2504_v32  ;;  %v1420_v52 = vadd.f32 %v5269_v25, %v4861_v44  ;;  %v5270_v32 = vld [vmem:[#allocation67_spill] sm:$0xff] }
 0x708   :  { %v2561_v62 = vmul.f32 0.16666667, %v2549_v7  ;;  %v1485_v8 = vsel %vm721_vm5, %v1474_v24, %v1476_v13  ;;  %v2534_v18 = vmax.f32 %v2522_v39, 0.0  ;;  %1503 = vst.msk [vmem:[#allocation3 + $0x10] sm:$0xff] %vm1204_vm10, %v1497_v21  ;;  %v1486_v48 = vsel %vm721_vm5, %v1476_v13, %v1478_v1  ;;  %v5272_v1 = vld [vmem:[#allocation37_spill] sm:$0xff] }
 0x709   :  { %v2544_v40 = vmin.f32 %v2532_v5, 6.0  ;;  %v1495_v23 = vadd.f32 %v1485_v8, %v1418_v58  ;;  %v2562_v20 = vmul.f32 %v2550_v41, %v2502_v49  ;;  %v2521_v43 = vadd.f32 3.0, %v4884_v6 }
 0x70a   :  { %v1496_v45 = vadd.f32 %v1486_v48, %v1420_v52  ;;  %v1422_v53 = vadd.f32 %v5270_v32, %v4852_v56  ;;  %v2559_v29 = vmul.f32 0.16666667, %v2547_v54  ;;  %v2546_v27 = vmin.f32 %v2534_v18, 6.0  ;;  %v1484_v30 = vpop.permute.xlu0 %1483 }
 0x70b   :  { %1501 = vst [vmem:[#allocation3] sm:$0xff] %v1495_v23  ;;  %v1487_v24 = vsel %vm721_vm5, %v1480_v19, %v1482_v51  ;;  %v2527_v59 = vmax.f32 %v2515_v47, 0.0  ;;  %v2573_v9 = vmul.f32 %v2561_v62, %v2513_v61  ;;  %v2530_v11 = vmax.f32 %v2518_v63, 0.0 }
 0x70c   :  { %1502 = vst [vmem:[#allocation3 + $0x8] sm:$0xff] %v1496_v45  ;;  %v1498_v55 = vadd.f32 %v1487_v24, %v1422_v53  ;;  %v2576_v3 = vpack.c.bf16 %v2567_v12, %v2564_v34  ;;  %v2556_v60 = vmul.f32 0.16666667, %v2544_v40  ;;  %v2558_v49 = vmul.f32 0.16666667, %v2546_v27 }
 0x70d   :  { %v2539_v50 = vmin.f32 %v2527_v59, 6.0  ;;  %v1424_v36 = vadd.f32 %v5271_v31, %v4852_v56  ;;  %v2542_v15 = vmin.f32 %v2530_v11, 6.0  ;;  %v1464_v13 = vadd.f32 %v5272_v1, %v4852_v56 }
 0x70e   :  { %1504 = vst [vmem:[#allocation3 + $0x18] sm:$0xff] %v1498_v55  ;;  %2775 = vmatpush3.bf16.msra.mxu1 %v2576_v3  ;;  %v1488_v10 = vsel %vm721_vm5, %v1482_v51, %v1484_v30  ;;  %v2533_v16 = vmax.f32 %v2521_v43, 0.0  ;;  %v2570_v61 = vmul.f32 %v2558_v49, %v2510_v37  ;;  %v5273_v63 = vmov 0.0  }
 0x70f   :  { %v2551_v47 = vmul.f32 0.16666667, %v2539_v50  ;;  %v1499_v42 = vadd.f32 %v1488_v10, %v1424_v36  ;;  %2776 = vmatprep.subr.bf16.mxu1 %v5273_v63  ;;  %v2536_v35 = vmax.f32 %v2524_v33, 0.0  ;;  %v2554_v0 = vmul.f32 0.16666667, %v2542_v15 }
 0x710   :  { %v1500_v46 = vadd.f32 %v1484_v30, %v1464_v13  ;;  %v2545_v28 = vmin.f32 %v2533_v16, 6.0  ;;  %v2579_v12 = vpack.c.bf16 %v2573_v9, %v2570_v61  ;;  %v2571_v37 = vmul.f32 %v2559_v29, %v4867_v57 }
 0x711   :  { %v2563_v41 = vmul.f32 %v2551_v47, %v4864_v17  ;;  %1505 = vst [vmem:[#allocation3 + $0x20] sm:$0xff] %v1499_v42  ;;  %v2548_v38 = vmin.f32 %v2536_v35, 6.0  ;;  %v2566_v54 = vmul.f32 %v2554_v0, %v4859_v22  ;;  %v2568_v19 = vmul.f32 %v2556_v60, %v4874_v26  ;;  %v2851_v22 = vld [vmem:[%s4952_s9] sm:$0xff]   ;;  %v2673_v26 = vpop.permute.xlu0 %2672  ;;  %s2895_s9 = smov [#allocation3]  }
 0x712   :  { %1506 = vst.msk [vmem:[#allocation3 + $0x28] sm:$0xff] %vm1204_vm10, %v1500_v46  ;;  %v2557_v7 = vmul.f32 0.16666667, %v2545_v28  ;;  %v2574_v39 = vpack.c.bf16 %v4887_v2, %v2562_v20  ;;  %2777 = vmatpush3.bf16.msra.mxu1 %v2579_v12  ;;  %v2671_v2 = vpop.permute.xlu1 %2670  ;;  %s2710_s4 = sshll.u32 %s2895_s9, 4  ;;  %s2711_s4 = int_to_ptr.vmem [resolvable:$true] %s2710_s4 }
 0x713   :  { %v2560_v33 = vmul.f32 0.16666667, %v2548_v38  ;;  %v2575_v5 = vpack.c.bf16 %v2566_v54, %v2563_v41  ;;  %v2577_v4 = vpack.c.bf16 %v2571_v37, %v2568_v19  ;;  %v2682_v45 = vsel %vm721_vm5, %v2671_v2, %v2673_v26  ;;  %s2852_s8 = scalar_lea.vmem %s2711_s4, 1536  ;;  %p2857_p1 = scmp.lt.s32.totalorder %s2711_s4, %s2711_s4 }
 0x714   :  { %v2569_v21 = vmul.f32 %v2557_v7, %v4884_v6  ;;  %p2853_p0 = scmp.ne.s32.totalorder %s2711_s4, %s2852_s8  ;;  %p2858_p2 = scmp.lt.s32.totalorder %s2852_s8, %s2852_s8 }
 0x715   :  { %v2572_v17 = vmul.f32 %v2560_v33, %v4870_v14  ;;  %2580 = vmatprep.subr.bf16.mxu0 %v2575_v5  ;;  %2779 = vmatmul.mubr.msk.bf16.vlgmr.msra.gmra.mrb[16].mxu1 %vm1204_vm10, %v2851_v22  ;;  %v2677_v58 = vpop.permute.xlu0 %2676 }
 0x716   :  { %2581 = vmatpush1.bf16.msra.mxu0 %v2574_v39  ;;  %v2675_v34 = vpop.permute.xlu1 %2674  ;;  %p2859_p3 = por %p2858_p2, %p2857_p1 }
 0x717   :  { %v2578_v57 = vpack.c.bf16 %v2572_v17, %v2569_v21  ;;  %v2683_v29 = vsel %vm721_vm5, %v2673_v26, %v2675_v34 }
 0x718   :  { %p2860_p4 = pnand %p2859_p3, %p2853_p0 }
 0x719   :  { %2582 = vmatprep.subr.bf16.mxu0 %v2578_v57  ;;  %v2681_v52 = vpop.permute.xlu0 %2680 }
 0x71a   :  { %2583 = vmatpush1.bf16.msra.mxu0 %v2577_v4  ;;  %v2679_v43 = vpop.permute.xlu1 %2678 }
 0x71b   :  { %v2685_v30 = vsel %vm721_vm5, %v2679_v43, %v2681_v52  ;;  %v2684_v55 = vsel %vm721_vm5, %v2677_v58, %v2679_v43 }
 0x71d   :  { %2740 = vmatmul.mubr.msk.bf16.vlgmr.msra.gmra.mrb[16].mxu0 %vm1204_vm10, %v2851_v22 }
 0x7e8   :  { %v2657_v6 = vpop.f32.mrb[16].mxu1 }
 0x7e9   :  { %v2658_v14 = vadd.f32 %v2657_v6, %v4861_v44  ;;  %v2780_v62 = vpop.f32.mrb[17].mxu1 }
 0x7ea   :  { %v2660_v25 = vpop.f32.mrb[18].mxu1 }
 0x7eb   :  { %v2694_v8 = vadd.f32 %v2675_v34, %v2658_v14  ;;  %v2661_v51 = vadd.f32 %v2660_v25, %v4852_v56  ;;  %v2781_v18 = vpop.f32.mrb[19].mxu1 }
 0x7ed   :  { %2701 = vst.msk [vmem:[#allocation3 + $0x40] sm:$0xff] %vm1204_vm10, %v2694_v8  ;;  %v2697_v40 = vadd.f32 %v2681_v52, %v2661_v51 }
 0x7ef   :  { %2704 = vst.msk [vmem:[#allocation3 + $0x58] sm:$0xff] %vm1204_vm10, %v2697_v40 }
 0x7f0   :  { %v2614_v48 = vpop.f32.mrb[16].mxu0 }
 0x7f1   :  { %v2615_v23 = vadd.f32 %v2614_v48, %v4861_v44  ;;  %v2616_v20 = vpop.f32.mrb[17].mxu0 }
 0x7f2   :  { %v2617_v32 = vadd.f32 %v2616_v20, %v4861_v44  ;;  %v2618_v53 = vpop.f32.mrb[18].mxu0 }
 0x7f3   :  { %v2692_v27 = vadd.f32 %v2682_v45, %v2615_v23  ;;  %v2619_v24 = vadd.f32 %v2618_v53, %v4852_v56  ;;  %v2620_v59 = vpop.f32.mrb[19].mxu0 }
 0x7f4   :  { %v2693_v9 = vadd.f32 %v2683_v29, %v2617_v32  ;;  %v2621_v11 = vadd.f32 %v2620_v59, %v4852_v56 }
 0x7f5   :  { %2699 = vst [vmem:[#allocation3 + $0x30] sm:$0xff] %v2692_v27  ;;  %v2695_v3 = vadd.f32 %v2684_v55, %v2619_v24 }
 0x7f6   :  { %2700 = vst [vmem:[#allocation3 + $0x38] sm:$0xff] %v2693_v9  ;;  %v2696_v44 = vadd.f32 %v2685_v30, %v2621_v11 }
 0x7f7   :  { %2702 = vst [vmem:[#allocation3 + $0x48] sm:$0xff] %v2695_v3 }
 0x7f8   :  { %2703 = vst [vmem:[#allocation3 + $0x50] sm:$0xff] %v2696_v44 }
 0x7f9   :  { %2863 = shalt.err (!%p2860_p4)
}
 0x7fa   :  { %s2864_s27 = scalar_lea.hbm %s4954_s11, 1536 }
 0x7fb   :  { %p2865_p5 = scmp.ne.s32.totalorder %s4954_s11, %s2864_s27  ;;  %p2868_p6 = scmp.lt.u32.totalorder %s2864_s27, %s4954_s11 }
 0x7fd   :  { %p2870_p7 = pnand %p2868_p6, %p2865_p5 }
 0x7ff   :  { %2873 = shalt.err (!%p2870_p7)
}
 0x800   :  { %s2896_s10 = smov 384   ;;  %s2897_s6 = smov 24  }
 0x801   :  { %2716 = dma.vmem_to_hbm [thread:$0]  %s2711_s4, 1536, %s4954_s11, [#allocation4], %s2896_s10, %s2896_s10, %s2897_s6  }
 0x802   :  { %2874 = dma.done.wait [#allocation4], 1536  }
 0x803   :  { %2875 = vsyncadd [#allocation4], 4294965760 }
 0x804   :  { %2720 = vsyncpa [#allocation4], 1 }

</bundles_post_ra>
